<compile_context>
chip_gen: v7x
topology: tpu7x:2x2x1
jax: 0.10.0
libtpu: 0.0.40
codegen_flags: <defaults>
</compile_context>

<pallas_src>
import functools

import jax
import jax.numpy as jnp
from jax.experimental import pallas as pl
from jax.experimental.pallas import tpu as pltpu


# ---------------------------------------------------------------------------
# In-kernel helpers (pure jnp, traced into the kernel body)
# ---------------------------------------------------------------------------
def _softplus(x):
    # F.softplus(x) = max(x, 0) + log1p(exp(-|x|))  (direct form, no logaddexp filler)
    return jnp.maximum(x, 0.0) + jnp.log1p(jnp.exp(-jnp.abs(x)))


def _batchnorm_train(x, gamma, beta, rmask, n_valid, eps=1e-5):
    """nn.BatchNorm1d training-mode semantics over the `n_valid` valid rows of x.

    Single-pass masked moments: mu = E[x], var = E[x^2] - mu^2 (clamped >= 0).
    `rmask` is a (rows, 1) {0,1} column (or None if all rows are valid).
    """
    inv_n = 1.0 / float(n_valid)
    xm = x if rmask is None else x * rmask
    mu = jnp.sum(xm, axis=0, keepdims=True) * inv_n
    var = jnp.maximum(jnp.sum(xm * xm, axis=0, keepdims=True) * inv_n - mu * mu, 0.0)
    return (x - mu) * jax.lax.rsqrt(var + eps) * gamma + beta


def _mask_lanes(x, valid):
    if valid == x.shape[-1]:
        return x
    lane = jax.lax.broadcasted_iota(jnp.int32, x.shape, x.ndim - 1)
    return jnp.where(lane < valid, x, -1e30)


def _softmax_f32(x, valid):
    """f32 softmax over the last dim, restricted to the first `valid` lanes."""
    x = _mask_lanes(x, valid)
    m = jnp.max(x, axis=-1, keepdims=True)
    e = jnp.exp(x - m)
    return e * pl.reciprocal(jnp.sum(e, axis=-1, keepdims=True), approx=True)


def _softmax_bf16_out(x, valid):
    """Softmax with bf16 exponent (EUP bf16 on v6e/v7x) and f32 lane-sum; bf16 result."""
    x = _mask_lanes(x, valid)
    m = jnp.max(x, axis=-1, keepdims=True)
    e16 = jnp.exp((x - m).astype(jnp.bfloat16))
    denom = jnp.sum(e16.astype(jnp.float32), axis=-1, keepdims=True)
    return e16 * pl.reciprocal(denom, approx=True).astype(jnp.bfloat16)


# ---------------------------------------------------------------------------
# Pallas kernel: full TopicVAE forward (encoder -> reparameterize -> decoder)
# ---------------------------------------------------------------------------
def topic_vae_kernel(
    x_ref, eps_ref,
    w1_ref, w2_ref,          # en1_fc / en2_fc weights (bf16)
    wkv_ref,                 # fused [mean_fc | logvar_fc] weights (E2p, 2*Kp) bf16
    wd_ref,                  # decoder weight (bf16)
    kvec_ref,                # packed (8, W) f32: b1, b2, bm, bv, mbn_g, mbn_b, vbn_g, vbn_b
    vvec_ref,                # packed (3, Vp) f32: bd, decoder_bn gamma, decoder_bn beta
    recon_ref, mean_ref, logvar_ref,
    *, batch, num_topic, num_input, e1p, e2p, kp,
):
    f32 = jnp.float32
    bf16 = jnp.bfloat16

    x = x_ref[...]                              # (Bp, Vp) bf16
    bp = x.shape[0]

    # row-validity mask (built once, reused by every BatchNorm)
    rmask = None
    if batch < bp:
        rmask = (jax.lax.broadcasted_iota(jnp.int32, (bp, 1), 0) < batch).astype(f32)

    kv = kvec_ref[...]                          # (8, W) f32
    b1 = kv[0:1, :e1p]
    b2 = kv[1:2, :e2p]
    bm = kv[2:3, :kp]
    bv = kv[3:4, :kp]
    mbn_g, mbn_b = kv[4:5, :kp], kv[5:6, :kp]
    vbn_g, vbn_b = kv[6:7, :kp], kv[7:8, :kp]

    # ---- encoder ----
    en1 = _softplus(jnp.dot(x, w1_ref[...], preferred_element_type=f32) + b1)
    en2 = _softplus(jnp.dot(en1.astype(bf16), w2_ref[...], preferred_element_type=f32) + b2)
    # en2_drop: identity (eval-mode dropout)

    # fused mean/logvar projection: one MXU matmul, split with static lane-aligned slices
    mv = jnp.dot(en2.astype(bf16), wkv_ref[...], preferred_element_type=f32)  # (Bp, 2*Kp)
    mean_lin = mv[:, :kp] + bm
    logvar_lin = mv[:, kp:] + bv

    posterior_mean = _batchnorm_train(mean_lin, mbn_g, mbn_b, rmask, batch)
    posterior_logvar = _batchnorm_train(logvar_lin, vbn_g, vbn_b, rmask, batch)

    # ---- reparameterize:  z = mu + sqrt(var) * eps  with  sqrt(exp(lv)) == exp(0.5*lv)
    z = posterior_mean + jnp.exp(0.5 * posterior_logvar) * eps_ref[...]

    # ---- generative (canonical AVITM decoder; see TODO at top of file) ----
    p = _softmax_f32(z, valid=num_topic)
    # p_drop: identity (eval-mode dropout)
    vv = vvec_ref[...]                          # (3, Vp) f32
    bd, dbn_g, dbn_b = vv[0:1], vv[1:2], vv[2:3]
    logits = _batchnorm_train(
        jnp.dot(p.astype(bf16), wd_ref[...], preferred_element_type=f32) + bd,
        dbn_g, dbn_b, rmask, batch,
    )
    recon = _softmax_bf16_out(logits, valid=num_input)

    recon_ref[...] = recon.astype(recon_ref.dtype)
    mean_ref[...] = posterior_mean
    logvar_ref[...] = posterior_logvar


# ---------------------------------------------------------------------------
# Wrapper: pad to lane/sublane-friendly shapes, pack small vectors, call kernel
# ---------------------------------------------------------------------------
def _round_up(n, m):
    return ((n + m - 1) // m) * m


def _pad2(a, rows, cols):
    return jnp.pad(a, ((0, rows - a.shape[0]), (0, cols - a.shape[1])))


@jax.jit
def topic_vae_forward(x, eps, params):
    B, V = x.shape
    K = eps.shape[1]
    E1 = params["w1"].shape[1]
    E2 = params["w2"].shape[1]

    LANE = 128
    Bp = _round_up(B, 16)          # bf16 packs 16 rows per vreg
    Vp = _round_up(V, LANE)
    E1p = _round_up(E1, LANE)
    E2p = _round_up(E2, LANE)
    Kp = _round_up(K, LANE)
    W = max(E1p, E2p, Kp)

    f32, bf16 = jnp.float32, jnp.bfloat16

    # activations / noise
    x_p = _pad2(x.astype(bf16), Bp, Vp)          # bf16 input: halves the largest DMA
    eps_p = _pad2(eps.astype(f32), Bp, Kp)

    # weight matrices: zero-padded, stored bf16 (MXU operands)
    w1 = _pad2(params["w1"], Vp, E1p).astype(bf16)
    w2 = _pad2(params["w2"], E1p, E2p).astype(bf16)
    wkv = jnp.concatenate(
        [_pad2(params["wm"], E2p, Kp), _pad2(params["wv"], E2p, Kp)], axis=1
    ).astype(bf16)                               # (E2p, 2*Kp) fused mean|logvar projection
    wd = _pad2(params["wd"], Kp, Vp).astype(bf16)

    # small per-feature vectors stay f32; packed into one (8, W) tile + one (3, Vp) tile
    kvec = jnp.concatenate(
        [
            _pad2(params["b1"], 1, W), _pad2(params["b2"], 1, W),
            _pad2(params["bm"], 1, W), _pad2(params["bv"], 1, W),
            _pad2(params["mbn_g"], 1, W), _pad2(params["mbn_b"], 1, W),
            _pad2(params["vbn_g"], 1, W), _pad2(params["vbn_b"], 1, W),
        ],
        axis=0,
    )
    vvec = jnp.concatenate(
        [
            _pad2(params["bd"], 1, Vp),
            _pad2(params["dbn_g"], 1, Vp), _pad2(params["dbn_b"], 1, Vp),
        ],
        axis=0,
    )

    kernel = functools.partial(
        topic_vae_kernel,
        batch=B, num_topic=K, num_input=V, e1p=E1p, e2p=E2p, kp=Kp,
    )

    out_shapes = (
        jax.ShapeDtypeStruct((Bp, Vp), jnp.bfloat16),   # recon (bf16 writeback)
        jax.ShapeDtypeStruct((Bp, Kp), f32),            # posterior_mean
        jax.ShapeDtypeStruct((Bp, Kp), f32),            # posterior_logvar
    )

    recon_p, mean_p, logvar_p = pl.pallas_call(
        kernel,
        out_shape=out_shapes,
    )(x_p, eps_p, w1, w2, wkv, wd, kvec, vvec)

    return recon_p[:B, :V], mean_p[:B, :K], logvar_p[:B, :K]


# ---------------------------------------------------------------------------
# Pure-JAX reference with the same precision policy (bf16 matmuls, f32 elsewhere)
# ---------------------------------------------------------------------------
def reference_forward(x, eps, params):
    f32, bf16 = jnp.float32, jnp.bfloat16

    def dot(a, w):
        return jnp.dot(a.astype(bf16), w.astype(bf16), preferred_element_type=f32)

    def bn(h, g, b, eps_=1e-5):
        mu = jnp.mean(h, axis=0, keepdims=True)
        var = jnp.mean((h - mu) ** 2, axis=0, keepdims=True)
        return (h - mu) * jax.lax.rsqrt(var + eps_) * g + b

    def softmax(v):
        m = jnp.max(v, axis=-1, keepdims=True)
        e = jnp.exp(v - m)
        return e / jnp.sum(e, axis=-1, keepdims=True)

    en1 = jnp.logaddexp(dot(x, params["w1"]) + params["b1"], 0.0)
    en2 = jnp.logaddexp(dot(en1, params["w2"]) + params["b2"], 0.0)
    pm = bn(dot(en2, params["wm"]) + params["bm"], params["mbn_g"], params["mbn_b"])
    plv = bn(dot(en2, params["wv"]) + params["bv"], params["vbn_g"], params["vbn_b"])
    z = pm + jnp.exp(0.5 * plv) * eps
    p = softmax(z)
    logits = bn(dot(p, params["wd"]) + params["bd"], params["dbn_g"], params["dbn_b"])
    return softmax(logits), pm, plv


# ---------------------------------------------------------------------------
# Deterministic parameter construction (matches nn.Linear / BatchNorm1d shapes)
# ---------------------------------------------------------------------------
def make_params(key, num_input, en1_units, en2_units, num_topic, init_mult=1.0):
    ks = jax.random.split(key, 8)

    def linear(k, fan_in, fan_out):
        bound = 1.0 / jnp.sqrt(fan_in)
        kw, kb = jax.random.split(k)
        w = jax.random.uniform(kw, (fan_in, fan_out), jnp.float32, -bound, bound)
        b = jax.random.uniform(kb, (1, fan_out), jnp.float32, -bound, bound)
        return w, b

    w1, b1 = linear(ks[0], num_input, en1_units)
    w2, b2 = linear(ks[1], en1_units, en2_units)
    wm, bm = linear(ks[2], en2_units, num_topic)
    wv, bv = linear(ks[3], en2_units, num_topic)
    wd, bd = linear(ks[4], num_topic, num_input)
    # decoder.weight.data.uniform_(0, init_mult)
    wd = jax.random.uniform(ks[5], (num_topic, num_input), jnp.float32, 0.0, init_mult)

    ones_k = jnp.ones((1, num_topic), jnp.float32)
    zeros_k = jnp.zeros((1, num_topic), jnp.float32)
    ones_v = jnp.ones((1, num_input), jnp.float32)
    zeros_v = jnp.zeros((1, num_input), jnp.float32)

    return dict(
        w1=w1, b1=b1, w2=w2, b2=b2,
        wm=wm, bm=bm, wv=wv, bv=bv,
        mbn_g=ones_k, mbn_b=zeros_k,
        vbn_g=ones_k, vbn_b=zeros_k,
        wd=wd, bd=bd,
        dbn_g=ones_v, dbn_b=zeros_v,
    )


if __name__ == "__main__":
    # net_arch: num_input=512 (vocab), en1_units=128, en2_units=64, num_topic=32,
    # variance=0.995, init_mult=1.0, batch=100 (exercises the masked-BN batch padding
    # path and keeps the MXU M dimension mostly filled).
    B, V, E1, E2, K = 100, 512, 128, 64, 32

    key = jax.random.PRNGKey(0)
    k_x, k_eps, k_p = jax.random.split(key, 3)

    # bag-of-words style non-negative counts (exactly representable in bf16)
    x = jnp.floor(5.0 * jax.random.uniform(k_x, (B, V), jnp.float32)).astype(jnp.float32)
    eps = jax.random.normal(k_eps, (B, K), jnp.float32)

    params = make_params(k_p, V, E1, E2, K, init_mult=1.0)

    recon, post_mean, post_logvar = topic_vae_forward(x, eps, params)
    jax.block_until_ready((recon, post_mean, post_logvar))

    assert recon.shape == (B, V)
    assert post_mean.shape == (B, K) and post_logvar.shape == (B, K)

    recon_f32 = recon.astype(jnp.float32)
    assert bool(jnp.all(jnp.isfinite(recon_f32)))

    # recon rows are (approximately) probability distributions over the vocab
    row_sums = jnp.sum(recon_f32, axis=1)
    assert bool(jnp.all(jnp.abs(row_sums - 1.0) < 2e-2))

    # compare against a pure-JAX reference with the same precision policy
    r_ref, m_ref, lv_ref = reference_forward(x, eps, params)
    assert float(jnp.max(jnp.abs(recon_f32 - r_ref))) < 2e-2
    assert float(jnp.max(jnp.abs(post_mean - m_ref))) < 2e-2
    assert float(jnp.max(jnp.abs(post_logvar - lv_ref))) < 2e-2

    print("KERNEL_OK")
</pallas_src>

<mosaic_0001>
module attributes {stable_mosaic.version = 11 : i64} {
  func.func @topic_vae_kernel(%arg0: memref<112x512xbf16, #tpu.memory_space<vmem>>, %arg1: memref<112x128xf32, #tpu.memory_space<vmem>>, %arg2: memref<512x128xbf16, #tpu.memory_space<vmem>>, %arg3: memref<128x128xbf16, #tpu.memory_space<vmem>>, %arg4: memref<128x256xbf16, #tpu.memory_space<vmem>>, %arg5: memref<128x512xbf16, #tpu.memory_space<vmem>>, %arg6: memref<8x128xf32, #tpu.memory_space<vmem>>, %arg7: memref<3x512xf32, #tpu.memory_space<vmem>>, %arg8: memref<112x512xbf16, #tpu.memory_space<vmem>>, %arg9: memref<112x128xf32, #tpu.memory_space<vmem>>, %arg10: memref<112x128xf32, #tpu.memory_space<vmem>>) attributes {dimension_semantics = [], scalar_prefetch = 0 : i64, scratch_operands = 0 : i64, tpu.core_type = #tpu.core_type<tc>} {
    %c0 = arith.constant 0 : index
    %c0_0 = arith.constant 0 : index
    %0 = vector.load %arg0[%c0, %c0_0] : memref<112x512xbf16, #tpu.memory_space<vmem>>, vector<112x512xbf16>
    %1 = tpu.iota {dimensions = array<i32: 0>} : vector<112x1xi32>
    %c100_i32 = arith.constant 100 : i32
    %2 = vector.broadcast %c100_i32 : i32 to vector<112x1xi32>
    %3 = arith.cmpi slt, %1, %2 : vector<112x1xi32>
    %4 = arith.extui %3 : vector<112x1xi1> to vector<112x1xi32>
    %5 = arith.sitofp %4 : vector<112x1xi32> to vector<112x1xf32>
    %c0_1 = arith.constant 0 : index
    %c0_2 = arith.constant 0 : index
    %6 = vector.load %arg6[%c0_1, %c0_2] : memref<8x128xf32, #tpu.memory_space<vmem>>, vector<8x128xf32>
    %7 = vector.extract_strided_slice %6 {offsets = [0, 0], sizes = [1, 128], strides = [1, 1]} : vector<8x128xf32> to vector<1x128xf32>
    %8 = vector.extract_strided_slice %6 {offsets = [1, 0], sizes = [1, 128], strides = [1, 1]} : vector<8x128xf32> to vector<1x128xf32>
    %9 = vector.extract_strided_slice %6 {offsets = [2, 0], sizes = [1, 128], strides = [1, 1]} : vector<8x128xf32> to vector<1x128xf32>
    %10 = vector.extract_strided_slice %6 {offsets = [3, 0], sizes = [1, 128], strides = [1, 1]} : vector<8x128xf32> to vector<1x128xf32>
    %11 = vector.extract_strided_slice %6 {offsets = [4, 0], sizes = [1, 128], strides = [1, 1]} : vector<8x128xf32> to vector<1x128xf32>
    %12 = vector.extract_strided_slice %6 {offsets = [5, 0], sizes = [1, 128], strides = [1, 1]} : vector<8x128xf32> to vector<1x128xf32>
    %13 = vector.extract_strided_slice %6 {offsets = [6, 0], sizes = [1, 128], strides = [1, 1]} : vector<8x128xf32> to vector<1x128xf32>
    %14 = vector.extract_strided_slice %6 {offsets = [7, 0], sizes = [1, 128], strides = [1, 1]} : vector<8x128xf32> to vector<1x128xf32>
    %c0_3 = arith.constant 0 : index
    %c0_4 = arith.constant 0 : index
    %15 = vector.load %arg2[%c0_3, %c0_4] : memref<512x128xbf16, #tpu.memory_space<vmem>>, vector<512x128xbf16>
    %cst = arith.constant dense<0.000000e+00> : vector<112x128xf32>
    %16 = tpu.matmul %0, %15, %cst {dimension_numbers = #tpu.dot_dimension_numbers<[1], [0], [0], [1], [0, 0, 1, 1], [], []>} : vector<112x512xbf16>, vector<512x128xbf16>, vector<112x128xf32> -> vector<112x128xf32>
    %17 = vector.broadcast %7 : vector<1x128xf32> to vector<112x128xf32>
    %18 = arith.addf %16, %17 : vector<112x128xf32>
    %cst_5 = arith.constant 0.000000e+00 : f32
    %19 = vector.broadcast %cst_5 : f32 to vector<112x128xf32>
    %20 = arith.maximumf %18, %19 : vector<112x128xf32>
    %21 = math.absf %18 : vector<112x128xf32>
    %cst_6 = arith.constant 0.000000e+00 : f32
    %22 = vector.broadcast %cst_6 : f32 to vector<112x128xf32>
    %23 = arith.subf %22, %21 : vector<112x128xf32>
    %24 = math.exp %23 : vector<112x128xf32>
    %25 = math.log1p %24 : vector<112x128xf32>
    %26 = arith.addf %20, %25 : vector<112x128xf32>
    %27 = arith.truncf %26 : vector<112x128xf32> to vector<112x128xbf16>
    %c0_7 = arith.constant 0 : index
    %c0_8 = arith.constant 0 : index
    %28 = vector.load %arg3[%c0_7, %c0_8] : memref<128x128xbf16, #tpu.memory_space<vmem>>, vector<128x128xbf16>
    %cst_9 = arith.constant dense<0.000000e+00> : vector<112x128xf32>
    %29 = tpu.matmul %27, %28, %cst_9 {dimension_numbers = #tpu.dot_dimension_numbers<[1], [0], [0], [1], [0, 0, 1, 1], [], []>} : vector<112x128xbf16>, vector<128x128xbf16>, vector<112x128xf32> -> vector<112x128xf32>
    %30 = vector.broadcast %8 : vector<1x128xf32> to vector<112x128xf32>
    %31 = arith.addf %29, %30 : vector<112x128xf32>
    %cst_10 = arith.constant 0.000000e+00 : f32
    %32 = vector.broadcast %cst_10 : f32 to vector<112x128xf32>
    %33 = arith.maximumf %31, %32 : vector<112x128xf32>
    %34 = math.absf %31 : vector<112x128xf32>
    %cst_11 = arith.constant 0.000000e+00 : f32
    %35 = vector.broadcast %cst_11 : f32 to vector<112x128xf32>
    %36 = arith.subf %35, %34 : vector<112x128xf32>
    %37 = math.exp %36 : vector<112x128xf32>
    %38 = math.log1p %37 : vector<112x128xf32>
    %39 = arith.addf %33, %38 : vector<112x128xf32>
    %40 = arith.truncf %39 : vector<112x128xf32> to vector<112x128xbf16>
    %c0_12 = arith.constant 0 : index
    %c0_13 = arith.constant 0 : index
    %41 = vector.load %arg4[%c0_12, %c0_13] : memref<128x256xbf16, #tpu.memory_space<vmem>>, vector<128x256xbf16>
    %cst_14 = arith.constant dense<0.000000e+00> : vector<112x256xf32>
    %42 = tpu.matmul %40, %41, %cst_14 {dimension_numbers = #tpu.dot_dimension_numbers<[1], [0], [0], [1], [0, 0, 1, 1], [], []>} : vector<112x128xbf16>, vector<128x256xbf16>, vector<112x256xf32> -> vector<112x256xf32>
    %43 = vector.extract_strided_slice %42 {offsets = [0, 0], sizes = [112, 128], strides = [1, 1]} : vector<112x256xf32> to vector<112x128xf32>
    %44 = vector.broadcast %9 : vector<1x128xf32> to vector<112x128xf32>
    %45 = arith.addf %43, %44 : vector<112x128xf32>
    %46 = vector.extract_strided_slice %42 {offsets = [0, 128], sizes = [112, 128], strides = [1, 1]} : vector<112x256xf32> to vector<112x128xf32>
    %47 = vector.broadcast %10 : vector<1x128xf32> to vector<112x128xf32>
    %48 = arith.addf %46, %47 : vector<112x128xf32>
    %49 = vector.broadcast %5 : vector<112x1xf32> to vector<112x128xf32>
    %50 = arith.mulf %45, %49 : vector<112x128xf32>
    %cst_15 = arith.constant dense<0.000000e+00> : vector<128xf32>
    %51 = vector.multi_reduction <add>, %50, %cst_15 [0] : vector<112x128xf32> to vector<128xf32>
    %52 = vector.shape_cast %51 : vector<128xf32> to vector<1x128xf32>
    %cst_16 = arith.constant 0.00999999977 : f32
    %53 = vector.broadcast %cst_16 : f32 to vector<1x128xf32>
    %54 = arith.mulf %52, %53 : vector<1x128xf32>
    %55 = arith.mulf %50, %50 : vector<112x128xf32>
    %cst_17 = arith.constant dense<0.000000e+00> : vector<128xf32>
    %56 = vector.multi_reduction <add>, %55, %cst_17 [0] : vector<112x128xf32> to vector<128xf32>
    %57 = vector.shape_cast %56 : vector<128xf32> to vector<1x128xf32>
    %cst_18 = arith.constant 0.00999999977 : f32
    %58 = vector.broadcast %cst_18 : f32 to vector<1x128xf32>
    %59 = arith.mulf %57, %58 : vector<1x128xf32>
    %60 = arith.mulf %54, %54 : vector<1x128xf32>
    %61 = arith.subf %59, %60 : vector<1x128xf32>
    %cst_19 = arith.constant 0.000000e+00 : f32
    %62 = vector.broadcast %cst_19 : f32 to vector<1x128xf32>
    %63 = arith.maximumf %61, %62 : vector<1x128xf32>
    %64 = vector.broadcast %54 : vector<1x128xf32> to vector<112x128xf32>
    %65 = arith.subf %45, %64 : vector<112x128xf32>
    %cst_20 = arith.constant 9.99999974E-6 : f32
    %66 = vector.broadcast %cst_20 : f32 to vector<1x128xf32>
    %67 = arith.addf %63, %66 : vector<1x128xf32>
    %68 = math.rsqrt %67 : vector<1x128xf32>
    %69 = vector.broadcast %68 : vector<1x128xf32> to vector<112x128xf32>
    %70 = arith.mulf %65, %69 : vector<112x128xf32>
    %71 = vector.broadcast %11 : vector<1x128xf32> to vector<112x128xf32>
    %72 = arith.mulf %70, %71 : vector<112x128xf32>
    %73 = vector.broadcast %12 : vector<1x128xf32> to vector<112x128xf32>
    %74 = arith.addf %72, %73 : vector<112x128xf32>
    %75 = vector.broadcast %5 : vector<112x1xf32> to vector<112x128xf32>
    %76 = arith.mulf %48, %75 : vector<112x128xf32>
    %cst_21 = arith.constant dense<0.000000e+00> : vector<128xf32>
    %77 = vector.multi_reduction <add>, %76, %cst_21 [0] : vector<112x128xf32> to vector<128xf32>
    %78 = vector.shape_cast %77 : vector<128xf32> to vector<1x128xf32>
    %cst_22 = arith.constant 0.00999999977 : f32
    %79 = vector.broadcast %cst_22 : f32 to vector<1x128xf32>
    %80 = arith.mulf %78, %79 : vector<1x128xf32>
    %81 = arith.mulf %76, %76 : vector<112x128xf32>
    %cst_23 = arith.constant dense<0.000000e+00> : vector<128xf32>
    %82 = vector.multi_reduction <add>, %81, %cst_23 [0] : vector<112x128xf32> to vector<128xf32>
    %83 = vector.shape_cast %82 : vector<128xf32> to vector<1x128xf32>
    %cst_24 = arith.constant 0.00999999977 : f32
    %84 = vector.broadcast %cst_24 : f32 to vector<1x128xf32>
    %85 = arith.mulf %83, %84 : vector<1x128xf32>
    %86 = arith.mulf %80, %80 : vector<1x128xf32>
    %87 = arith.subf %85, %86 : vector<1x128xf32>
    %cst_25 = arith.constant 0.000000e+00 : f32
    %88 = vector.broadcast %cst_25 : f32 to vector<1x128xf32>
    %89 = arith.maximumf %87, %88 : vector<1x128xf32>
    %90 = vector.broadcast %80 : vector<1x128xf32> to vector<112x128xf32>
    %91 = arith.subf %48, %90 : vector<112x128xf32>
    %cst_26 = arith.constant 9.99999974E-6 : f32
    %92 = vector.broadcast %cst_26 : f32 to vector<1x128xf32>
    %93 = arith.addf %89, %92 : vector<1x128xf32>
    %94 = math.rsqrt %93 : vector<1x128xf32>
    %95 = vector.broadcast %94 : vector<1x128xf32> to vector<112x128xf32>
    %96 = arith.mulf %91, %95 : vector<112x128xf32>
    %97 = vector.broadcast %13 : vector<1x128xf32> to vector<112x128xf32>
    %98 = arith.mulf %96, %97 : vector<112x128xf32>
    %99 = vector.broadcast %14 : vector<1x128xf32> to vector<112x128xf32>
    %100 = arith.addf %98, %99 : vector<112x128xf32>
    %cst_27 = arith.constant 5.000000e-01 : f32
    %101 = vector.broadcast %cst_27 : f32 to vector<112x128xf32>
    %102 = arith.mulf %101, %100 : vector<112x128xf32>
    %103 = math.exp %102 : vector<112x128xf32>
    %c0_28 = arith.constant 0 : index
    %c0_29 = arith.constant 0 : index
    %104 = vector.load %arg1[%c0_28, %c0_29] : memref<112x128xf32, #tpu.memory_space<vmem>>, vector<112x128xf32>
    %105 = arith.mulf %103, %104 : vector<112x128xf32>
    %106 = arith.addf %74, %105 : vector<112x128xf32>
    %107 = tpu.iota {dimensions = array<i32: 1>} : vector<112x128xi32>
    %c32_i32 = arith.constant 32 : i32
    %108 = vector.broadcast %c32_i32 : i32 to vector<112x128xi32>
    %109 = arith.cmpi slt, %107, %108 : vector<112x128xi32>
    %cst_30 = arith.constant -1.000000e+30 : f32
    %110 = vector.broadcast %cst_30 : f32 to vector<112x128xf32>
    %111 = arith.select %109, %106, %110 : vector<112x128xi1>, vector<112x128xf32>
    %cst_31 = arith.constant dense<0xFF800000> : vector<112xf32>
    %112 = vector.multi_reduction <maximumf>, %111, %cst_31 [1] : vector<112x128xf32> to vector<112xf32>
    %113 = vector.shape_cast %112 : vector<112xf32> to vector<112x1xf32>
    %114 = vector.broadcast %113 : vector<112x1xf32> to vector<112x128xf32>
    %115 = arith.subf %111, %114 : vector<112x128xf32>
    %116 = math.exp %115 : vector<112x128xf32>
    %cst_32 = arith.constant dense<0.000000e+00> : vector<112xf32>
    %117 = vector.multi_reduction <add>, %116, %cst_32 [1] : vector<112x128xf32> to vector<112xf32>
    %118 = vector.shape_cast %117 : vector<112xf32> to vector<112x1xf32>
    %119 = tpu.reciprocal %118 {approx = true} : vector<112x1xf32> -> vector<112x1xf32>
    %120 = vector.broadcast %119 : vector<112x1xf32> to vector<112x128xf32>
    %121 = arith.mulf %116, %120 : vector<112x128xf32>
    %c0_33 = arith.constant 0 : index
    %c0_34 = arith.constant 0 : index
    %122 = vector.load %arg7[%c0_33, %c0_34] : memref<3x512xf32, #tpu.memory_space<vmem>>, vector<3x512xf32>
    %123 = vector.extract_strided_slice %122 {offsets = [0, 0], sizes = [1, 512], strides = [1, 1]} : vector<3x512xf32> to vector<1x512xf32>
    %124 = vector.extract_strided_slice %122 {offsets = [1, 0], sizes = [1, 512], strides = [1, 1]} : vector<3x512xf32> to vector<1x512xf32>
    %125 = vector.extract_strided_slice %122 {offsets = [2, 0], sizes = [1, 512], strides = [1, 1]} : vector<3x512xf32> to vector<1x512xf32>
    %126 = arith.truncf %121 : vector<112x128xf32> to vector<112x128xbf16>
    %c0_35 = arith.constant 0 : index
    %c0_36 = arith.constant 0 : index
    %127 = vector.load %arg5[%c0_35, %c0_36] : memref<128x512xbf16, #tpu.memory_space<vmem>>, vector<128x512xbf16>
    %cst_37 = arith.constant dense<0.000000e+00> : vector<112x512xf32>
    %128 = tpu.matmul %126, %127, %cst_37 {dimension_numbers = #tpu.dot_dimension_numbers<[1], [0], [0], [1], [0, 0, 1, 1], [], []>} : vector<112x128xbf16>, vector<128x512xbf16>, vector<112x512xf32> -> vector<112x512xf32>
    %129 = vector.broadcast %123 : vector<1x512xf32> to vector<112x512xf32>
    %130 = arith.addf %128, %129 : vector<112x512xf32>
    %131 = vector.broadcast %5 : vector<112x1xf32> to vector<112x512xf32>
    %132 = arith.mulf %130, %131 : vector<112x512xf32>
    %cst_38 = arith.constant dense<0.000000e+00> : vector<512xf32>
    %133 = vector.multi_reduction <add>, %132, %cst_38 [0] : vector<112x512xf32> to vector<512xf32>
    %134 = vector.shape_cast %133 : vector<512xf32> to vector<1x512xf32>
    %cst_39 = arith.constant 0.00999999977 : f32
    %135 = vector.broadcast %cst_39 : f32 to vector<1x512xf32>
    %136 = arith.mulf %134, %135 : vector<1x512xf32>
    %137 = arith.mulf %132, %132 : vector<112x512xf32>
    %cst_40 = arith.constant dense<0.000000e+00> : vector<512xf32>
    %138 = vector.multi_reduction <add>, %137, %cst_40 [0] : vector<112x512xf32> to vector<512xf32>
    %139 = vector.shape_cast %138 : vector<512xf32> to vector<1x512xf32>
    %cst_41 = arith.constant 0.00999999977 : f32
    %140 = vector.broadcast %cst_41 : f32 to vector<1x512xf32>
    %141 = arith.mulf %139, %140 : vector<1x512xf32>
    %142 = arith.mulf %136, %136 : vector<1x512xf32>
    %143 = arith.subf %141, %142 : vector<1x512xf32>
    %cst_42 = arith.constant 0.000000e+00 : f32
    %144 = vector.broadcast %cst_42 : f32 to vector<1x512xf32>
    %145 = arith.maximumf %143, %144 : vector<1x512xf32>
    %146 = vector.broadcast %136 : vector<1x512xf32> to vector<112x512xf32>
    %147 = arith.subf %130, %146 : vector<112x512xf32>
    %cst_43 = arith.constant 9.99999974E-6 : f32
    %148 = vector.broadcast %cst_43 : f32 to vector<1x512xf32>
    %149 = arith.addf %145, %148 : vector<1x512xf32>
    %150 = math.rsqrt %149 : vector<1x512xf32>
    %151 = vector.broadcast %150 : vector<1x512xf32> to vector<112x512xf32>
    %152 = arith.mulf %147, %151 : vector<112x512xf32>
    %153 = vector.broadcast %124 : vector<1x512xf32> to vector<112x512xf32>
    %154 = arith.mulf %152, %153 : vector<112x512xf32>
    %155 = vector.broadcast %125 : vector<1x512xf32> to vector<112x512xf32>
    %156 = arith.addf %154, %155 : vector<112x512xf32>
    %cst_44 = arith.constant dense<0xFF800000> : vector<112xf32>
    %157 = vector.multi_reduction <maximumf>, %156, %cst_44 [1] : vector<112x512xf32> to vector<112xf32>
    %158 = vector.shape_cast %157 : vector<112xf32> to vector<112x1xf32>
    %159 = vector.broadcast %158 : vector<112x1xf32> to vector<112x512xf32>
    %160 = arith.subf %156, %159 : vector<112x512xf32>
    %161 = arith.truncf %160 : vector<112x512xf32> to vector<112x512xbf16>
    %162 = math.exp %161 : vector<112x512xbf16>
    %163 = arith.extf %162 : vector<112x512xbf16> to vector<112x512xf32>
    %cst_45 = arith.constant dense<0.000000e+00> : vector<112xf32>
    %164 = vector.multi_reduction <add>, %163, %cst_45 [1] : vector<112x512xf32> to vector<112xf32>
    %165 = vector.shape_cast %164 : vector<112xf32> to vector<112x1xf32>
    %166 = tpu.reciprocal %165 {approx = true} : vector<112x1xf32> -> vector<112x1xf32>
    %167 = arith.truncf %166 : vector<112x1xf32> to vector<112x1xbf16>
    %168 = vector.broadcast %167 : vector<112x1xbf16> to vector<112x512xbf16>
    %169 = arith.mulf %162, %168 : vector<112x512xbf16>
    %c0_46 = arith.constant 0 : index
    %c0_47 = arith.constant 0 : index
    %170 = vector.load %arg8[%c0_46, %c0_47] : memref<112x512xbf16, #tpu.memory_space<vmem>>, vector<112x512xbf16>
    tpu.vector_store %arg8[%c0_46, %c0_47], %169 {strides = array<i32>} : memref<112x512xbf16, #tpu.memory_space<vmem>>, vector<112x512xbf16>,
    %c0_48 = arith.constant 0 : index
    %c0_49 = arith.constant 0 : index
    %171 = vector.load %arg9[%c0_48, %c0_49] : memref<112x128xf32, #tpu.memory_space<vmem>>, vector<112x128xf32>
    tpu.vector_store %arg9[%c0_48, %c0_49], %74 {strides = array<i32>} : memref<112x128xf32, #tpu.memory_space<vmem>>, vector<112x128xf32>,
    %c0_50 = arith.constant 0 : index
    %c0_51 = arith.constant 0 : index
    %172 = vector.load %arg10[%c0_50, %c0_51] : memref<112x128xf32, #tpu.memory_space<vmem>>, vector<112x128xf32>
    tpu.vector_store %arg10[%c0_50, %c0_51], %100 {strides = array<i32>} : memref<112x128xf32, #tpu.memory_space<vmem>>, vector<112x128xf32>,
    return
  }
}

</mosaic_0001>

<bundles_post_ra>
// kernel: topic_vae_forward.1
= control target key start
LH: loop header
LB: loop body
LE: loop exit
PB: predicated region body
PF: predicated region fallthrough
CT: control target
= control target key end

     0   :  { %v4448_v34 = vmov 0.0   ;;  %vm4449_vm0 = vmmov 0   ;;  %s7275_s2 = inlined_call_operand.vmem [shape: bf16[512,128], index: 2, kind: input, shape index: {}]   ;;  %s7276_s0 = inlined_call_operand.vmem [shape: bf16[112,512], index: 0, kind: input, shape index: {}]   ;;  %s7277_s3 = inlined_call_operand.vmem [shape: bf16[128,128], index: 3, kind: input, shape index: {}]   ;;  %s7278_s4 = inlined_call_operand.vmem [shape: bf16[128,256], index: 4, kind: input, shape index: {}]   ;;  %s7279_s6 = inlined_call_operand.vmem [shape: f32[8,128], index: 6, kind: input, shape index: {}]   ;;  %s7280_s9 = inlined_call_operand.vmem [shape: f32[112,128], index: 9, kind: output, shape index: {1}]   ;;  %s7281_s10 = inlined_call_operand.vmem [shape: f32[112,128], index: 10, kind: output, shape index: {2}]   ;;  %s7282_s1 = inlined_call_operand.vmem [shape: f32[112,128], index: 1, kind: input, shape index: {}]   ;;  %s7283_s5 = inlined_call_operand.vmem [shape: bf16[128,512], index: 5, kind: input, shape index: {}]   ;;  %s7284_s7 = inlined_call_operand.vmem [shape: f32[3,512], index: 7, kind: input, shape index: {}]   ;;  %s7285_s8 = inlined_call_operand.vmem [shape: bf16[112,512], index: 8, kind: output, shape index: {0}]  }
   0x1   :  { %v4001_v0 = vld [vmem:[%s7275_s2 + $0x40] sm:$0xff]   ;;  %v4005_v4 = vld [vmem:[%s7275_s2 + $0x48] sm:$0xff]   ;;  %v4009_v8 = vld [vmem:[%s7275_s2 + $0x50] sm:$0xff]  }
   0x2   :  { %v4002_v1 = vld [vmem:[%s7275_s2 + $0xc0] sm:$0xff]   ;;  %3823 = vmatprep.subr.bf16.mxu0 %v4001_v0  ;;  %v4006_v5 = vld [vmem:[%s7275_s2 + $0xc8] sm:$0xff]   ;;  %v4010_v9 = vld [vmem:[%s7275_s2 + $0xd0] sm:$0xff]  }
   0x3   :  { %v4003_v2 = vld [vmem:[%s7275_s2] sm:$0xff]   ;;  %3881 = vmatprep.subr.bf16.mxu1 %v4002_v1  ;;  %v4007_v6 = vld [vmem:[%s7275_s2 + $0x8] sm:$0xff]   ;;  %v4011_v10 = vld [vmem:[%s7275_s2 + $0x10] sm:$0xff]  }
   0x4   :  { %v4004_v3 = vld [vmem:[%s7275_s2 + $0x80] sm:$0xff]   ;;  %3824 = vmatpush3.bf16.msra.mxu0 %v4003_v2  ;;  %v4008_v7 = vld [vmem:[%s7275_s2 + $0x88] sm:$0xff]   ;;  %v4012_v11 = vld [vmem:[%s7275_s2 + $0x90] sm:$0xff]  }
   0x5   :  { %3882 = vmatpush3.bf16.msra.mxu1 %v4004_v3  ;;  %3825 = vmatprep.subr.bf16.mxu0 %v4005_v4  ;;  %v4013_v12 = vld [vmem:[%s7275_s2 + $0x58] sm:$0xff]   ;;  %v4017_v16 = vld [vmem:[%s7275_s2 + $0x60] sm:$0xff]   ;;  %v4021_v20 = vld [vmem:[%s7275_s2 + $0x68] sm:$0xff]  }
   0x6   :  { %3883 = vmatprep.subr.bf16.mxu1 %v4006_v5  ;;  %v4014_v13 = vld [vmem:[%s7275_s2 + $0xd8] sm:$0xff]   ;;  %v4018_v17 = vld [vmem:[%s7275_s2 + $0xe0] sm:$0xff]   ;;  %v4022_v21 = vld [vmem:[%s7275_s2 + $0xe8] sm:$0xff]  }
   0x7   :  { %v4015_v14 = vld [vmem:[%s7275_s2 + $0x18] sm:$0xff]   ;;  %v4019_v18 = vld [vmem:[%s7275_s2 + $0x20] sm:$0xff]   ;;  %v4023_v22 = vld [vmem:[%s7275_s2 + $0x28] sm:$0xff]  }
   0x8   :  { %3826 = vmatpush3.bf16.msra.mxu0 %v4007_v6  ;;  %v4016_v15 = vld [vmem:[%s7275_s2 + $0x98] sm:$0xff]   ;;  %v4020_v19 = vld [vmem:[%s7275_s2 + $0xa0] sm:$0xff]   ;;  %v4024_v23 = vld [vmem:[%s7275_s2 + $0xa8] sm:$0xff]  }
   0x9   :  { %3884 = vmatpush3.bf16.msra.mxu1 %v4008_v7  ;;  %3827 = vmatprep.subr.bf16.mxu0 %v4009_v8  ;;  %v4025_v24 = vld [vmem:[%s7275_s2 + $0x70] sm:$0xff]   ;;  %v4029_v28 = vld [vmem:[%s7275_s2 + $0x78] sm:$0xff]   ;;  %v4075_v47 = vld [vmem:[%s7277_s3] sm:$0xff]  }
   0xa   :  { %3885 = vmatprep.subr.bf16.mxu1 %v4010_v9  ;;  %v4026_v25 = vld [vmem:[%s7275_s2 + $0xf0] sm:$0xff]   ;;  %v4030_v29 = vld [vmem:[%s7275_s2 + $0xf8] sm:$0xff]   ;;  %v4076_v48 = vld [vmem:[%s7277_s3 + $0x8] sm:$0xff]  }
   0xb   :  { %v4027_v26 = vld [vmem:[%s7275_s2 + $0x30] sm:$0xff]   ;;  %v4031_v30 = vld [vmem:[%s7275_s2 + $0x38] sm:$0xff]   ;;  %v4079_v1 = vld [vmem:[%s7277_s3 + $0x20] sm:$0xff]  }
   0xc   :  { %3828 = vmatpush3.bf16.msra.mxu0 %v4011_v10  ;;  %v4028_v27 = vld [vmem:[%s7275_s2 + $0xb0] sm:$0xff]   ;;  %v4032_v31 = vld [vmem:[%s7275_s2 + $0xb8] sm:$0xff]   ;;  %v4080_v2 = vld [vmem:[%s7277_s3 + $0x28] sm:$0xff]  }
   0xd   :  { %3886 = vmatpush3.bf16.msra.mxu1 %v4012_v11  ;;  %3829 = vmatprep.subr.bf16.mxu0 %v4013_v12  ;;  %v4033_v32 = vld [vmem:[%s7276_s0] ss:$16 sps:$4 sm:$0xff]   ;;  %v4035_v33 = vld [vmem:[%s7276_s0 + $0x4] ss:$16 sps:$4 sm:$0xff]   ;;  %v4036_v35 = vld [vmem:[%s7276_s0 + $0x8] ss:$16 sps:$4 sm:$0xff]   ;;  %v61_v11 = vlaneseq }
   0xe   :  { %3887 = vmatprep.subr.bf16.mxu1 %v4014_v13  ;;  %v4038_v36 = vld [vmem:[%s7276_s0 + $0xc] ss:$16 sps:$4 sm:$0xff]   ;;  %551 = vmatprep.mubr.bf16.mxu0 %v4035_v33  ;;  %v4039_v37 = vld [vmem:[%s7276_s0 + $0x24] ss:$16 sps:$4 sm:$0xff]   ;;  %v4043_v39 = vld [vmem:[%s7276_s0 + $0x20] ss:$16 sps:$4 sm:$0xff]  }
   0xf   :  { %640 = vmatprep.mubr.bf16.mxu1 %v4038_v36  ;;  %v4041_v38 = vld [vmem:[%s7276_s0 + $0x2c] ss:$16 sps:$4 sm:$0xff]   ;;  %v4044_v40 = vld [vmem:[%s7276_s0 + $0x28] ss:$16 sps:$4 sm:$0xff]   ;;  %v4045_v41 = vld [vmem:[%s7276_s0 + $0x44] ss:$16 sps:$4 sm:$0xff]  }
  0x10   :  { %3830 = vmatpush3.bf16.msra.mxu0 %v4015_v14  ;;  %v4047_v42 = vld [vmem:[%s7276_s0 + $0x4c] ss:$16 sps:$4 sm:$0xff]   ;;  %v4049_v43 = vld [vmem:[%s7276_s0 + $0x40] ss:$16 sps:$4 sm:$0xff]   ;;  %v4050_v44 = vld [vmem:[%s7276_s0 + $0x48] ss:$16 sps:$4 sm:$0xff]  }
  0x11   :  { %3888 = vmatpush3.bf16.msra.mxu1 %v4016_v15  ;;  %3831 = vmatprep.subr.bf16.mxu0 %v4017_v16  ;;  %v4051_v45 = vld [vmem:[%s7276_s0 + $0x64] ss:$16 sps:$4 sm:$0xff]   ;;  %v4053_v46 = vld [vmem:[%s7276_s0 + $0x6c] ss:$16 sps:$4 sm:$0xff]   ;;  %v4055_v49 = vld [vmem:[%s7276_s0 + $0x60] ss:$16 sps:$4 sm:$0xff]  }
  0x12   :  { %3889 = vmatprep.subr.bf16.mxu1 %v4018_v17  ;;  %v4056_v50 = vld [vmem:[%s7276_s0 + $0x68] ss:$16 sps:$4 sm:$0xff]   ;;  %v4057_v51 = vld [vmem:[%s7276_s0 + $0x84] ss:$16 sps:$4 sm:$0xff]   ;;  %v4059_v52 = vld [vmem:[%s7276_s0 + $0x8c] ss:$16 sps:$4 sm:$0xff]  }
  0x13   :  { %v4061_v53 = vld [vmem:[%s7276_s0 + $0x80] ss:$16 sps:$4 sm:$0xff]   ;;  %v4062_v54 = vld [vmem:[%s7276_s0 + $0x88] ss:$16 sps:$4 sm:$0xff]   ;;  %v4063_v55 = vld [vmem:[%s7276_s0 + $0xa4] ss:$16 sps:$4 sm:$0xff]  }
  0x14   :  { %3832 = vmatpush3.bf16.msra.mxu0 %v4019_v18  ;;  %v4065_v56 = vld [vmem:[%s7276_s0 + $0xac] ss:$16 sps:$4 sm:$0xff]   ;;  %v4067_v57 = vld [vmem:[%s7276_s0 + $0xa0] ss:$16 sps:$4 sm:$0xff]   ;;  %v4068_v58 = vld [vmem:[%s7276_s0 + $0xa8] ss:$16 sps:$4 sm:$0xff]  }
  0x15   :  { %3890 = vmatpush3.bf16.msra.mxu1 %v4020_v19  ;;  %3833 = vmatprep.subr.bf16.mxu0 %v4021_v20  ;;  %v4069_v59 = vld [vmem:[%s7276_s0 + $0xc4] ss:$16 sps:$4 sm:$0xff]   ;;  %v4071_v60 = vld [vmem:[%s7276_s0 + $0xcc] ss:$16 sps:$4 sm:$0xff]   ;;  %v4073_v61 = vld [vmem:[%s7276_s0 + $0xc0] ss:$16 sps:$4 sm:$0xff]  }
  0x16   :  { %3891 = vmatprep.subr.bf16.mxu1 %v4022_v21  ;;  %v4074_v62 = vld [vmem:[%s7276_s0 + $0xc8] ss:$16 sps:$4 sm:$0xff]   ;;  %v4077_v63 = vld [vmem:[%s7277_s3 + $0x10] sm:$0xff]   ;;  %v4085_v6 = vld [vmem:[%s7278_s4 + $0x4] ss:$8 sps:$4 sm:$0xff]   ;;  %v4739_v12 = vshrl.u32 %v61_v11, 7 }
  0x17   :  { %v4078_v0 = vld [vmem:[%s7277_s3 + $0x18] sm:$0xff]   ;;  %v4081_v3 = vld [vmem:[%s7277_s3 + $0x30] sm:$0xff]   ;;  %v4083_v5 = vld [vmem:[%s7278_s4] ss:$8 sps:$4 sm:$0xff]  }
  0x18   :  { %3834 = vmatpush3.bf16.msra.mxu0 %v4023_v22  ;;  %v4082_v4 = vld [vmem:[%s7277_s3 + $0x38] sm:$0xff]   ;;  %v4091_v9 = vld [vmem:[%s7278_s4 + $0x24] ss:$8 sps:$4 sm:$0xff]   ;;  %v4089_v10 = vld [vmem:[%s7278_s4 + $0x20] ss:$8 sps:$4 sm:$0xff]   ;;  %v4742_v13 = vsub.s32 0, %v4739_v12 }
  0x19   :  { %3892 = vmatpush3.bf16.msra.mxu1 %v4024_v23  ;;  %3835 = vmatprep.subr.bf16.mxu0 %v4025_v24  ;;  %v4088_v7 = vld [vmem:[%s7278_s4 + $0x14] ss:$8 sps:$4 sm:$0xff]   ;;  %v4086_v8 = vld [vmem:[%s7278_s4 + $0x10] ss:$8 sps:$4 sm:$0xff]   ;;  %v4747_v14 = vld [vmem:[%s7279_s6] sm:$0xff] }
  0x1a   :  { %3893 = vmatprep.subr.bf16.mxu1 %v4026_v25  ;;  %v4751_v16 = vrot.slane %v4747_v14, %v4742_v13 }
  0x1c   :  { %3836 = vmatpush3.bf16.msra.mxu0 %v4027_v26 }
  0x1d   :  { %3894 = vmatpush3.bf16.msra.mxu1 %v4028_v27  ;;  %3837 = vmatprep.subr.bf16.mxu0 %v4029_v28 }
  0x1e   :  { %3895 = vmatprep.subr.bf16.mxu1 %v4030_v29 }
  0x20   :  { %3838 = vmatpush3.bf16.msra.mxu0 %v4031_v30 }
  0x21   :  { %3896 = vmatpush3.bf16.msra.mxu1 %v4032_v31  ;;  %3954 = vmatprep.subr.bf16.mxu0 %v4448_v34 }
  0x22   :  { %1384 = vmatprep.subr.bf16.mxu1 %v4085_v6 }
  0x23   :  { %552 = vmatmul.mubr.bf16.vlgmr.msra.gmra.mrb[0].mxu0 %v4033_v32 }
  0x24   :  { %641 = vmatmul.mubr.bf16.vlgmr.msra.gmra.mrb[0].mxu1 %v4036_v35  ;;  %559 = vmatprep.mubr.bf16.mxu0 %v4039_v37 }
  0x25   :  { %648 = vmatprep.mubr.bf16.mxu1 %v4041_v38  ;;  %3955 = vmatpush3.bf16.msra.mxu0 %v4075_v47 }
  0x26   :  { %3956 = vmatprep.subr.bf16.mxu0 %v4448_v34  ;;  %1385 = vmatpush1.bf16.msra.mxu1 %v4083_v5 }
  0x27   :  { %1386 = vmatprep.subr.bf16.mxu1 %v4088_v7 }
  0x29   :  { %3957 = vmatpush3.bf16.msra.mxu0 %v4076_v48 }
  0x2a   :  { %3958 = vmatprep.subr.bf16.mxu0 %v4448_v34  ;;  %1387 = vmatpush1.bf16.msra.mxu1 %v4086_v8 }
  0x2b   :  { %560 = vmatmul.mubr.bf16.gmra.mrb[4].mxu0 %v4043_v39  ;;  %1388 = vmatprep.subr.bf16.mxu1 %v4091_v9 }
  0x2c   :  { %649 = vmatmul.mubr.bf16.gmra.mrb[4].mxu1 %v4044_v40  ;;  %567 = vmatprep.mubr.bf16.mxu0 %v4045_v41 }
  0x2d   :  { %656 = vmatprep.mubr.bf16.mxu1 %v4047_v42  ;;  %3959 = vmatpush3.bf16.msra.mxu0 %v4077_v63 }
  0x2e   :  { %3960 = vmatprep.subr.bf16.mxu0 %v4448_v34  ;;  %1389 = vmatpush1.bf16.msra.mxu1 %v4089_v10 }
  0x31   :  { %3961 = vmatpush3.bf16.msra.mxu0 %v4078_v0 }
  0x32   :  { %3962 = vmatprep.subr.bf16.mxu0 %v4448_v34 }
  0x33   :  { %568 = vmatmul.mubr.bf16.gmra.mrb[8].mxu0 %v4049_v43 }
  0x34   :  { %657 = vmatmul.mubr.bf16.gmra.mrb[8].mxu1 %v4050_v44  ;;  %575 = vmatprep.mubr.bf16.mxu0 %v4051_v45 }
  0x35   :  { %664 = vmatprep.mubr.bf16.mxu1 %v4053_v46  ;;  %3963 = vmatpush3.bf16.msra.mxu0 %v4079_v1 }
  0x36   :  { %3964 = vmatprep.subr.bf16.mxu0 %v4448_v34 }
  0x39   :  { %3965 = vmatpush3.bf16.msra.mxu0 %v4080_v2 }
  0x3a   :  { %3966 = vmatprep.subr.bf16.mxu0 %v4448_v34 }
  0x3b   :  { %576 = vmatmul.mubr.bf16.gmra.mrb[12].mxu0 %v4055_v49 }
  0x3c   :  { %665 = vmatmul.mubr.bf16.gmra.mrb[12].mxu1 %v4056_v50  ;;  %583 = vmatprep.mubr.bf16.mxu0 %v4057_v51 }
  0x3d   :  { %672 = vmatprep.mubr.bf16.mxu1 %v4059_v52  ;;  %3967 = vmatpush3.bf16.msra.mxu0 %v4081_v3 }
  0x3e   :  { %3968 = vmatprep.subr.bf16.mxu0 %v4448_v34 }
  0x41   :  { %3969 = vmatpush3.bf16.msra.mxu0 %v4082_v4 }
  0x43   :  { %584 = vmatmul.mubr.bf16.gmra.mrb[16].mxu0 %v4061_v53 }
  0x44   :  { %673 = vmatmul.mubr.bf16.gmra.mrb[16].mxu1 %v4062_v54  ;;  %591 = vmatprep.mubr.bf16.mxu0 %v4063_v55 }
  0x45   :  { %680 = vmatprep.mubr.bf16.mxu1 %v4065_v56 }
  0x4b   :  { %592 = vmatmul.mubr.bf16.gmra.mrb[20].mxu0 %v4067_v57 }
  0x4c   :  { %681 = vmatmul.mubr.bf16.gmra.mrb[20].mxu1 %v4068_v58  ;;  %599 = vmatprep.mubr.bf16.mxu0 %v4069_v59 }
  0x4d   :  { %688 = vmatprep.mubr.bf16.mxu1 %v4071_v60 }
  0x53   :  { %600 = vmatmul.mubr.bf16.gmra.mrb[24].mxu0 %v4073_v61 }
  0x54   :  { %689 = vmatmul.mubr.bf16.gmra.mrb[24].mxu1 %v4074_v62  ;;  %3970 = vmatprep.mubr.msk.bf16.mxu0 %vm4449_vm0, %v4448_v34 }
  0xf6   :  { %v3839_v15 = vpop.f32.mrb[0].mxu0 }
  0xf7   :  { %v3897_v17 = vpop.f32.mrb[0].mxu1  ;;  %v3840_v18 = vpop.f32.mrb[1].mxu0 }
  0xf8   :  { %v3841_v19 = vadd.f32 %v3840_v18, %v3839_v15  ;;  %v3898_v20 = vpop.f32.mrb[1].mxu1  ;;  %v3842_v21 = vpop.f32.mrb[2].mxu0 }
  0xf9   :  { %v3899_v22 = vadd.f32 %v3898_v20, %v3897_v17  ;;  %v3900_v23 = vpop.f32.mrb[2].mxu1  ;;  %v3843_v24 = vpop.f32.mrb[3].mxu0 }
  0xfa   :  { %v554_v25 = vadd.f32 %v3841_v19, %v4751_v16  ;;  %v3844_v26 = vadd.f32 %v3843_v24, %v3842_v21  ;;  %v3901_v27 = vpop.f32.mrb[3].mxu1 }
  0xfb   :  { %v3902_v28 = vadd.f32 %v3901_v27, %v3900_v23 }
  0xfc   :  { %v4754_v29 = vadd.f32 %v3899_v22, %v554_v25  ;;  %v557_v30 = vadd.f32 %v3844_v26, %v4751_v16 }
  0xfe   :  { %v711_v31 = vand.u32 2147483647, %v4754_v29  ;;  %v4758_v32 = vadd.f32 %v3902_v28, %v557_v30  ;;  %v3845_v33 = vpop.f32.mrb[4].mxu0 }
  0xff   :  { %v3903_v35 = vpop.f32.mrb[4].mxu1  ;;  %v3846_v36 = vpop.f32.mrb[5].mxu0 }
 0x100   :  { %v725_v37 = vsub.f32 0.0, %v711_v31  ;;  %v712_v38 = vand.u32 2147483647, %v4758_v32  ;;  %v3847_v39 = vadd.f32 %v3846_v36, %v3845_v33  ;;  %v3904_v40 = vpop.f32.mrb[5].mxu1  ;;  %v3848_v41 = vpop.f32.mrb[6].mxu0 }
 0x101   :  { %v3905_v42 = vadd.f32 %v3904_v40, %v3903_v35  ;;  %v3906_v43 = vpop.f32.mrb[6].mxu1  ;;  %v3849_v44 = vpop.f32.mrb[7].mxu0 }
 0x102   :  { %v739_v45 = vmul.f32 1.442695, %v725_v37  ;;  %v726_v46 = vsub.f32 0.0, %v712_v38  ;;  %v562_v47 = vadd.f32 %v3847_v39, %v4751_v16  ;;  %v3850_v48 = vadd.f32 %v3849_v44, %v3848_v41  ;;  %v3907_v49 = vpop.f32.mrb[7].mxu1 }
 0x103   :  { %v3908_v50 = vadd.f32 %v3907_v49, %v3906_v43 }
 0x104   :  { %4155 = vpow2.f32 %v739_v45  ;;  %v741_v51 = vmul.f32 1.442695, %v726_v46  ;;  %v4762_v52 = vadd.f32 %v3905_v42, %v562_v47  ;;  %v565_v53 = vadd.f32 %v3850_v48, %v4751_v16 }
 0x105   :  { %v697_v47 = vmax.f32 %v4754_v29, 0.0 }
 0x106   :  { %4157 = vpow2.f32 %v741_v51  ;;  %v713_v54 = vand.u32 2147483647, %v4762_v52  ;;  %v4766_v55 = vadd.f32 %v3908_v50, %v565_v53  ;;  %v3851_v56 = vpop.f32.mrb[8].mxu0 }
 0x107   :  { %v3909_v57 = vpop.f32.mrb[8].mxu1  ;;  %v3852_v58 = vpop.f32.mrb[9].mxu0 }
 0x108   :  { %v727_v59 = vsub.f32 0.0, %v713_v54  ;;  %v714_v60 = vand.u32 2147483647, %v4766_v55  ;;  %v3853_v61 = vadd.f32 %v3852_v58, %v3851_v56  ;;  %v3910_v62 = vpop.f32.mrb[9].mxu1  ;;  %v3854_v63 = vpop.f32.mrb[10].mxu0 }
 0x109   :  { %v3911_v0 = vadd.f32 %v3910_v62, %v3909_v57  ;;  %v3912_v1 = vpop.f32.mrb[10].mxu1  ;;  %v3855_v2 = vpop.f32.mrb[11].mxu0 }
 0x10a   :  { %v743_v3 = vmul.f32 1.442695, %v727_v59  ;;  %v728_v4 = vsub.f32 0.0, %v714_v60  ;;  %v570_v5 = vadd.f32 %v3853_v61, %v4751_v16  ;;  %v3856_v6 = vadd.f32 %v3855_v2, %v3854_v63  ;;  %v3913_v7 = vpop.f32.mrb[11].mxu1 }
 0x10b   :  { %v3914_v8 = vadd.f32 %v3913_v7, %v3912_v1 }
 0x10c   :  { %4159 = vpow2.f32 %v743_v3  ;;  %v745_v9 = vmul.f32 1.442695, %v728_v4  ;;  %v4770_v10 = vadd.f32 %v3911_v0, %v570_v5  ;;  %v573_v15 = vadd.f32 %v3856_v6, %v4751_v16 }
 0x10d   :  { %v698_v6 = vmax.f32 %v4758_v32, 0.0 }
 0x10e   :  { %v4156_v17 = vpop.eup %4155  ;;  %v715_v18 = vand.u32 2147483647, %v4770_v10  ;;  %v4774_v19 = vadd.f32 %v3914_v8, %v573_v15  ;;  %v3857_v20 = vpop.f32.mrb[12].mxu0  ;;  %4161 = vpow2.f32 %v745_v9 }
 0x10f   :  { %v767_v21 = vadd.f32 1.0, %v4156_v17  ;;  %v3915_v22 = vpop.f32.mrb[12].mxu1  ;;  %v3858_v23 = vpop.f32.mrb[13].mxu0  ;;  %v770_v36 = vmul.f32 -0.5, %v4156_v17  ;;  %v773_v48 = vand.u32 2147483647, %v4156_v17 }
 0x110   :  { %v4158_v24 = vpop.eup %4157  ;;  %v729_v25 = vsub.f32 0.0, %v715_v18  ;;  %v716_v26 = vand.u32 2147483647, %v4774_v19  ;;  %v3859_v27 = vadd.f32 %v3858_v23, %v3857_v20  ;;  %v3916_v28 = vpop.f32.mrb[13].mxu1 }
 0x111   :  { %v3860_v30 = vpop.f32.mrb[14].mxu0  ;;  %4163 = vlog2.f32 %v767_v21  ;;  %v776_v31 = vadd.f32 1.0, %v4158_v24  ;;  %v3918_v33 = vpop.f32.mrb[14].mxu1  ;;  %v3917_v38 = vadd.f32 %v3916_v28, %v3915_v22  ;;  %v779_v40 = vmul.f32 -0.5, %v4158_v24 }
 0x112   :  { %v3861_v35 = vpop.f32.mrb[15].mxu0  ;;  %v578_v37 = vadd.f32 %v3859_v27, %v4751_v16  ;;  %v3919_v39 = vpop.f32.mrb[15].mxu1  ;;  %v747_v41 = vmul.f32 1.442695, %v729_v25  ;;  %v730_v42 = vsub.f32 0.0, %v716_v26  ;;  %v771_v51 = vadd.f32 1.0, %v770_v36 }
 0x113   :  { %4165 = vlog2.f32 %v776_v31  ;;  %v3862_v44 = vadd.f32 %v3861_v35, %v3860_v30  ;;  %v3920_v45 = vadd.f32 %v3919_v39, %v3918_v33  ;;  %v782_v49 = vand.u32 2147483647, %v4158_v24 }
 0x114   :  { %v4778_v43 = vadd.f32 %v3917_v38, %v578_v37  ;;  %v780_v59 = vadd.f32 1.0, %v779_v40  ;;  %4167 = vpow2.f32 %v747_v41  ;;  %v749_v60 = vmul.f32 1.442695, %v730_v42 }
 0x115   :  { %v581_v54 = vadd.f32 %v3862_v44, %v4751_v16  ;;  %vm4790_vm1 = vcmp.lt.f32.partialorder %v773_v48, 0.0004427343  ;;  %v772_v18 = vmul.f32 %v4156_v17, %v771_v51  ;;  %vm4797_vm2 = vcmp.lt.f32.partialorder %v782_v49, 0.0004427343 }
 0x116   :  { %v4780_v46 = vpop.eup %4159  ;;  %v3863_v50 = vpop.f32.mrb[16].mxu0  ;;  %v717_v53 = vand.u32 2147483647, %v4778_v43  ;;  %v781_v28 = vmul.f32 %v4158_v24, %v780_v59 }
 0x117   :  { %v3921_v56 = vpop.f32.mrb[16].mxu1  ;;  %v3864_v57 = vpop.f32.mrb[17].mxu0  ;;  %v785_v58 = vadd.f32 1.0, %v4780_v46  ;;  %v4786_v29 = vadd.f32 %v3920_v45, %v581_v54  ;;  %v788_v40 = vmul.f32 -0.5, %v4780_v46  ;;  %v791_v24 = vand.u32 2147483647, %v4780_v46 }
 0x118   :  { %v3865_v61 = vadd.f32 %v3864_v57, %v3863_v50  ;;  %v3922_v62 = vpop.f32.mrb[17].mxu1  ;;  %v3866_v63 = vpop.f32.mrb[18].mxu0  ;;  %v731_v0 = vsub.f32 0.0, %v717_v53 }
 0x119   :  { %v3923_v1 = vadd.f32 %v3922_v62, %v3921_v56  ;;  %v3924_v2 = vpop.f32.mrb[18].mxu1  ;;  %v3867_v3 = vpop.f32.mrb[19].mxu0  ;;  %4169 = vlog2.f32 %v785_v58  ;;  %v718_v21 = vand.u32 2147483647, %v4786_v29  ;;  %v789_v5 = vadd.f32 1.0, %v788_v40 }
 0x11a   :  { %v4788_v4 = vpop.eup %4161  ;;  %v586_v7 = vadd.f32 %v3865_v61, %v4751_v16  ;;  %v3868_v8 = vadd.f32 %v3867_v3, %v3866_v63  ;;  %v3925_v9 = vpop.f32.mrb[19].mxu1  ;;  %v751_v20 = vmul.f32 1.442695, %v731_v0  ;;  %4171 = vpow2.f32 %v749_v60 }
 0x11b   :  { %v4164_v15 = vpop.eup %4163  ;;  %v3926_v22 = vadd.f32 %v3925_v9, %v3924_v2  ;;  %v732_v30 = vsub.f32 0.0, %v718_v21  ;;  %v794_v31 = vadd.f32 1.0, %v4788_v4  ;;  %v797_v49 = vmul.f32 -0.5, %v4788_v4 }
 0x11c   :  { %v769_v23 = vmul.f32 0.6931472, %v4164_v15  ;;  %v4801_v26 = vadd.f32 %v3923_v1, %v586_v7  ;;  %v589_v27 = vadd.f32 %v3868_v8, %v4751_v16  ;;  %4173 = vpow2.f32 %v751_v20 }
 0x11d   :  { %v4166_v32 = vpop.eup %4165  ;;  %4175 = vlog2.f32 %v794_v31  ;;  %v753_v53 = vmul.f32 1.442695, %v732_v30  ;;  %v798_v7 = vadd.f32 1.0, %v797_v49  ;;  %vm4831_vm3 = vcmp.lt.f32.partialorder %v791_v24, 0.0004427343 }
 0x11e   :  { %v775_v17 = vsel %vm4790_vm1, %v772_v18, %v769_v23  ;;  %v778_v33 = vmul.f32 0.6931472, %v4166_v32  ;;  %v719_v35 = vand.u32 2147483647, %v4801_v26  ;;  %v3869_v36 = vpop.f32.mrb[20].mxu0  ;;  %v4808_v37 = vadd.f32 %v3926_v22, %v589_v27  ;;  %v4816_v58 = vpop.eup %4167 }
 0x11f   :  { %v3927_v38 = vpop.f32.mrb[20].mxu1  ;;  %v3870_v39 = vpop.f32.mrb[21].mxu0  ;;  %v893_v50 = vadd.f32 %v775_v17, %v697_v47  ;;  %4177 = vpow2.f32 %v753_v53  ;;  %v803_v15 = vadd.f32 1.0, %v4816_v58  ;;  %v790_v27 = vmul.f32 %v4780_v46, %v789_v5 }
 0x120   :  { %v784_v41 = vsel %vm4797_vm2, %v781_v28, %v778_v33  ;;  %v733_v42 = vsub.f32 0.0, %v719_v35  ;;  %v3871_v44 = vadd.f32 %v3870_v39, %v3869_v36  ;;  %v3928_v45 = vpop.f32.mrb[21].mxu1  ;;  %v3872_v48 = vpop.f32.mrb[22].mxu0  ;;  %v720_v54 = vand.u32 2147483647, %v4808_v37 }
 0x121   :  { %v894_v51 = vadd.f32 %v784_v41, %v698_v6  ;;  %v3930_v56 = vpop.f32.mrb[22].mxu1  ;;  %v3873_v57 = vpop.f32.mrb[23].mxu0  ;;  %v3929_v61 = vadd.f32 %v3928_v45, %v3927_v38  ;;  %v800_v28 = vand.u32 2147483647, %v4788_v4  ;;  %v799_v24 = vmul.f32 %v4788_v4, %v798_v7 }
 0x122   :  { %v755_v59 = vmul.f32 1.442695, %v733_v42  ;;  %v594_v60 = vadd.f32 %v3871_v44, %v4751_v16  ;;  %v3874_v62 = vadd.f32 %v3873_v57, %v3872_v48  ;;  %v3931_v63 = vpop.f32.mrb[23].mxu1  ;;  %v734_v2 = vsub.f32 0.0, %v720_v54 }
 0x123   :  { %v4170_v0 = vpop.eup %4169  ;;  %v907_v1 = vpack.c.bf16 %v894_v51, %v893_v50  ;;  %v3932_v3 = vadd.f32 %v3931_v63, %v3930_v56  ;;  %vm4843_vm4 = vcmp.lt.f32.partialorder %v800_v28, 0.0004427343 }
 0x124   :  { %v4819_v47 = vadd.f32 %v3929_v61, %v594_v60  ;;  %v597_v6 = vadd.f32 %v3874_v62, %v4751_v16  ;;  %v757_v8 = vmul.f32 1.442695, %v734_v2  ;;  %v787_v9 = vmul.f32 0.6931472, %v4170_v0  ;;  %v4828_v22 = vpop.eup %4171 }
 0x125   :  { %3971 = vmatmul.mubr.bf16.vlgmr.msra.gmra.mrb[28].mxu0 %v907_v1  ;;  %4179 = vpow2.f32 %v755_v59  ;;  %v812_v54 = vadd.f32 1.0, %v4828_v22  ;;  %v699_v59 = vmax.f32 %v4762_v52, 0.0  ;;  %v700_v60 = vmax.f32 %v4766_v55, 0.0 }
 0x126   :  { %v721_v18 = vand.u32 2147483647, %v4819_v47  ;;  %v4824_v20 = vadd.f32 %v3932_v3, %v597_v6  ;;  %v3875_v21 = vpop.f32.mrb[24].mxu0  ;;  %3974 = vmatprep.mubr.msk.bf16.mxu0 %vm4449_vm0, %v4448_v34  ;;  %v4836_v30 = vpop.eup %4173  ;;  %4181 = vpow2.f32 %v757_v8  ;;  %v793_v46 = vsel %vm4831_vm3, %v790_v27, %v787_v9 }
 0x127   :  { %v3933_v23 = vpop.f32.mrb[24].mxu1  ;;  %v3876_v25 = vpop.f32.mrb[25].mxu0  ;;  %4183 = vlog2.f32 %v803_v15  ;;  %v806_v0 = vmul.f32 -0.5, %v4816_v58  ;;  %v895_v2 = vadd.f32 %v793_v46, %v699_v59  ;;  %v821_v52 = vadd.f32 1.0, %v4836_v30 }
 0x128   :  { %v735_v31 = vsub.f32 0.0, %v721_v18  ;;  %v722_v17 = vand.u32 2147483647, %v4824_v20  ;;  %v3877_v33 = vadd.f32 %v3876_v25, %v3875_v21  ;;  %v3934_v35 = vpop.f32.mrb[25].mxu1  ;;  %v3878_v36 = vpop.f32.mrb[26].mxu0  ;;  %v701_v25 = vmax.f32 %v4770_v10, 0.0 }
 0x129   :  { %v4176_v38 = vpop.eup %4175  ;;  %v3935_v39 = vadd.f32 %v3934_v35, %v3933_v23  ;;  %v3936_v40 = vpop.f32.mrb[26].mxu1  ;;  %v807_v18 = vadd.f32 1.0, %v806_v0  ;;  %v809_v27 = vand.u32 2147483647, %v4816_v58  ;;  %v703_v35 = vmax.f32 %v4778_v43, 0.0 }
 0x12a   :  { %v3879_v41 = vpop.f32.mrb[27].mxu0  ;;  %v759_v42 = vmul.f32 1.442695, %v735_v31  ;;  %v736_v44 = vsub.f32 0.0, %v722_v17  ;;  %v602_v45 = vadd.f32 %v3877_v33, %v4751_v16  ;;  %v3937_v49 = vpop.f32.mrb[27].mxu1  ;;  %v702_v31 = vmax.f32 %v4774_v19, 0.0 }
 0x12b   :  { %v3880_v48 = vadd.f32 %v3879_v41, %v3878_v36  ;;  %v3938_v50 = vadd.f32 %v3937_v49, %v3936_v40  ;;  %v796_v51 = vmul.f32 0.6931472, %v4176_v38  ;;  %v4859_v1 = vpop.eup %4177  ;;  %v818_v36 = vand.u32 2147483647, %v4828_v22 }
 0x12c   :  { %4185 = vpow2.f32 %v759_v42  ;;  %v761_v56 = vmul.f32 1.442695, %v736_v44  ;;  %v4848_v57 = vadd.f32 %v3935_v39, %v602_v45  ;;  %v830_v21 = vadd.f32 1.0, %v4859_v1 }
 0x12d   :  { %v605_v4 = vadd.f32 %v3880_v48, %v4751_v16  ;;  %v802_v61 = vsel %vm4843_vm4, %v799_v24, %v796_v51  ;;  %4187 = vlog2.f32 %v812_v54  ;;  %v815_v16 = vmul.f32 -0.5, %v4828_v22 }
 0x12e   :  { %4189 = vpow2.f32 %v761_v56  ;;  %v723_v62 = vand.u32 2147483647, %v4848_v57  ;;  %v896_v3 = vadd.f32 %v802_v61, %v700_v60  ;;  %v824_v10 = vmul.f32 -0.5, %v4836_v30 }
 0x12f   :  { %v4856_v63 = vadd.f32 %v3938_v50, %v605_v4  ;;  %v4863_v55 = vpop.eup %4179  ;;  %4191 = vlog2.f32 %v821_v52  ;;  %v816_v32 = vadd.f32 1.0, %v815_v16  ;;  %v704_v39 = vmax.f32 %v4786_v29, 0.0 }
 0x130   :  { %v737_v5 = vsub.f32 0.0, %v723_v62  ;;  %v908_v7 = vpack.c.bf16 %v896_v3, %v895_v2  ;;  %v4866_v8 = vpop.eup %4181  ;;  %v839_v28 = vadd.f32 1.0, %v4863_v55  ;;  %v808_v19 = vmul.f32 %v4816_v58, %v807_v18 }
 0x131   :  { %v724_v6 = vand.u32 2147483647, %v4856_v63  ;;  %v4184_v23 = vpop.eup %4183  ;;  %v848_v40 = vadd.f32 1.0, %v4866_v8  ;;  %vm4883_vm5 = vcmp.lt.f32.partialorder %v809_v27, 0.0004427343  ;;  %v817_v24 = vmul.f32 %v4828_v22, %v816_v32 }
 0x132   :  { %v763_v9 = vmul.f32 1.442695, %v737_v5  ;;  %3975 = vmatmul.mubr.bf16.gmra.mrb[32].mxu0 %v908_v7  ;;  %v805_v33 = vmul.f32 0.6931472, %v4184_v23  ;;  %v833_v42 = vmul.f32 -0.5, %v4859_v1  ;;  %v842_v58 = vmul.f32 -0.5, %v4863_v55 }
 0x133   :  { %v738_v15 = vsub.f32 0.0, %v724_v6  ;;  %3978 = vmatprep.mubr.msk.bf16.mxu0 %vm4449_vm0, %v4448_v34  ;;  %vm819_vm6 = vcmp.lt.f32.partialorder %v818_v36, 0.0004427343  ;;  %v825_v48 = vadd.f32 1.0, %v824_v10  ;;  %v827_v49 = vand.u32 2147483647, %v4836_v30 }
 0x134   :  { %4193 = vpow2.f32 %v763_v9  ;;  %v811_v29 = vsel %vm4883_vm5, %v808_v19, %v805_v33  ;;  %v836_v22 = vand.u32 2147483647, %v4859_v1  ;;  %v851_v53 = vmul.f32 -0.5, %v4866_v8  ;;  %v4103_v32 = vld [vmem:[%s7278_s4 + $0x64] ss:$8 sps:$4 sm:$0xff]  }
 0x135   :  { %v765_v17 = vmul.f32 1.442695, %v738_v15  ;;  %4195 = vlog2.f32 %v830_v21  ;;  %v897_v4 = vadd.f32 %v811_v29, %v701_v25  ;;  %v834_v60 = vadd.f32 1.0, %v833_v42 }
 0x136   :  { %v4878_v38 = vpop.eup %4185  ;;  %v843_v62 = vadd.f32 1.0, %v842_v58  ;;  %v845_v0 = vand.u32 2147483647, %v4863_v55  ;;  %v705_v2 = vmax.f32 %v4801_v26, 0.0  ;;  %v826_v16 = vmul.f32 %v4836_v30, %v825_v48 }
 0x137   :  { %4197 = vpow2.f32 %v765_v17  ;;  %v4188_v41 = vpop.eup %4187  ;;  %v857_v50 = vadd.f32 1.0, %v4878_v38  ;;  %v860_v52 = vmul.f32 -0.5, %v4878_v38  ;;  %v706_v6 = vmax.f32 %v4808_v37, 0.0 }
 0x138   :  { %4199 = vlog2.f32 %v839_v28  ;;  %v4889_v44 = vpop.eup %4189  ;;  %v814_v45 = vmul.f32 0.6931472, %v4188_v41  ;;  %vm4906_vm7 = vcmp.lt.f32.partialorder %v827_v49, 0.0004427343  ;;  %vm4910_vm8 = vcmp.lt.f32.partialorder %v836_v22, 0.0004427343 }
 0x139   :  { %4201 = vlog2.f32 %v848_v40  ;;  %v866_v54 = vadd.f32 1.0, %v4889_v44  ;;  %v4192_v56 = vpop.eup %4191  ;;  %v852_v15 = vadd.f32 1.0, %v851_v53  ;;  %v835_v30 = vmul.f32 %v4859_v1, %v834_v60 }
 0x13a   :  { %v820_v51 = vsel %vm819_vm6, %v817_v24, %v814_v45  ;;  %4203 = vlog2.f32 %v857_v50  ;;  %v823_v61 = vmul.f32 0.6931472, %v4192_v56  ;;  %v869_v21 = vmul.f32 -0.5, %v4889_v44 }
 0x13b   :  { %v898_v59 = vadd.f32 %v820_v51, %v702_v31  ;;  %4205 = vlog2.f32 %v866_v54  ;;  %v844_v27 = vmul.f32 %v4863_v55, %v843_v62  ;;  %vm4922_vm9 = vcmp.lt.f32.partialorder %v845_v0, 0.0004427343 }
 0x13c   :  { %v829_v26 = vsel %vm4906_vm7, %v826_v16, %v823_v61  ;;  %v854_v28 = vand.u32 2147483647, %v4866_v8  ;;  %v861_v17 = vadd.f32 1.0, %v860_v52  ;;  %v863_v1 = vand.u32 2147483647, %v4878_v38 }
 0x13d   :  { %v909_v3 = vpack.c.bf16 %v898_v59, %v897_v4  ;;  %v899_v19 = vadd.f32 %v829_v26, %v703_v35  ;;  %v853_v40 = vmul.f32 %v4866_v8, %v852_v15  ;;  %v870_v24 = vadd.f32 1.0, %v869_v21 }
 0x13e   :  { %v4903_v5 = vpop.eup %4193  ;;  %vm855_vm10 = vcmp.lt.f32.partialorder %v854_v28, 0.0004427343  ;;  %v872_v29 = vand.u32 2147483647, %v4889_v44  ;;  %v707_v48 = vmax.f32 %v4819_v47, 0.0  ;;  %v862_v49 = vmul.f32 %v4878_v38, %v861_v17 }
 0x13f   :  { %v4196_v18 = vpop.eup %4195  ;;  %3979 = vmatmul.mubr.bf16.gmra.mrb[36].mxu0 %v909_v3  ;;  %v875_v37 = vadd.f32 1.0, %v4903_v5  ;;  %v878_v45 = vmul.f32 -0.5, %v4903_v5  ;;  %v708_v53 = vmax.f32 %v4824_v20, 0.0  ;;  %vm864_vm11 = vcmp.lt.f32.partialorder %v863_v1, 0.0004427343 }
 0x140   :  { %3982 = vmatprep.mubr.msk.bf16.mxu0 %vm4449_vm0, %v4448_v34  ;;  %v832_v25 = vmul.f32 0.6931472, %v4196_v18  ;;  %v871_v56 = vmul.f32 %v4889_v44, %v870_v24  ;;  %vm873_vm12 = vcmp.lt.f32.partialorder %v872_v29, 0.0004427343  ;;  %v881_v60 = vand.u32 2147483647, %v4903_v5 }
 0x141   :  { %v4198_v23 = vpop.eup %4197  ;;  %4207 = vlog2.f32 %v875_v37  ;;  %v879_v59 = vadd.f32 1.0, %v878_v45  ;;  %v709_v15 = vmax.f32 %v4848_v57, 0.0  ;;  %v710_v18 = vmax.f32 %v4856_v63, 0.0  ;;  %v4094_v57 = vld [vmem:[%s7278_s4 + $0x34] ss:$8 sps:$4 sm:$0xff]  }
 0x142   :  { %v4200_v31 = vpop.eup %4199  ;;  %v884_v33 = vadd.f32 1.0, %v4198_v23  ;;  %v838_v10 = vsel %vm4910_vm8, %v835_v30, %v832_v25  ;;  %v887_v22 = vmul.f32 -0.5, %v4198_v23  ;;  %v890_v20 = vand.u32 2147483647, %v4198_v23  ;;  %v4092_v63 = vld [vmem:[%s7278_s4 + $0x30] ss:$8 sps:$4 sm:$0xff]   ;;  %1390 = vmatprep.subr.bf16.mxu1 %v4094_v57 }
 0x143   :  { %v4202_v36 = vpop.eup %4201  ;;  %v841_v55 = vmul.f32 0.6931472, %v4200_v31  ;;  %v900_v41 = vadd.f32 %v838_v10, %v704_v39  ;;  %v880_v52 = vmul.f32 %v4903_v5, %v879_v59  ;;  %vm882_vm13 = vcmp.lt.f32.partialorder %v881_v60, 0.0004427343  ;;  %1391 = vmatpush1.bf16.msra.mxu1 %v4092_v63  ;;  %v4097_v5 = vld [vmem:[%s7278_s4 + $0x44] ss:$8 sps:$4 sm:$0xff]  }
 0x144   :  { %v850_v46 = vmul.f32 0.6931472, %v4202_v36  ;;  %4209 = vlog2.f32 %v884_v33  ;;  %v4204_v58 = vpop.eup %4203  ;;  %v888_v0 = vadd.f32 1.0, %v887_v22  ;;  %vm891_vm14 = vcmp.lt.f32.partialorder %v890_v20, 0.0004427343  ;;  %1392 = vmatprep.subr.bf16.mxu1 %v4097_v5 }
 0x145   :  { %v847_v42 = vsel %vm4922_vm9, %v844_v27, %v841_v55  ;;  %v910_v43 = vpack.c.bf16 %v900_v41, %v899_v19  ;;  %v4206_v8 = vpop.eup %4205  ;;  %v859_v51 = vmul.f32 0.6931472, %v4204_v58  ;;  %v4100_v25 = vld [vmem:[%s7278_s4 + $0x54] ss:$8 sps:$4 sm:$0xff]   ;;  %v4098_v27 = vld [vmem:[%s7278_s4 + $0x50] ss:$8 sps:$4 sm:$0xff]  }
 0x146   :  { %v856_v35 = vsel %vm855_vm10, %v853_v40, %v850_v46  ;;  %v901_v39 = vadd.f32 %v847_v42, %v705_v2  ;;  %v868_v54 = vmul.f32 0.6931472, %v4206_v8  ;;  %v889_v9 = vmul.f32 %v4198_v23, %v888_v0  ;;  %v4095_v23 = vld [vmem:[%s7278_s4 + $0x40] ss:$8 sps:$4 sm:$0xff]   ;;  %v4106_v31 = vld [vmem:[%s7278_s4 + $0x74] ss:$8 sps:$4 sm:$0xff]  }
 0x147   :  { %v902_v50 = vadd.f32 %v856_v35, %v706_v6  ;;  %3983 = vmatmul.mubr.bf16.gmra.mrb[40].mxu0 %v910_v43  ;;  %v865_v4 = vsel %vm864_vm11, %v862_v49, %v859_v51  ;;  %1393 = vmatpush1.bf16.msra.mxu1 %v4095_v23  ;;  %v4101_v28 = vld [vmem:[%s7278_s4 + $0x60] ss:$8 sps:$4 sm:$0xff]   ;;  %v4104_v17 = vld [vmem:[%s7278_s4 + $0x70] ss:$8 sps:$4 sm:$0xff]   ;;  %v7286_v1 = vmov 0   ;;  %v4984_v33 = vsub.s32 1, %v4739_v12 }
 0x148   :  { %3986 = vmatprep.mubr.msk.bf16.mxu0 %vm4449_vm0, %v4448_v34  ;;  %v874_v38 = vsel %vm873_vm12, %v871_v56, %v868_v54  ;;  %v903_v61 = vadd.f32 %v865_v4, %v707_v48  ;;  %1394 = vmatprep.subr.bf16.mxu1 %v4100_v25 }
 0x149   :  { %v911_v47 = vpack.c.bf16 %v902_v50, %v901_v39  ;;  %v904_v62 = vadd.f32 %v874_v38, %v708_v53  ;;  %1416 = vmatprep.mubr.bf16.mxu1 %v7286_v1  ;;  %v4988_v36 = vrot.slane %v4747_v14, %v4984_v33 }
 0x14b   :  { %v4208_v2 = vpop.eup %4207  ;;  %v912_v3 = vpack.c.bf16 %v904_v62, %v903_v61  ;;  %1395 = vmatpush1.bf16.msra.mxu1 %v4098_v27 }
 0x14c   :  { %v877_v16 = vmul.f32 0.6931472, %v4208_v2  ;;  %1396 = vmatprep.subr.bf16.mxu1 %v4103_v32 }
 0x14e   :  { %v4210_v44 = vpop.eup %4209  ;;  %v883_v6 = vsel %vm882_vm13, %v880_v52, %v877_v16 }
 0x14f   :  { %v886_v7 = vmul.f32 0.6931472, %v4210_v44  ;;  %3987 = vmatmul.mubr.bf16.gmra.mrb[44].mxu0 %v911_v47  ;;  %v905_v30 = vadd.f32 %v883_v6, %v709_v15  ;;  %1397 = vmatpush1.bf16.msra.mxu1 %v4101_v28 }
 0x150   :  { %3990 = vmatprep.mubr.msk.bf16.mxu0 %vm4449_vm0, %v4448_v34  ;;  %1398 = vmatprep.subr.bf16.mxu1 %v4106_v31 }
 0x151   :  { %v892_v26 = vsel %vm891_vm14, %v889_v9, %v886_v7 }
 0x152   :  { %v906_v21 = vadd.f32 %v892_v26, %v710_v18 }
 0x153   :  { %1399 = vmatpush1.bf16.msra.mxu1 %v4104_v17 }
 0x154   :  { %v913_v37 = vpack.c.bf16 %v906_v21, %v905_v30 }
 0x157   :  { %3991 = vmatmul.mubr.bf16.gmra.mrb[48].mxu0 %v912_v3 }
 0x158   :  { %3994 = vmatprep.mubr.msk.bf16.mxu0 %vm4449_vm0, %v4448_v34 }
 0x15f   :  { %3995 = vmatmul.mubr.bf16.gmra.mrb[52].mxu0 %v913_v37 }
 0x160   :  { %2295 = vmatprep.mubr.bf16.mxu0 %v7286_v1 }
 0x1f8   :  { %v1016_v10 = vpop.f32.mrb[28].mxu0 }
 0x1f9   :  { %v4991_v19 = vadd.f32 %v1016_v10, %v4988_v36  ;;  %v3972_v55 = vpop.f32.mrb[29].mxu0 }
 0x1fa   :  { %v1019_v40 = vpop.f32.mrb[30].mxu0 }
 0x1fb   :  { %v1085_v41 = vand.u32 2147483647, %v4991_v19  ;;  %v4995_v46 = vadd.f32 %v1019_v40, %v4988_v36  ;;  %v3973_v24 = vpop.f32.mrb[31].mxu0  ;;  %v1071_v40 = vmax.f32 %v4991_v19, 0.0 }
 0x1fd   :  { %v1099_v42 = vsub.f32 0.0, %v1085_v41  ;;  %v1086_v29 = vand.u32 2147483647, %v4995_v46  ;;  %v1072_v41 = vmax.f32 %v4995_v46, 0.0 }
 0x1ff   :  { %v1113_v45 = vmul.f32 1.442695, %v1099_v42  ;;  %v1100_v58 = vsub.f32 0.0, %v1086_v29 }
 0x201   :  { %4211 = vpow2.f32 %v1113_v45  ;;  %v1115_v14 = vmul.f32 1.442695, %v1100_v58 }
 0x203   :  { %4213 = vpow2.f32 %v1115_v14 }
 0x205   :  { %v1024_v48 = vpop.f32.mrb[32].mxu0 }
 0x206   :  { %v4999_v43 = vadd.f32 %v1024_v48, %v4988_v36  ;;  %v3976_v35 = vpop.f32.mrb[33].mxu0 }
 0x207   :  { %v1027_v49 = vpop.f32.mrb[34].mxu0 }
 0x208   :  { %v1087_v8 = vand.u32 2147483647, %v4999_v43  ;;  %v5003_v39 = vadd.f32 %v1027_v49, %v4988_v36  ;;  %v3977_v50 = vpop.f32.mrb[35].mxu0 }
 0x20a   :  { %v1101_v22 = vsub.f32 0.0, %v1087_v8  ;;  %v1088_v53 = vand.u32 2147483647, %v5003_v39 }
 0x20b   :  { %v4212_v51 = vpop.eup %4211 }
 0x20c   :  { %v1141_v54 = vadd.f32 1.0, %v4212_v51  ;;  %v1117_v47 = vmul.f32 1.442695, %v1101_v22  ;;  %v1102_v4 = vsub.f32 0.0, %v1088_v53  ;;  %v1144_v60 = vmul.f32 -0.5, %v4212_v51 }
 0x20d   :  { %v4214_v56 = vpop.eup %4213  ;;  %v1147_v6 = vand.u32 2147483647, %v4212_v51 }
 0x20e   :  { %4215 = vlog2.f32 %v1141_v54  ;;  %v1150_v59 = vadd.f32 1.0, %v4214_v56  ;;  %v1119_v38 = vmul.f32 1.442695, %v1102_v4  ;;  %v1153_v61 = vmul.f32 -0.5, %v4214_v56 }
 0x20f   :  { %4217 = vpow2.f32 %v1117_v47  ;;  %v1145_v3 = vadd.f32 1.0, %v1144_v60  ;;  %v1156_v26 = vand.u32 2147483647, %v4214_v56  ;;  %vm5016_vm15 = vcmp.lt.f32.partialorder %v1147_v6, 0.0004427343 }
 0x210   :  { %4219 = vlog2.f32 %v1150_v59  ;;  %v1154_v7 = vadd.f32 1.0, %v1153_v61 }
 0x211   :  { %4221 = vpow2.f32 %v1119_v38  ;;  %v1146_v37 = vmul.f32 %v4212_v51, %v1145_v3  ;;  %vm1157_vm0 = vcmp.lt.f32.partialorder %v1156_v26, 0.0004427343 }
 0x212   :  { %v1032_v62 = vpop.f32.mrb[36].mxu0  ;;  %v1155_v25 = vmul.f32 %v4214_v56, %v1154_v7 }
 0x213   :  { %v5007_v0 = vadd.f32 %v1032_v62, %v4988_v36  ;;  %v3980_v2 = vpop.f32.mrb[37].mxu0 }
 0x214   :  { %v1035_v20 = vpop.f32.mrb[38].mxu0 }
 0x215   :  { %v1089_v16 = vand.u32 2147483647, %v5007_v0  ;;  %v5011_v52 = vadd.f32 %v1035_v20, %v4988_v36  ;;  %v3981_v44 = vpop.f32.mrb[39].mxu0 }
 0x217   :  { %v1103_v9 = vsub.f32 0.0, %v1089_v16  ;;  %v1090_v15 = vand.u32 2147483647, %v5011_v52 }
 0x218   :  { %v4216_v18 = vpop.eup %4215 }
 0x219   :  { %v5014_v30 = vpop.eup %4217  ;;  %v1143_v21 = vmul.f32 0.6931472, %v4216_v18  ;;  %v1121_v57 = vmul.f32 1.442695, %v1103_v9  ;;  %v1104_v63 = vsub.f32 0.0, %v1090_v15 }
 0x21a   :  { %v4220_v5 = vpop.eup %4219  ;;  %v1159_v27 = vadd.f32 1.0, %v5014_v30  ;;  %v1040_v32 = vpop.f32.mrb[40].mxu0  ;;  %v1162_v46 = vmul.f32 -0.5, %v5014_v30  ;;  %v1165_v4 = vand.u32 2147483647, %v5014_v30 }
 0x21b   :  { %v5021_v28 = vpop.eup %4221  ;;  %v1149_v31 = vsel %vm5016_vm15, %v1146_v37, %v1143_v21  ;;  %v1152_v17 = vmul.f32 0.6931472, %v4220_v5  ;;  %4223 = vpow2.f32 %v1121_v57  ;;  %v1123_v10 = vmul.f32 1.442695, %v1104_v63  ;;  %v3984_v55 = vpop.f32.mrb[41].mxu0 }
 0x21c   :  { %4225 = vlog2.f32 %v1159_v27  ;;  %v1043_v24 = vpop.f32.mrb[42].mxu0  ;;  %v1168_v29 = vadd.f32 1.0, %v5021_v28  ;;  %v1267_v58 = vadd.f32 %v1149_v31, %v1071_v40  ;;  %v5029_v48 = vadd.f32 %v1040_v32, %v4988_v36 }
 0x21d   :  { %v1158_v42 = vsel %vm1157_vm0, %v1155_v25, %v1152_v17  ;;  %v3985_v45 = vpop.f32.mrb[43].mxu0  ;;  %4227 = vpow2.f32 %v1123_v10  ;;  %v5032_v35 = vadd.f32 %v1043_v24, %v4988_v36  ;;  %v1171_v50 = vmul.f32 -0.5, %v5021_v28 }
 0x21e   :  { %v1268_v14 = vadd.f32 %v1158_v42, %v1072_v41  ;;  %4229 = vlog2.f32 %v1168_v29  ;;  %v1091_v49 = vand.u32 2147483647, %v5029_v48  ;;  %v1163_v47 = vadd.f32 1.0, %v1162_v46 }
 0x21f   :  { %v1092_v8 = vand.u32 2147483647, %v5032_v35  ;;  %v1172_v16 = vadd.f32 1.0, %v1171_v50  ;;  %v1174_v7 = vand.u32 2147483647, %v5021_v28  ;;  %v1073_v37 = vmax.f32 %v4999_v43, 0.0 }
 0x220   :  { %v1281_v19 = vpack.c.bf16 %v1268_v14, %v1267_v58  ;;  %v1105_v51 = vsub.f32 0.0, %v1091_v49  ;;  %v1164_v18 = vmul.f32 %v5014_v30, %v1163_v47  ;;  %vm5056_vm1 = vcmp.lt.f32.partialorder %v1165_v4, 0.0004427343 }
 0x221   :  { %v1106_v53 = vsub.f32 0.0, %v1092_v8  ;;  %v1074_v63 = vmax.f32 %v5003_v39, 0.0  ;;  %v1173_v30 = vmul.f32 %v5021_v28, %v1172_v16  ;;  %vm1175_vm2 = vcmp.lt.f32.partialorder %v1174_v7, 0.0004427343 }
 0x222   :  { %v1048_v22 = vpop.f32.mrb[44].mxu0  ;;  %1417 = vmatmul.mubr.bf16.vlgmr.msra.gmra.mrb[28].mxu1 %v1281_v19  ;;  %v1125_v59 = vmul.f32 1.442695, %v1105_v51  ;;  %v1076_v57 = vmax.f32 %v5011_v52, 0.0 }
 0x223   :  { %v5039_v54 = vadd.f32 %v1048_v22, %v4988_v36  ;;  %v3988_v56 = vpop.f32.mrb[45].mxu0  ;;  %1426 = vmatprep.mubr.bf16.mxu1 %v7286_v1  ;;  %v1127_v61 = vmul.f32 1.442695, %v1106_v53 }
 0x224   :  { %v1051_v38 = vpop.f32.mrb[46].mxu0  ;;  %4231 = vpow2.f32 %v1125_v59 }
 0x225   :  { %v5043_v60 = vpop.eup %4223  ;;  %v1093_v62 = vand.u32 2147483647, %v5039_v54  ;;  %v5047_v2 = vadd.f32 %v1051_v38, %v4988_v36  ;;  %v3989_v20 = vpop.f32.mrb[47].mxu0  ;;  %4233 = vpow2.f32 %v1127_v61 }
 0x226   :  { %v4226_v3 = vpop.eup %4225  ;;  %v1177_v44 = vadd.f32 1.0, %v5043_v60  ;;  %v1180_v31 = vmul.f32 -0.5, %v5043_v60  ;;  %v1183_v50 = vand.u32 2147483647, %v5043_v60 }
 0x227   :  { %v1161_v6 = vmul.f32 0.6931472, %v4226_v3  ;;  %v1107_v9 = vsub.f32 0.0, %v1093_v62  ;;  %v5051_v15 = vpop.eup %4227  ;;  %v1094_v26 = vand.u32 2147483647, %v5047_v2  ;;  %v1075_v62 = vmax.f32 %v5007_v0, 0.0 }
 0x228   :  { %4235 = vlog2.f32 %v1177_v44  ;;  %v4230_v21 = vpop.eup %4229  ;;  %v1186_v5 = vadd.f32 1.0, %v5051_v15  ;;  %v1189_v55 = vmul.f32 -0.5, %v5051_v15  ;;  %v1181_v46 = vadd.f32 1.0, %v1180_v31 }
 0x229   :  { %v1167_v23 = vsel %vm5056_vm1, %v1164_v18, %v1161_v6  ;;  %v1170_v25 = vmul.f32 0.6931472, %v4230_v21  ;;  %v1129_v27 = vmul.f32 1.442695, %v1107_v9  ;;  %v1108_v43 = vsub.f32 0.0, %v1094_v26 }
 0x22a   :  { %v1056_v32 = vpop.f32.mrb[48].mxu0  ;;  %4237 = vlog2.f32 %v1186_v5  ;;  %v1269_v41 = vadd.f32 %v1167_v23, %v1073_v37  ;;  %v1190_v51 = vadd.f32 1.0, %v1189_v55  ;;  %v1192_v38 = vand.u32 2147483647, %v5051_v15 }
 0x22b   :  { %v3992_v17 = vpop.f32.mrb[49].mxu0  ;;  %v1176_v10 = vsel %vm1175_vm2, %v1173_v30, %v1170_v25  ;;  %4239 = vpow2.f32 %v1129_v27  ;;  %v5068_v39 = vadd.f32 %v1056_v32, %v4988_v36  ;;  %v1131_v42 = vmul.f32 1.442695, %v1108_v43 }
 0x22c   :  { %v1059_v40 = vpop.f32.mrb[50].mxu0  ;;  %v1270_v24 = vadd.f32 %v1176_v10, %v1074_v63  ;;  %v1182_v20 = vmul.f32 %v5043_v60, %v1181_v46  ;;  %vm5086_vm3 = vcmp.lt.f32.partialorder %v1183_v50, 0.0004427343  ;;  %v1191_v7 = vmul.f32 %v5051_v15, %v1190_v51 }
 0x22d   :  { %v5071_v28 = vadd.f32 %v1059_v40, %v4988_v36  ;;  %v3993_v29 = vpop.f32.mrb[51].mxu0  ;;  %v1095_v45 = vand.u32 2147483647, %v5068_v39  ;;  %4241 = vpow2.f32 %v1131_v42  ;;  %vm1193_vm4 = vcmp.lt.f32.partialorder %v1192_v38, 0.0004427343 }
 0x22e   :  { %v1282_v14 = vpack.c.bf16 %v1270_v24, %v1269_v41  ;;  %v5075_v19 = vpop.eup %4231 }
 0x22f   :  { %v1096_v58 = vand.u32 2147483647, %v5071_v28  ;;  %v1109_v49 = vsub.f32 0.0, %v1095_v45  ;;  %v5077_v8 = vpop.eup %4233  ;;  %v1195_v22 = vadd.f32 1.0, %v5075_v19  ;;  %v1198_v21 = vmul.f32 -0.5, %v5075_v19 }
 0x230   :  { %1427 = vmatmul.mubr.bf16.gmra.mrb[32].mxu1 %v1282_v14  ;;  %v1204_v47 = vadd.f32 1.0, %v5077_v8  ;;  %v1207_v15 = vmul.f32 -0.5, %v5077_v8  ;;  %v1201_v52 = vand.u32 2147483647, %v5075_v19  ;;  %v1210_v41 = vand.u32 2147483647, %v5077_v8 }
 0x231   :  { %v1110_v53 = vsub.f32 0.0, %v1096_v58  ;;  %v1133_v4 = vmul.f32 1.442695, %v1109_v49  ;;  %1436 = vmatprep.mubr.bf16.mxu1 %v7286_v1  ;;  %4243 = vlog2.f32 %v1195_v22  ;;  %v1199_v31 = vadd.f32 1.0, %v1198_v21 }
 0x232   :  { %v4236_v56 = vpop.eup %4235  ;;  %v1064_v61 = vpop.f32.mrb[52].mxu0  ;;  %4245 = vlog2.f32 %v1204_v47  ;;  %v1208_v10 = vadd.f32 1.0, %v1207_v15  ;;  %v1078_v49 = vmax.f32 %v5032_v35, 0.0  ;;  %vm1202_vm5 = vcmp.lt.f32.partialorder %v1201_v52, 0.0004427343 }
 0x233   :  { %v1179_v59 = vmul.f32 0.6931472, %v4236_v56  ;;  %v1135_v3 = vmul.f32 1.442695, %v1110_v53  ;;  %v3996_v16 = vpop.f32.mrb[53].mxu0  ;;  %4247 = vpow2.f32 %v1133_v4  ;;  %v5092_v9 = vadd.f32 %v1064_v61, %v4988_v36 }
 0x234   :  { %v4238_v44 = vpop.eup %4237  ;;  %v1067_v18 = vpop.f32.mrb[54].mxu0  ;;  %v1200_v46 = vmul.f32 %v5075_v19, %v1199_v31  ;;  %v1209_v22 = vmul.f32 %v5077_v8, %v1208_v10  ;;  %vm1211_vm6 = vcmp.lt.f32.partialorder %v1210_v41, 0.0004427343  ;;  %v1079_v15 = vmax.f32 %v5039_v54, 0.0 }
 0x235   :  { %v5094_v26 = vpop.eup %4239  ;;  %v1185_v0 = vsel %vm5086_vm3, %v1182_v20, %v1179_v59  ;;  %v1188_v60 = vmul.f32 0.6931472, %v4238_v44  ;;  %4249 = vpow2.f32 %v1135_v3  ;;  %v3997_v37 = vpop.f32.mrb[55].mxu0  ;;  %v1097_v23 = vand.u32 2147483647, %v5092_v9 }
 0x236   :  { %v1213_v63 = vadd.f32 1.0, %v5094_v26  ;;  %v5104_v25 = vadd.f32 %v1067_v18, %v4988_v36  ;;  %v1271_v27 = vadd.f32 %v1185_v0, %v1075_v62  ;;  %v1077_v36 = vmax.f32 %v5029_v48, 0.0 }
 0x237   :  { %v1194_v5 = vsel %vm1193_vm4, %v1191_v7, %v1188_v60  ;;  %v4242_v30 = vpop.eup %4241  ;;  %v1111_v17 = vsub.f32 0.0, %v1097_v23  ;;  %v1216_v29 = vmul.f32 -0.5, %v5094_v26  ;;  %v1219_v35 = vand.u32 2147483647, %v5094_v26 }
 0x238   :  { %v1272_v32 = vadd.f32 %v1194_v5, %v1076_v57  ;;  %4251 = vlog2.f32 %v1213_v63  ;;  %v1222_v43 = vadd.f32 1.0, %v4242_v30  ;;  %v1098_v55 = vand.u32 2147483647, %v5104_v25 }
 0x239   :  { %v1137_v24 = vmul.f32 1.442695, %v1111_v17  ;;  %v1225_v53 = vmul.f32 -0.5, %v4242_v30  ;;  %v1217_v38 = vadd.f32 1.0, %v1216_v29  ;;  %v1228_v44 = vand.u32 2147483647, %v4242_v30 }
 0x23a   :  { %v1283_v40 = vpack.c.bf16 %v1272_v32, %v1271_v27  ;;  %4253 = vlog2.f32 %v1222_v43  ;;  %v1112_v45 = vsub.f32 0.0, %v1098_v55  ;;  %vm1220_vm7 = vcmp.lt.f32.partialorder %v1219_v35, 0.0004427343 }
 0x23b   :  { %v4244_v42 = vpop.eup %4243  ;;  %4255 = vpow2.f32 %v1137_v24  ;;  %v1226_v3 = vadd.f32 1.0, %v1225_v53  ;;  %v1218_v6 = vmul.f32 %v5094_v26, %v1217_v38  ;;  %v1080_v63 = vmax.f32 %v5047_v2, 0.0 }
 0x23c   :  { %1437 = vmatmul.mubr.bf16.gmra.mrb[36].mxu1 %v1283_v40  ;;  %v4246_v58 = vpop.eup %4245  ;;  %v1197_v14 = vmul.f32 0.6931472, %v4244_v42  ;;  %v1139_v4 = vmul.f32 1.442695, %v1112_v45  ;;  %vm1229_vm8 = vcmp.lt.f32.partialorder %v1228_v44, 0.0004427343 }
 0x23d   :  { %1446 = vmatprep.mubr.bf16.mxu1 %v7286_v1  ;;  %v4248_v50 = vpop.eup %4247  ;;  %v1206_v51 = vmul.f32 0.6931472, %v4246_v58  ;;  %v1227_v37 = vmul.f32 %v4242_v30, %v1226_v3  ;;  %v1081_v54 = vmax.f32 %v5068_v39, 0.0  ;;  %v1507_v44 = vsub.s32 3, %v4739_v12 }
 0x23e   :  { %v1203_v56 = vsel %vm1202_vm5, %v1200_v46, %v1197_v14  ;;  %v1231_v47 = vadd.f32 1.0, %v4248_v50  ;;  %v1234_v7 = vmul.f32 -0.5, %v4248_v50  ;;  %v1237_v31 = vand.u32 2147483647, %v4248_v50 }
 0x23f   :  { %v4250_v48 = vpop.eup %4249  ;;  %v1212_v59 = vsel %vm1211_vm6, %v1209_v22, %v1206_v51  ;;  %v1273_v19 = vadd.f32 %v1203_v56, %v1077_v36  ;;  %v1082_v36 = vmax.f32 %v5071_v28, 0.0 }
 0x240   :  { %v1240_v61 = vadd.f32 1.0, %v4250_v48  ;;  %v1274_v62 = vadd.f32 %v1212_v59, %v1078_v49  ;;  %4257 = vlog2.f32 %v1231_v47  ;;  %v1243_v0 = vmul.f32 -0.5, %v4250_v48 }
 0x241   :  { %v1235_v23 = vadd.f32 1.0, %v1234_v7  ;;  %v1246_v17 = vand.u32 2147483647, %v4250_v48  ;;  %vm1238_vm9 = vcmp.lt.f32.partialorder %v1237_v31, 0.0004427343 }
 0x242   :  { %v4252_v20 = vpop.eup %4251  ;;  %4259 = vlog2.f32 %v1240_v61  ;;  %v1284_v8 = vpack.c.bf16 %v1274_v62, %v1273_v19  ;;  %v1244_v43 = vadd.f32 1.0, %v1243_v0  ;;  %v1083_v61 = vmax.f32 %v5092_v9, 0.0 }
 0x243   :  { %v1215_v16 = vmul.f32 0.6931472, %v4252_v20  ;;  %4261 = vpow2.f32 %v1139_v4  ;;  %v1236_v40 = vmul.f32 %v4248_v50, %v1235_v23  ;;  %vm1247_vm10 = vcmp.lt.f32.partialorder %v1246_v17, 0.0004427343 }
 0x244   :  { %v4254_v18 = vpop.eup %4253  ;;  %1447 = vmatmul.mubr.bf16.gmra.mrb[40].mxu1 %v1284_v8  ;;  %v1245_v24 = vmul.f32 %v4250_v48, %v1244_v43  ;;  %v1084_v19 = vmax.f32 %v5104_v25, 0.0  ;;  %v5134_v8 = vld [vmem:[%s7279_s6] sm:$0xff] }
 0x245   :  { %v1221_v60 = vsel %vm1220_vm7, %v1218_v6, %v1215_v16  ;;  %v1224_v21 = vmul.f32 0.6931472, %v4254_v18  ;;  %1456 = vmatprep.mubr.bf16.mxu1 %v7286_v1  ;;  %v4256_v57 = vpop.eup %4255  ;;  %v5128_v16 = vsub.s32 2, %v4739_v12  ;;  %v5141_v25 = vrot.slane %v5134_v8, %v1507_v44 }
 0x246   :  { %v1249_v27 = vadd.f32 1.0, %v4256_v57  ;;  %v1275_v26 = vadd.f32 %v1221_v60, %v1079_v15  ;;  %v1252_v46 = vmul.f32 -0.5, %v4256_v57  ;;  %v1255_v22 = vand.u32 2147483647, %v4256_v57 }
 0x247   :  { %v1230_v5 = vsel %vm1229_vm8, %v1227_v37, %v1224_v21  ;;  %v5138_v9 = vrot.slane %v5134_v8, %v5128_v16 }
 0x248   :  { %v1276_v32 = vadd.f32 %v1230_v5, %v1080_v63  ;;  %4263 = vlog2.f32 %v1249_v27  ;;  %v1253_v39 = vadd.f32 1.0, %v1252_v46  ;;  %vm1256_vm11 = vcmp.lt.f32.partialorder %v1255_v22, 0.0004427343 }
 0x24a   :  { %v4258_v52 = vpop.eup %4257  ;;  %v1285_v10 = vpack.c.bf16 %v1276_v32, %v1275_v26  ;;  %v1254_v56 = vmul.f32 %v4256_v57, %v1253_v39 }
 0x24b   :  { %v1233_v55 = vmul.f32 0.6931472, %v4258_v52 }
 0x24c   :  { %v4260_v30 = vpop.eup %4259  ;;  %1457 = vmatmul.mubr.bf16.gmra.mrb[44].mxu1 %v1285_v10 }
 0x24d   :  { %v4262_v41 = vpop.eup %4261  ;;  %v1242_v2 = vmul.f32 0.6931472, %v4260_v30  ;;  %v1239_v42 = vsel %vm1238_vm9, %v1236_v40, %v1233_v55  ;;  %1466 = vmatprep.mubr.bf16.mxu1 %v7286_v1 }
 0x24e   :  { %v1258_v29 = vadd.f32 1.0, %v4262_v41  ;;  %v1277_v58 = vadd.f32 %v1239_v42, %v1081_v54  ;;  %v1261_v50 = vmul.f32 -0.5, %v4262_v41  ;;  %v1264_v28 = vand.u32 2147483647, %v4262_v41 }
 0x24f   :  { %v1248_v45 = vsel %vm1247_vm10, %v1245_v24, %v1242_v2 }
 0x250   :  { %v1278_v14 = vadd.f32 %v1248_v45, %v1082_v36  ;;  %4265 = vlog2.f32 %v1258_v29  ;;  %v1262_v48 = vadd.f32 1.0, %v1261_v50  ;;  %vm1265_vm12 = vcmp.lt.f32.partialorder %v1264_v28, 0.0004427343 }
 0x252   :  { %v1286_v49 = vpack.c.bf16 %v1278_v14, %v1277_v58  ;;  %v4264_v51 = vpop.eup %4263  ;;  %v1263_v38 = vmul.f32 %v4262_v41, %v1262_v48 }
 0x253   :  { %v1251_v53 = vmul.f32 0.6931472, %v4264_v51 }
 0x254   :  { %1467 = vmatmul.mubr.bf16.gmra.mrb[48].mxu1 %v1286_v49 }
 0x255   :  { %1476 = vmatprep.mubr.bf16.mxu1 %v7286_v1  ;;  %v1257_v4 = vsel %vm1256_vm11, %v1254_v56, %v1251_v53 }
 0x256   :  { %v1279_v35 = vadd.f32 %v1257_v4, %v1083_v61 }
 0x25a   :  { %v4266_v47 = vpop.eup %4265 }
 0x25b   :  { %v1260_v59 = vmul.f32 0.6931472, %v4266_v47 }
 0x25d   :  { %v1266_v62 = vsel %vm1265_vm12, %v1263_v38, %v1260_v59 }
 0x25e   :  { %v1280_v20 = vadd.f32 %v1266_v62, %v1084_v19 }
 0x260   :  { %v1287_v3 = vpack.c.bf16 %v1280_v20, %v1279_v35 }
 0x262   :  { %1477 = vmatmul.mubr.bf16.gmra.mrb[52].mxu1 %v1287_v3 }
 0x263   :  { %2398 = vmatprep.mubr.bf16.mxu1 %v7286_v1 }
 0x2f5   :  { %v1418_v6 = vpop.f32.mrb[28].mxu1 }
 0x2f6   :  { %v5144_v7 = vadd.f32 %v5138_v9, %v1418_v6  ;;  %v1420_v18 = vpop.f32.mrb[29].mxu1 }
 0x2f7   :  { %v5147_v0 = vadd.f32 %v5141_v25, %v1420_v18  ;;  %v1422_v60 = vpop.f32.mrb[30].mxu1 }
 0x2f8   :  { %v5150_v21 = vadd.f32 %v5138_v9, %v1422_v60  ;;  %v1424_v37 = vpop.f32.mrb[31].mxu1  ;;  %v1557_v15 = vmul.f32 %v5144_v7, %v5144_v7 }
 0x2f9   :  { %v5153_v57 = vadd.f32 %v5141_v25, %v1424_v37  ;;  %v1694_v23 = vmul.f32 %v5147_v0, %v5147_v0 }
 0x2fa   :  { %v1537_v63 = vadd.f32 %v5150_v21, %v5144_v7  ;;  %v1558_v5 = vmul.f32 %v5150_v21, %v5150_v21 }
 0x2fb   :  { %v1674_v27 = vadd.f32 %v5153_v57, %v5147_v0  ;;  %v1695_v26 = vmul.f32 %v5153_v57, %v5153_v57 }
 0x2fc   :  { %v1571_v32 = vadd.f32 %v1558_v5, %v1557_v15 }
 0x2fd   :  { %v1708_v31 = vadd.f32 %v1695_v26, %v1694_v23 }
 0x303   :  { %v1428_v43 = vpop.f32.mrb[32].mxu1 }
 0x304   :  { %v5168_v17 = vadd.f32 %v5138_v9, %v1428_v43  ;;  %v1430_v52 = vpop.f32.mrb[33].mxu1 }
 0x305   :  { %v5171_v10 = vadd.f32 %v5141_v25, %v1430_v52  ;;  %v1432_v30 = vpop.f32.mrb[34].mxu1 }
 0x306   :  { %v1538_v55 = vadd.f32 %v1537_v63, %v5168_v17  ;;  %v1559_v40 = vmul.f32 %v5168_v17, %v5168_v17  ;;  %v5177_v41 = vadd.f32 %v5138_v9, %v1432_v30  ;;  %v1434_v54 = vpop.f32.mrb[35].mxu1 }
 0x307   :  { %v1675_v2 = vadd.f32 %v1674_v27, %v5171_v10  ;;  %v1696_v24 = vmul.f32 %v5171_v10, %v5171_v10  ;;  %v5183_v42 = vadd.f32 %v5141_v25, %v1434_v54 }
 0x308   :  { %v1572_v36 = vadd.f32 %v1571_v32, %v1559_v40  ;;  %v1539_v29 = vadd.f32 %v1538_v55, %v5177_v41  ;;  %v1560_v45 = vmul.f32 %v5177_v41, %v5177_v41 }
 0x309   :  { %v1709_v58 = vadd.f32 %v1708_v31, %v1696_v24  ;;  %v1676_v14 = vadd.f32 %v1675_v2, %v5183_v42  ;;  %v1697_v46 = vmul.f32 %v5183_v42, %v5183_v42 }
 0x30a   :  { %v1573_v49 = vadd.f32 %v1572_v36, %v1560_v45 }
 0x30b   :  { %v1710_v50 = vadd.f32 %v1709_v58, %v1697_v46 }
 0x30f   :  { %v1438_v51 = vpop.f32.mrb[36].mxu1 }
 0x310   :  { %v5192_v39 = vadd.f32 %v5138_v9, %v1438_v51  ;;  %v1440_v22 = vpop.f32.mrb[37].mxu1 }
 0x311   :  { %v5195_v53 = vadd.f32 %v5141_v25, %v1440_v22  ;;  %v1442_v48 = vpop.f32.mrb[38].mxu1 }
 0x312   :  { %v1540_v28 = vadd.f32 %v1539_v29, %v5192_v39  ;;  %v1561_v56 = vmul.f32 %v5192_v39, %v5192_v39  ;;  %v5201_v47 = vadd.f32 %v5138_v9, %v1442_v48  ;;  %v1444_v4 = vpop.f32.mrb[39].mxu1 }
 0x313   :  { %v1677_v59 = vadd.f32 %v1676_v14, %v5195_v53  ;;  %v1698_v38 = vmul.f32 %v5195_v53, %v5195_v53  ;;  %v5207_v61 = vadd.f32 %v5141_v25, %v1444_v4 }
 0x314   :  { %v1574_v19 = vadd.f32 %v1573_v49, %v1561_v56  ;;  %v1541_v62 = vadd.f32 %v1540_v28, %v5201_v47  ;;  %v1562_v35 = vmul.f32 %v5201_v47, %v5201_v47 }
 0x315   :  { %v1711_v20 = vadd.f32 %v1710_v50, %v1698_v38  ;;  %v1678_v3 = vadd.f32 %v1677_v59, %v5207_v61  ;;  %v1699_v44 = vmul.f32 %v5207_v61, %v5207_v61 }
 0x316   :  { %v1575_v6 = vadd.f32 %v1574_v19, %v1562_v35 }
 0x317   :  { %v1712_v18 = vadd.f32 %v1711_v20, %v1699_v44  ;;  %v1448_v60 = vpop.f32.mrb[40].mxu1 }
 0x318   :  { %v5216_v37 = vadd.f32 %v5138_v9, %v1448_v60  ;;  %v1450_v15 = vpop.f32.mrb[41].mxu1 }
 0x319   :  { %v5219_v63 = vadd.f32 %v5141_v25, %v1450_v15  ;;  %v1452_v5 = vpop.f32.mrb[42].mxu1 }
 0x31a   :  { %v1542_v23 = vadd.f32 %v1541_v62, %v5216_v37  ;;  %v1563_v27 = vmul.f32 %v5216_v37, %v5216_v37  ;;  %v5225_v26 = vadd.f32 %v5138_v9, %v1452_v5  ;;  %v1454_v32 = vpop.f32.mrb[43].mxu1 }
 0x31b   :  { %v1679_v31 = vadd.f32 %v1678_v3, %v5219_v63  ;;  %v1700_v43 = vmul.f32 %v5219_v63, %v5219_v63  ;;  %v5231_v52 = vadd.f32 %v5141_v25, %v1454_v32 }
 0x31c   :  { %v1576_v30 = vadd.f32 %v1575_v6, %v1563_v27  ;;  %v1543_v55 = vadd.f32 %v1542_v23, %v5225_v26  ;;  %v1564_v40 = vmul.f32 %v5225_v26, %v5225_v26 }
 0x31d   :  { %v1713_v54 = vadd.f32 %v1712_v18, %v1700_v43  ;;  %v1680_v2 = vadd.f32 %v1679_v31, %v5231_v52  ;;  %v1701_v24 = vmul.f32 %v5231_v52, %v5231_v52 }
 0x31e   :  { %v1577_v36 = vadd.f32 %v1576_v30, %v1564_v40 }
 0x31f   :  { %v1714_v29 = vadd.f32 %v1713_v54, %v1701_v24  ;;  %v1458_v45 = vpop.f32.mrb[44].mxu1 }
 0x320   :  { %v5240_v58 = vadd.f32 %v5138_v9, %v1458_v45  ;;  %v1460_v14 = vpop.f32.mrb[45].mxu1  ;;  %v74_v45 = vadd.s32 96, %v4739_v12 }
 0x321   :  { %v5243_v46 = vadd.f32 %v5141_v25, %v1460_v14  ;;  %v1462_v49 = vpop.f32.mrb[46].mxu1 }
 0x322   :  { %v1544_v50 = vadd.f32 %v1543_v55, %v5240_v58  ;;  %v1565_v51 = vmul.f32 %v5240_v58, %v5240_v58  ;;  %v5249_v22 = vadd.f32 %v5138_v9, %v1462_v49  ;;  %v1464_v48 = vpop.f32.mrb[47].mxu1  ;;  %vm88_vm13 = vcmp.lt.s32.totalorder %v74_v45, 100 }
 0x323   :  { %v1681_v28 = vadd.f32 %v1680_v2, %v5243_v46  ;;  %v1702_v56 = vmul.f32 %v5243_v46, %v5243_v46  ;;  %v5255_v4 = vadd.f32 %v5141_v25, %v1464_v48 }
 0x324   :  { %v1578_v59 = vadd.f32 %v1577_v36, %v1565_v51  ;;  %v1545_v38 = vadd.f32 %v1544_v50, %v5249_v22  ;;  %v1566_v19 = vmul.f32 %v5249_v22, %v5249_v22  ;;  %v5289_v50 = vsel %vm88_vm13, 1.0, %v4448_v34 }
 0x325   :  { %v1715_v62 = vadd.f32 %v1714_v29, %v1702_v56  ;;  %v1682_v35 = vadd.f32 %v1681_v28, %v5255_v4  ;;  %v1703_v20 = vmul.f32 %v5255_v4, %v5255_v4 }
 0x326   :  { %v1579_v3 = vadd.f32 %v1578_v59, %v1566_v19 }
 0x327   :  { %v1716_v44 = vadd.f32 %v1715_v62, %v1703_v20  ;;  %v1468_v6 = vpop.f32.mrb[48].mxu1 }
 0x328   :  { %v5264_v18 = vadd.f32 %v5138_v9, %v1468_v6  ;;  %v1470_v60 = vpop.f32.mrb[49].mxu1 }
 0x329   :  { %v5267_v15 = vadd.f32 %v5141_v25, %v1470_v60  ;;  %v1472_v5 = vpop.f32.mrb[50].mxu1 }
 0x32a   :  { %v1546_v23 = vadd.f32 %v1545_v38, %v5264_v18  ;;  %v1567_v27 = vmul.f32 %v5264_v18, %v5264_v18  ;;  %v5273_v32 = vadd.f32 %v5138_v9, %v1472_v5  ;;  %v1474_v31 = vpop.f32.mrb[51].mxu1 }
 0x32b   :  { %v1683_v43 = vadd.f32 %v1682_v35, %v5267_v15  ;;  %v1704_v30 = vmul.f32 %v5267_v15, %v5267_v15  ;;  %v5279_v55 = vadd.f32 %v5141_v25, %v1474_v31 }
 0x32c   :  { %v1580_v40 = vadd.f32 %v1579_v3, %v1567_v27  ;;  %v1547_v54 = vadd.f32 %v1546_v23, %v5273_v32  ;;  %v1568_v2 = vmul.f32 %v5273_v32, %v5273_v32 }
 0x32d   :  { %v1717_v24 = vadd.f32 %v1716_v44, %v1704_v30  ;;  %v1684_v36 = vadd.f32 %v1683_v43, %v5279_v55  ;;  %v1705_v29 = vmul.f32 %v5279_v55, %v5279_v55 }
 0x32e   :  { %v1581_v14 = vadd.f32 %v1580_v40, %v1568_v2 }
 0x32f   :  { %v1718_v49 = vadd.f32 %v1717_v24, %v1705_v29 }
 0x335   :  { %v1478_v51 = vpop.f32.mrb[52].mxu1 }
 0x336   :  { %v5292_v48 = vadd.f32 %v5138_v9, %v1478_v51  ;;  %v1480_v28 = vpop.f32.mrb[53].mxu1 }
 0x337   :  { %v5295_v56 = vadd.f32 %v5141_v25, %v1480_v28  ;;  %v1482_v59 = vpop.f32.mrb[54].mxu1 }
 0x338   :  { %v1535_v38 = vmul.f32 %v5289_v50, %v5292_v48  ;;  %v5300_v19 = vadd.f32 %v5138_v9, %v1482_v59  ;;  %v1484_v62 = vpop.f32.mrb[55].mxu1 }
 0x339   :  { %v1672_v34 = vmul.f32 %v5289_v50, %v5295_v56  ;;  %v5305_v35 = vadd.f32 %v5141_v25, %v1484_v62 }
 0x33a   :  { %v1548_v20 = vadd.f32 %v1547_v54, %v1535_v38  ;;  %v1569_v3 = vmul.f32 %v1535_v38, %v1535_v38  ;;  %v1536_v44 = vmul.f32 0.0, %v5300_v19 }
 0x33b   :  { %v1685_v6 = vadd.f32 %v1684_v36, %v1672_v34  ;;  %v1706_v60 = vmul.f32 %v1672_v34, %v1672_v34  ;;  %v1673_v5 = vmul.f32 0.0, %v5305_v35 }
 0x33c   :  { %v1582_v23 = vadd.f32 %v1581_v14, %v1569_v3  ;;  %v1549_v27 = vadd.f32 %v1548_v20, %v1536_v44  ;;  %v1570_v31 = vmul.f32 %v1536_v44, %v1536_v44 }
 0x33d   :  { %v1719_v9 = vadd.f32 %v1718_v49, %v1706_v60  ;;  %v1686_v43 = vadd.f32 %v1685_v6, %v1673_v5  ;;  %v1707_v30 = vmul.f32 %v1673_v5, %v1673_v5 }
 0x33e   :  { %v1550_v40 = vrot.slane %v1549_v27, 4  ;;  %v1583_v2 = vadd.f32 %v1582_v23, %v1570_v31 }
 0x33f   :  { %v1687_v24 = vrot.slane %v1686_v43, 4  ;;  %v1720_v29 = vadd.f32 %v1719_v9, %v1707_v30 }
 0x340   :  { %v1551_v25 = vadd.f32 %v1550_v40, %v1549_v27  ;;  %v1584_v45 = vrot.slane %v1583_v2, 4 }
 0x341   :  { %v1688_v54 = vadd.f32 %v1687_v24, %v1686_v43  ;;  %v1721_v51 = vrot.slane %v1720_v29, 4 }
 0x342   :  { %v1552_v28 = vrot.slane %v1551_v25, 2  ;;  %v1585_v59 = vadd.f32 %v1584_v45, %v1583_v2 }
 0x343   :  { %v1689_v36 = vrot.slane %v1688_v54, 2  ;;  %v1722_v38 = vadd.f32 %v1721_v51, %v1720_v29 }
 0x344   :  { %v1553_v62 = vadd.f32 %v1552_v28, %v1551_v25  ;;  %v1586_v34 = vrot.slane %v1585_v59, 2 }
 0x345   :  { %v1690_v14 = vadd.f32 %v1689_v36, %v1688_v54  ;;  %v1723_v20 = vrot.slane %v1722_v38, 2 }
 0x346   :  { %v1554_v3 = vrot.slane %v1553_v62, 1  ;;  %v1587_v49 = vadd.f32 %v1586_v34, %v1585_v59 }
 0x347   :  { %v1691_v44 = vrot.slane %v1690_v14, 1  ;;  %v1724_v6 = vadd.f32 %v1723_v20, %v1722_v38 }
 0x348   :  { %v1555_v60 = vadd.f32 %v1554_v3, %v1553_v62  ;;  %v1588_v5 = vrot.slane %v1587_v49, 1 }
 0x349   :  { %v1692_v23 = vadd.f32 %v1691_v44, %v1690_v14  ;;  %v1725_v31 = vrot.slane %v1724_v6, 1 }
 0x34a   :  { %v5309_v27 = vmul.f32 0.01, %v1555_v60  ;;  %v1589_v9 = vadd.f32 %v1588_v5, %v1587_v49 }
 0x34b   :  { %v5311_v43 = vmul.f32 0.01, %v1692_v23  ;;  %v1726_v30 = vadd.f32 %v1725_v31, %v1724_v6 }
 0x34c   :  { %v1590_v40 = vmul.f32 0.01, %v1589_v9  ;;  %v1591_v2 = vmul.f32 %v5309_v27, %v5309_v27  ;;  %v1607_v24 = vsub.f32 %v5300_v19, %v5309_v27  ;;  %v1596_v29 = vsub.f32 %v5168_v17, %v5309_v27 }
 0x34d   :  { %v1727_v25 = vmul.f32 0.01, %v1726_v30  ;;  %v1728_v45 = vmul.f32 %v5311_v43, %v5311_v43  ;;  %v1744_v54 = vsub.f32 %v5305_v35, %v5311_v43  ;;  %v1733_v51 = vsub.f32 %v5171_v10, %v5311_v43 }
 0x34e   :  { %v1592_v28 = vsub.f32 %v1590_v40, %v1591_v2  ;;  %v1594_v59 = vsub.f32 %v5144_v7, %v5309_v27  ;;  %v1731_v19 = vsub.f32 %v5147_v0, %v5311_v43  ;;  %v1597_v17 = vsub.f32 %v5177_v41, %v5309_v27 }
 0x34f   :  { %v1729_v36 = vsub.f32 %v1727_v25, %v1728_v45  ;;  %v1734_v38 = vsub.f32 %v5183_v42, %v5311_v43  ;;  %v1595_v35 = vsub.f32 %v5150_v21, %v5309_v27  ;;  %v1732_v10 = vsub.f32 %v5153_v57, %v5311_v43 }
 0x350   :  { %v1593_v62 = vmax.f32 %v1592_v28, 0.0  ;;  %v1599_v7 = vsub.f32 %v5201_v47, %v5309_v27  ;;  %v1736_v0 = vsub.f32 %v5207_v61, %v5311_v43  ;;  %v1598_v41 = vsub.f32 %v5192_v39, %v5309_v27 }
 0x351   :  { %v1730_v34 = vmax.f32 %v1729_v36, 0.0  ;;  %v1735_v42 = vsub.f32 %v5195_v53, %v5311_v43  ;;  %v1601_v21 = vsub.f32 %v5225_v26, %v5309_v27  ;;  %v1738_v14 = vsub.f32 %v5231_v52, %v5311_v43 }
 0x352   :  { %v1608_v20 = vadd.f32 1e-05, %v1593_v62  ;;  %v1600_v3 = vsub.f32 %v5216_v37, %v5309_v27  ;;  %v1737_v49 = vsub.f32 %v5219_v63, %v5311_v43  ;;  %v1603_v44 = vsub.f32 %v5249_v22, %v5309_v27 }
 0x353   :  { %v1745_v6 = vadd.f32 1e-05, %v1730_v34  ;;  %v5374_v45 = vsub.s32 4, %v4739_v12  ;;  %v5377_v28 = vsub.s32 6, %v4739_v12  ;;  %v1781_v36 = vsub.s32 7, %v4739_v12 }
 0x354   :  { %4267 = vrsqrt.f32 %v1608_v20  ;;  %v5381_v62 = vsub.s32 5, %v4739_v12  ;;  %v5401_v12 = vand.u32 127, %v61_v11  ;;  %v7382_v37 = vsub.f32 %v5255_v4, %v5311_v43 }
 0x355   :  { %4269 = vrsqrt.f32 %v1745_v6  ;;  %v5385_v34 = vrot.slane %v5134_v8, %v5374_v45  ;;  %v5391_v6 = vrot.slane %v5134_v8, %v5377_v28  ;;  %v5394_v1 = vrot.slane %v5134_v8, %v1781_v36 }
 0x356   :  { %v5398_v25 = vrot.slane %v5134_v8, %v5381_v62  ;;  %vm1883_vm14 = vcmp.lt.s32.totalorder %v5401_v12, 32  ;;  %v4112_v12 = vld [vmem:[%s7283_s5 + $0xc] ss:$16 sps:$4 sm:$0xff]  }
 0x357   :  { %2366 = vmatprep.subr.bf16.mxu1 %v4112_v12 }
 0x35e   :  { %v5387_v20 = vpop.eup %4267 }
 0x35f   :  { %v5403_v2 = vpop.eup %4269  ;;  %v5406_v40 = vmul.f32 %v5387_v20, %v1607_v24  ;;  %v1612_v30 = vmul.f32 %v5387_v20, %v1596_v29  ;;  %v1610_v9 = vmul.f32 %v5387_v20, %v1594_v59  ;;  %v1613_v31 = vmul.f32 %v5387_v20, %v1597_v17 }
 0x360   :  { %v1760_v36 = vmul.f32 %v5403_v2, %v1744_v54  ;;  %v1749_v23 = vmul.f32 %v5403_v2, %v1733_v51  ;;  %v1747_v8 = vmul.f32 %v5403_v2, %v1731_v19  ;;  %v1750_v11 = vmul.f32 %v5403_v2, %v1734_v38 }
 0x361   :  { %v1630_v5 = vmul.f32 %v5385_v34, %v1612_v30  ;;  %v1628_v60 = vmul.f32 %v5385_v34, %v1610_v9  ;;  %v1631_v24 = vmul.f32 %v5385_v34, %v1613_v31  ;;  %v1611_v29 = vmul.f32 %v5387_v20, %v1595_v35 }
 0x362   :  { %v1778_v59 = vmul.f32 %v5391_v6, %v1760_v36  ;;  %v1767_v17 = vmul.f32 %v5391_v6, %v1749_v23  ;;  %v1765_v54 = vmul.f32 %v5391_v6, %v1747_v8  ;;  %v1768_v51 = vmul.f32 %v5391_v6, %v1750_v11 }
 0x363   :  { %v5424_v19 = vadd.f32 %v5398_v25, %v1630_v5  ;;  %v5427_v38 = vadd.f32 %v5398_v25, %v1628_v60  ;;  %v5430_v9 = vadd.f32 %v5398_v25, %v1631_v24  ;;  %v1629_v31 = vmul.f32 %v5385_v34, %v1611_v29 }
 0x364   :  { %v1796_v35 = vadd.f32 %v5394_v1, %v1778_v59  ;;  %v1785_v30 = vadd.f32 %v5394_v1, %v1767_v17  ;;  %v1783_v23 = vadd.f32 %v5394_v1, %v1765_v54  ;;  %v1786_v36 = vadd.f32 %v5394_v1, %v1768_v51 }
 0x365   :  { %3640 = vst [vmem:[%s7280_s9 + $0x10] sm:$0xff] %v5424_v19  ;;  %3638 = vst [vmem:[%s7280_s9] sm:$0xff] %v5427_v38  ;;  %v5450_v60 = vadd.f32 %v5398_v25, %v1629_v31  ;;  %v1748_v5 = vmul.f32 %v5403_v2, %v1732_v10  ;;  %v1615_v8 = vmul.f32 %v5387_v20, %v1599_v7 }
 0x366   :  { %3641 = vst [vmem:[%s7280_s9 + $0x18] sm:$0xff] %v5430_v9  ;;  %v1752_v11 = vmul.f32 %v5403_v2, %v1736_v0  ;;  %v1810_v24 = vmul.f32 0.5, %v1796_v35  ;;  %3665 = vst [vmem:[%s7281_s10 + $0x68] sm:$0xff] %v1796_v35  ;;  %v1799_v29 = vmul.f32 0.5, %v1785_v30  ;;  %v1797_v57 = vmul.f32 0.5, %v1783_v23 }
 0x367   :  { %3654 = vst [vmem:[%s7281_s10 + $0x10] sm:$0xff] %v1785_v30  ;;  %3652 = vst [vmem:[%s7281_s10] sm:$0xff] %v1783_v23  ;;  %v1800_v47 = vmul.f32 0.5, %v1786_v36  ;;  %v1766_v61 = vmul.f32 %v5391_v6, %v1748_v5  ;;  %v1633_v10 = vmul.f32 %v5385_v34, %v1615_v8  ;;  %v1614_v0 = vmul.f32 %v5387_v20, %v1598_v41 }
 0x368   :  { %3655 = vst [vmem:[%s7281_s10 + $0x18] sm:$0xff] %v1786_v36  ;;  %3639 = vst [vmem:[%s7280_s9 + $0x8] sm:$0xff] %v5450_v60  ;;  %v1770_v7 = vmul.f32 %v5391_v6, %v1752_v11  ;;  %v1837_v59 = vmul.f32 1.442695, %v1810_v24  ;;  %v1815_v17 = vmul.f32 1.442695, %v1799_v29  ;;  %v1751_v51 = vmul.f32 %v5403_v2, %v1735_v42 }
 0x369   :  { %v1811_v54 = vmul.f32 1.442695, %v1797_v57  ;;  %v1817_v31 = vmul.f32 1.442695, %v1800_v47  ;;  %v1784_v35 = vadd.f32 %v5394_v1, %v1766_v61  ;;  %v5493_v30 = vadd.f32 %v5398_v25, %v1633_v10 }
 0x36a   :  { %v1788_v23 = vadd.f32 %v5394_v1, %v1770_v7  ;;  %4271 = vpow2.f32 %v1837_v59  ;;  %v1632_v39 = vmul.f32 %v5385_v34, %v1614_v0  ;;  %v1769_v41 = vmul.f32 %v5391_v6, %v1751_v51 }
 0x36b   :  { %v1617_v53 = vmul.f32 %v5387_v20, %v1601_v21  ;;  %4273 = vpow2.f32 %v1815_v17  ;;  %v1798_v42 = vmul.f32 0.5, %v1784_v35  ;;  %3653 = vst [vmem:[%s7281_s10 + $0x8] sm:$0xff] %v1784_v35  ;;  %3643 = vst [vmem:[%s7280_s9 + $0x28] sm:$0xff] %v5493_v30  ;;  %v1754_v26 = vmul.f32 %v5403_v2, %v1738_v14  ;;  %v1841_v35 = vld [vmem:[%s7282_s1 + $0x10] sm:$0xff] }
 0x36c   :  { %v1802_v36 = vmul.f32 0.5, %v1788_v23  ;;  %3657 = vst [vmem:[%s7281_s10 + $0x28] sm:$0xff] %v1788_v23  ;;  %4275 = vpow2.f32 %v1811_v54  ;;  %v5517_v21 = vadd.f32 %v5398_v25, %v1632_v39  ;;  %v1787_v5 = vadd.f32 %v5394_v1, %v1769_v41 }
 0x36d   :  { %v1635_v8 = vmul.f32 %v5385_v34, %v1617_v53  ;;  %4277 = vpow2.f32 %v1817_v31  ;;  %v1813_v11 = vmul.f32 1.442695, %v1798_v42  ;;  %v1772_v29 = vmul.f32 %v5391_v6, %v1754_v26 }
 0x36e   :  { %v1821_v24 = vmul.f32 1.442695, %v1802_v36  ;;  %v1801_v57 = vmul.f32 0.5, %v1787_v5  ;;  %3642 = vst [vmem:[%s7280_s9 + $0x20] sm:$0xff] %v5517_v21  ;;  %3656 = vst [vmem:[%s7281_s10 + $0x20] sm:$0xff] %v1787_v5  ;;  %v1616_v14 = vmul.f32 %v5387_v20, %v1600_v3  ;;  %v1753_v47 = vmul.f32 %v5403_v2, %v1737_v49 }
 0x36f   :  { %v5530_v52 = vadd.f32 %v5398_v25, %v1635_v8  ;;  %4279 = vpow2.f32 %v1813_v11  ;;  %v1790_v61 = vadd.f32 %v5394_v1, %v1772_v29  ;;  %v1619_v10 = vmul.f32 %v5387_v20, %v1603_v44  ;;  %v1842_v29 = vld [vmem:[%s7282_s1 + $0x18] sm:$0xff] }
 0x370   :  { %v1756_v3 = vmul.f32 %v5403_v2, %v7382_v37  ;;  %4281 = vpow2.f32 %v1821_v24  ;;  %v1819_v7 = vmul.f32 1.442695, %v1801_v57  ;;  %v1634_v63 = vmul.f32 %v5385_v34, %v1616_v14 }
 0x371   :  { %3645 = vst [vmem:[%s7280_s9 + $0x38] sm:$0xff] %v5530_v52  ;;  %v1771_v49 = vmul.f32 %v5391_v6, %v1753_v47  ;;  %v1804_v0 = vmul.f32 0.5, %v1790_v61  ;;  %3659 = vst [vmem:[%s7281_s10 + $0x38] sm:$0xff] %v1790_v61  ;;  %v1637_v22 = vmul.f32 %v5385_v34, %v1619_v10  ;;  %v7383_v44 = vsub.f32 %v5240_v58, %v5309_v27 }
 0x372   :  { %v1774_v4 = vmul.f32 %v5391_v6, %v1756_v3  ;;  %4283 = vpow2.f32 %v1819_v7  ;;  %v5566_v17 = vadd.f32 %v5398_v25, %v1634_v63  ;;  %v7384_v51 = vsub.f32 %v5243_v46, %v5311_v43  ;;  %v1839_v46 = vld [vmem:[%s7282_s1] sm:$0xff] }
 0x373   :  { %v1618_v59 = vmul.f32 %v5387_v20, %v7383_v44  ;;  %v1789_v54 = vadd.f32 %v5394_v1, %v1771_v49  ;;  %v1825_v23 = vmul.f32 1.442695, %v1804_v0  ;;  %v5577_v58 = vadd.f32 %v5398_v25, %v1637_v22  ;;  %v1840_v49 = vld [vmem:[%s7282_s1 + $0x8] sm:$0xff] }
 0x374   :  { %v1755_v31 = vmul.f32 %v5403_v2, %v7384_v51  ;;  %v1792_v39 = vadd.f32 %v5394_v1, %v1774_v4  ;;  %v5581_v53 = vpop.eup %4271  ;;  %3644 = vst [vmem:[%s7280_s9 + $0x30] sm:$0xff] %v5566_v17  ;;  %v7385_v26 = vsub.f32 %v5273_v32, %v5309_v27  ;;  %v7386_v8 = vsub.f32 %v5279_v55, %v5311_v43 }
 0x375   :  { %v1636_v41 = vmul.f32 %v5385_v34, %v1618_v59  ;;  %v1803_v42 = vmul.f32 0.5, %v1789_v54  ;;  %3658 = vst [vmem:[%s7281_s10 + $0x30] sm:$0xff] %v1789_v54  ;;  %v4274_v24 = vpop.eup %4273  ;;  %4285 = vpow2.f32 %v1825_v23  ;;  %3647 = vst [vmem:[%s7280_s9 + $0x48] sm:$0xff] %v5577_v58  ;;  %v7387_v55 = vsub.f32 %v5264_v18, %v5309_v27  ;;  %v1844_v59 = vld [vmem:[%s7282_s1 + $0x28] sm:$0xff] }
 0x376   :  { %v1773_v36 = vmul.f32 %v5391_v6, %v1755_v31  ;;  %v1621_v5 = vmul.f32 %v5387_v20, %v7385_v26  ;;  %v1758_v11 = vmul.f32 %v5403_v2, %v7386_v8  ;;  %v1806_v57 = vmul.f32 0.5, %v1792_v39  ;;  %3661 = vst [vmem:[%s7281_s10 + $0x48] sm:$0xff] %v1792_v39  ;;  %v4276_v47 = vpop.eup %4275  ;;  %v1852_v8 = vld [vmem:[%s7282_s1 + $0x68] sm:$0xff] }
 0x377   :  { %v5613_v32 = vadd.f32 %v5398_v25, %v1636_v41  ;;  %v1620_v14 = vmul.f32 %v5387_v20, %v7387_v55  ;;  %v1855_v61 = vmul.f32 %v4274_v24, %v1841_v35  ;;  %v1823_v10 = vmul.f32 1.442695, %v1803_v42  ;;  %v4278_v7 = vpop.eup %4277  ;;  %v1843_v42 = vld [vmem:[%s7282_s1 + $0x20] sm:$0xff] }
 0x378   :  { %v1791_v37 = vadd.f32 %v5394_v1, %v1773_v36  ;;  %v1639_v3 = vmul.f32 %v5385_v34, %v1621_v5  ;;  %v1853_v63 = vmul.f32 %v4276_v47, %v1839_v46  ;;  %v1829_v0 = vmul.f32 1.442695, %v1806_v57  ;;  %v1846_v47 = vld [vmem:[%s7282_s1 + $0x38] sm:$0xff] }
 0x379   :  { %3646 = vst [vmem:[%s7280_s9 + $0x40] sm:$0xff] %v5613_v32  ;;  %v1776_v18 = vmul.f32 %v5391_v6, %v1758_v11  ;;  %v1638_v22 = vmul.f32 %v5385_v34, %v1620_v14  ;;  %v1869_v4 = vadd.f32 %v1855_v61, %v5424_v19  ;;  %v1856_v44 = vmul.f32 %v4278_v7, %v1842_v29  ;;  %v4280_v51 = vpop.eup %4279 }
 0x37a   :  { %4287 = vpow2.f32 %v1823_v10  ;;  %v1805_v54 = vmul.f32 0.5, %v1791_v37  ;;  %3660 = vst [vmem:[%s7281_s10 + $0x40] sm:$0xff] %v1791_v37  ;;  %v1867_v31 = vadd.f32 %v1853_v63, %v5427_v38  ;;  %v5639_v35 = vadd.f32 %v5398_v25, %v1639_v3  ;;  %v4282_v23 = vpop.eup %4281 }
 0x37b   :  { %4289 = vpow2.f32 %v1829_v0  ;;  %v1794_v19 = vadd.f32 %v5394_v1, %v1776_v18  ;;  %v5644_v39 = vsel %vm1883_vm14, %v1869_v4, -1e+30  ;;  %v1870_v41 = vadd.f32 %v1856_v44, %v5430_v9 }
 0x37c   :  { %v1854_v46 = vmul.f32 %v4280_v51, %v1840_v49  ;;  %v1827_v36 = vmul.f32 1.442695, %v1805_v54  ;;  %1902 = vmax.xlane.f32.xlu1 %v5644_v39  ;;  %v5653_v38 = vsel %vm1883_vm14, %v1867_v31, -1e+30  ;;  %v1858_v26 = vmul.f32 %v4282_v23, %v1844_v59  ;;  %3649 = vst [vmem:[%s7280_s9 + $0x58] sm:$0xff] %v5639_v35  ;;  %v4284_v11 = vpop.eup %4283  ;;  %v1847_v31 = vld [vmem:[%s7282_s1 + $0x40] sm:$0xff] }
 0x37d   :  { %v1808_v5 = vmul.f32 0.5, %v1794_v19  ;;  %3663 = vst [vmem:[%s7281_s10 + $0x58] sm:$0xff] %v1794_v19  ;;  %v5663_v9 = vadd.f32 %v5398_v25, %v1638_v22  ;;  %1898 = vmax.xlane.f32.xlu0 %v5653_v38  ;;  %v7388_v29 = vsub.f32 %v5267_v15, %v5311_v43  ;;  %v1857_v14 = vmul.f32 %v4284_v11, %v1843_v42  ;;  %v1848_v22 = vld [vmem:[%s7282_s1 + $0x48] sm:$0xff] }
 0x37e   :  { %v1868_v24 = vadd.f32 %v1854_v46, %v5450_v60  ;;  %4291 = vpow2.f32 %v1827_v36  ;;  %v1872_v55 = vadd.f32 %v1858_v26, %v5493_v30  ;;  %v1641_v60 = vmul.f32 %v5385_v34, %v5406_v40  ;;  %v1850_v36 = vld [vmem:[%s7282_s1 + $0x58] sm:$0xff] }
 0x37f   :  { %v1757_v57 = vmul.f32 %v5403_v2, %v7388_v29  ;;  %v1833_v61 = vmul.f32 1.442695, %v1808_v5  ;;  %3648 = vst [vmem:[%s7280_s9 + $0x50] sm:$0xff] %v5663_v9  ;;  %v5686_v15 = vsel %vm1883_vm14, %v1870_v41, -1e+30  ;;  %v1866_v10 = vmul.f32 %v5581_v53, %v1852_v8  ;;  %v4286_v7 = vpop.eup %4285 }
 0x380   :  { %v7389_v37 = vsub.f32 %v5292_v48, %v5309_v27  ;;  %1904 = vmax.xlane.f32.xlu1 %v5686_v15  ;;  %v5697_v63 = vsel %vm1883_vm14, %v1868_v24, -1e+30  ;;  %v1871_v40 = vadd.f32 %v1857_v14, %v5517_v21  ;;  %v1659_v49 = vadd.f32 %v5398_v25, %v1641_v60  ;;  %v1845_v48 = vld [vmem:[%s7282_s1 + $0x30] sm:$0xff] }
 0x381   :  { %v1775_v30 = vmul.f32 %v5391_v6, %v1757_v57  ;;  %4293 = vpow2.f32 %v1833_v61  ;;  %1900 = vmax.xlane.f32.xlu0 %v5697_v63  ;;  %v1860_v53 = vmul.f32 %v4286_v7, %v1846_v47  ;;  %v7390_v0 = vsub.f32 %v5295_v56, %v5311_v43  ;;  %v4109_v7 = vld [vmem:[%s7283_s5 + $0x4] ss:$16 sps:$4 sm:$0xff]  }
 0x382   :  { %v1622_v3 = vmul.f32 %v5387_v20, %v7389_v37  ;;  %v5713_v21 = vsel %vm1883_vm14, %v1872_v55, -1e+30  ;;  %v1880_v4 = vadd.f32 %v1866_v10, %v1659_v49  ;;  %3651 = vst [vmem:[%s7280_s9 + $0x68] sm:$0xff] %v1659_v49  ;;  %v5730_v54 = vsel %vm1883_vm14, %v1871_v40, -1e+30  ;;  %2263 = vmatprep.subr.bf16.mxu0 %v4109_v7 }
 0x383   :  { %v1793_v27 = vadd.f32 %v5394_v1, %v1775_v30  ;;  %v1759_v18 = vmul.f32 %v5403_v2, %v7390_v0  ;;  %v4110_v40 = vld [vmem:[%s7283_s5 + $0x8] ss:$16 sps:$4 sm:$0xff]   ;;  %v4113_v49 = vld [vmem:[%s7283_s5 + $0x20] ss:$16 sps:$4 sm:$0xff]  }
 0x384   :  { %v1640_v20 = vmul.f32 %v5385_v34, %v1622_v3  ;;  %v4288_v44 = vpop.eup %4287  ;;  %v1874_v34 = vadd.f32 %v1860_v53, %v5530_v52  ;;  %1908 = vmax.xlane.f32.xlu1 %v5713_v21  ;;  %v5780_v47 = vsel %vm1883_vm14, %v1880_v4, -1e+30  ;;  %v4115_v53 = vld [vmem:[%s7283_s5 + $0x24] ss:$16 sps:$4 sm:$0xff]   ;;  %2367 = vmatpush1.bf16.msra.mxu1 %v4110_v40  ;;  %v4119_v0 = vld [vmem:[%s7283_s5 + $0x40] ss:$16 sps:$4 sm:$0xff]  }
 0x385   :  { %v1807_v59 = vmul.f32 0.5, %v1793_v27  ;;  %3662 = vst [vmem:[%s7281_s10 + $0x50] sm:$0xff] %v1793_v27  ;;  %v1777_v43 = vmul.f32 %v5391_v6, %v1759_v18  ;;  %v4290_v2 = vpop.eup %4289  ;;  %v1859_v51 = vmul.f32 %v4288_v44, %v1845_v48  ;;  %1906 = vmax.xlane.f32.xlu0 %v5730_v54  ;;  %v4116_v48 = vld [vmem:[%s7283_s5 + $0x28] ss:$16 sps:$4 sm:$0xff]   ;;  %v4118_v27 = vld [vmem:[%s7283_s5 + $0x2c] ss:$16 sps:$4 sm:$0xff]  }
 0x386   :  { %v1658_v56 = vadd.f32 %v5398_v25, %v1640_v20  ;;  %v1862_v52 = vmul.f32 %v4290_v2, %v1848_v22  ;;  %v5743_v41 = vsel %vm1883_vm14, %v1874_v34, -1e+30  ;;  %v4121_v20 = vld [vmem:[%s7283_s5 + $0x44] ss:$16 sps:$4 sm:$0xff]   ;;  %2368 = vmatprep.subr.bf16.mxu1 %v4118_v27  ;;  %v4124_v18 = vld [vmem:[%s7283_s5 + $0x4c] ss:$16 sps:$4 sm:$0xff]  }
 0x387   :  { %v1831_v19 = vmul.f32 1.442695, %v1807_v59  ;;  %v1795_v25 = vadd.f32 %v5394_v1, %v1777_v43  ;;  %v1873_v6 = vadd.f32 %v1859_v51, %v5566_v17  ;;  %v4122_v22 = vld [vmem:[%s7283_s5 + $0x48] ss:$16 sps:$4 sm:$0xff]   ;;  %v4127_v4 = vld [vmem:[%s7283_s5 + $0x64] ss:$16 sps:$4 sm:$0xff]  }
 0x388   :  { %3650 = vst [vmem:[%s7280_s9 + $0x60] sm:$0xff] %v1658_v56  ;;  %v4292_v23 = vpop.eup %4291  ;;  %v1876_v46 = vadd.f32 %v1862_v52, %v5577_v58  ;;  %1912 = vmax.xlane.f32.xlu1 %v5743_v41  ;;  %2369 = vmatpush1.bf16.msra.mxu1 %v4116_v48  ;;  %v4130_v44 = vld [vmem:[%s7283_s5 + $0x6c] ss:$16 sps:$4 sm:$0xff]   ;;  %v4125_v34 = vld [vmem:[%s7283_s5 + $0x60] ss:$16 sps:$4 sm:$0xff]  }
 0x389   :  { %4295 = vpow2.f32 %v1831_v19  ;;  %v1809_v42 = vmul.f32 0.5, %v1795_v25  ;;  %3664 = vst [vmem:[%s7281_s10 + $0x60] sm:$0xff] %v1795_v25  ;;  %v5752_v1 = vsel %vm1883_vm14, %v1873_v6, -1e+30  ;;  %v1861_v17 = vmul.f32 %v4292_v23, %v1847_v31  ;;  %2370 = vmatprep.subr.bf16.mxu1 %v4124_v18  ;;  %v4128_v59 = vld [vmem:[%s7283_s5 + $0x68] ss:$16 sps:$4 sm:$0xff]  }
 0x38a   :  { %1910 = vmax.xlane.f32.xlu0 %v5752_v1  ;;  %v5761_v8 = vsel %vm1883_vm14, %v1876_v46, -1e+30  ;;  %v4131_v43 = vld [vmem:[%s7283_s5 + $0x80] ss:$16 sps:$4 sm:$0xff]   ;;  %v4136_v2 = vld [vmem:[%s7283_s5 + $0x8c] ss:$16 sps:$4 sm:$0xff]  }
 0x38b   :  { %v1835_v58 = vmul.f32 1.442695, %v1809_v42  ;;  %v4294_v26 = vpop.eup %4293  ;;  %v1875_v5 = vadd.f32 %v1861_v17, %v5613_v32  ;;  %v1849_v32 = vld [vmem:[%s7282_s1 + $0x50] sm:$0xff]  ;;  %v4134_v51 = vld [vmem:[%s7283_s5 + $0x88] ss:$16 sps:$4 sm:$0xff]  }
 0x38c   :  { %v1864_v11 = vmul.f32 %v4294_v26, %v1850_v36  ;;  %1916 = vmax.xlane.f32.xlu1 %v5761_v8  ;;  %2371 = vmatpush1.bf16.msra.mxu1 %v4122_v22  ;;  %v4139_v52 = vld [vmem:[%s7283_s5 + $0xa4] ss:$16 sps:$4 sm:$0xff]   ;;  %v4137_v31 = vld [vmem:[%s7283_s5 + $0xa0] ss:$16 sps:$4 sm:$0xff]  }
 0x38d   :  { %4297 = vpow2.f32 %v1835_v58  ;;  %v5766_v24 = vsel %vm1883_vm14, %v1875_v5, -1e+30  ;;  %2372 = vmatprep.subr.bf16.mxu1 %v4130_v44 }
 0x38e   :  { %1914 = vmax.xlane.f32.xlu0 %v5766_v24  ;;  %v1878_v29 = vadd.f32 %v1864_v11, %v5639_v35  ;;  %v1851_v35 = vld [vmem:[%s7282_s1 + $0x60] sm:$0xff] }
 0x390   :  { %v5772_v57 = vsel %vm1883_vm14, %v1878_v29, -1e+30  ;;  %2373 = vmatpush1.bf16.msra.mxu1 %v4128_v59 }
 0x391   :  { %1920 = vmax.xlane.f32.xlu1 %v5772_v57  ;;  %2374 = vmatprep.subr.bf16.mxu1 %v4136_v2 }
 0x393   :  { %v4296_v55 = vpop.eup %4295 }
 0x394   :  { %v1863_v14 = vmul.f32 %v4296_v55, %v1849_v32  ;;  %2375 = vmatpush1.bf16.msra.mxu1 %v4134_v51 }
 0x395   :  { %1924 = vmax.xlane.f32.xlu1 %v5780_v47 }
 0x396   :  { %v1877_v61 = vadd.f32 %v1863_v14, %v5663_v9  ;;  %v4107_v9 = vld [vmem:[%s7283_s5] ss:$16 sps:$4 sm:$0xff]  }
 0x397   :  { %v4298_v60 = vpop.eup %4297  ;;  %2264 = vmatpush1.bf16.msra.mxu0 %v4107_v9 }
 0x398   :  { %v5789_v30 = vsel %vm1883_vm14, %v1877_v61, -1e+30  ;;  %v1865_v10 = vmul.f32 %v4298_v60, %v1851_v35  ;;  %2265 = vmatprep.subr.bf16.mxu0 %v4115_v53 }
 0x399   :  { %1918 = vmax.xlane.f32.xlu0 %v5789_v30 }
 0x39a   :  { %v1879_v37 = vadd.f32 %v1865_v10, %v1658_v56  ;;  %v4133_v56 = vld [vmem:[%s7283_s5 + $0x84] ss:$16 sps:$4 sm:$0xff]  }
 0x39b   :  { %2266 = vmatpush1.bf16.msra.mxu0 %v4113_v49 }
 0x39c   :  { %v5794_v3 = vsel %vm1883_vm14, %v1879_v37, -1e+30  ;;  %2267 = vmatprep.subr.bf16.mxu0 %v4121_v20 }
 0x39d   :  { %1922 = vmax.xlane.f32.xlu0 %v5794_v3 }
 0x39f   :  { %2268 = vmatpush1.bf16.msra.mxu0 %v4119_v0 }
 0x3a0   :  { %2269 = vmatprep.subr.bf16.mxu0 %v4127_v4 }
 0x3a3   :  { %2270 = vmatpush1.bf16.msra.mxu0 %v4125_v34 }
 0x3a4   :  { %2271 = vmatprep.subr.bf16.mxu0 %v4133_v56 }
 0x3a7   :  { %2272 = vmatpush1.bf16.msra.mxu0 %v4131_v43 }
 0x3a8   :  { %2273 = vmatprep.subr.bf16.mxu0 %v4139_v52  ;;  %v4142_v52 = vld [vmem:[%s7283_s5 + $0xac] ss:$16 sps:$4 sm:$0xff]  }
 0x3a9   :  { %2376 = vmatprep.subr.bf16.mxu1 %v4142_v52 }
 0x3ab   :  { %2274 = vmatpush1.bf16.msra.mxu0 %v4137_v31 }
 0x409   :  { %v1903_v19 = vpop.xlane.xlu1 %1902 }
 0x40a   :  { %v1928_v25 = vsub.f32 %v5644_v39, %v1903_v19  ;;  %v1899_v6 = vpop.xlane.xlu0 %1898 }
 0x40b   :  { %v1926_v23 = vsub.f32 %v5653_v38, %v1899_v6  ;;  %v4145_v6 = vld [vmem:[%s7283_s5 + $0xc4] ss:$16 sps:$4 sm:$0xff]  }
 0x40c   :  { %v1944_v17 = vmul.f32 1.442695, %v1928_v25  ;;  %v4143_v25 = vld [vmem:[%s7283_s5 + $0xc0] ss:$16 sps:$4 sm:$0xff]   ;;  %2275 = vmatprep.subr.bf16.mxu0 %v4145_v6 }
 0x40d   :  { %v1940_v46 = vmul.f32 1.442695, %v1926_v23  ;;  %v1905_v42 = vpop.xlane.xlu1 %1904  ;;  %v4146_v23 = vld [vmem:[%s7283_s5 + $0xc8] ss:$16 sps:$4 sm:$0xff]   ;;  %2276 = vmatpush1.bf16.msra.mxu0 %v4143_v25 }
 0x40e   :  { %v1929_v36 = vsub.f32 %v5686_v15, %v1905_v42  ;;  %v1901_v58 = vpop.xlane.xlu0 %1900  ;;  %v4151_v42 = vld [vmem:[%s7283_s5 + $0xe4] ss:$16 sps:$4 sm:$0xff]  }
 0x40f   :  { %4299 = vpow2.f32 %v1940_v46  ;;  %v1927_v26 = vsub.f32 %v5697_v63, %v1901_v58  ;;  %v4148_v46 = vld [vmem:[%s7283_s5 + $0xcc] ss:$16 sps:$4 sm:$0xff]   ;;  %2277 = vmatprep.subr.bf16.mxu0 %v4151_v42  ;;  %v4152_v58 = vld [vmem:[%s7283_s5 + $0xe8] ss:$16 sps:$4 sm:$0xff]  }
 0x410   :  { %4301 = vpow2.f32 %v1944_v17  ;;  %v1946_v29 = vmul.f32 1.442695, %v1929_v36  ;;  %v4154_v17 = vld [vmem:[%s7283_s5 + $0xec] ss:$16 sps:$4 sm:$0xff]   ;;  %v4149_v36 = vld [vmem:[%s7283_s5 + $0xe0] ss:$16 sps:$4 sm:$0xff]  }
 0x411   :  { %v1942_v5 = vmul.f32 1.442695, %v1927_v26  ;;  %v1909_v11 = vpop.xlane.xlu1 %1908  ;;  %2278 = vmatpush1.bf16.msra.mxu0 %v4149_v36 }
 0x412   :  { %v1931_v32 = vsub.f32 %v5713_v21, %v1909_v11  ;;  %v1907_v55 = vpop.xlane.xlu0 %1906 }
 0x413   :  { %4303 = vpow2.f32 %v1942_v5  ;;  %v1930_v39 = vsub.f32 %v5730_v54, %v1907_v55 }
 0x414   :  { %4305 = vpow2.f32 %v1946_v29  ;;  %v1950_v35 = vmul.f32 1.442695, %v1931_v32 }
 0x415   :  { %v1948_v38 = vmul.f32 1.442695, %v1930_v39  ;;  %v1913_v14 = vpop.xlane.xlu1 %1912 }
 0x416   :  { %v1933_v15 = vsub.f32 %v5743_v41, %v1913_v14 }
 0x417   :  { %v1911_v61 = vpop.xlane.xlu0 %1910  ;;  %4307 = vpow2.f32 %v1948_v38 }
 0x418   :  { %v1932_v63 = vsub.f32 %v5752_v1, %v1911_v61  ;;  %4309 = vpow2.f32 %v1950_v35  ;;  %v1954_v21 = vmul.f32 1.442695, %v1933_v15 }
 0x419   :  { %v5871_v60 = vpop.eup %4299  ;;  %v1917_v37 = vpop.xlane.xlu1 %1916 }
 0x41a   :  { %v1952_v10 = vmul.f32 1.442695, %v1932_v63  ;;  %1968 = vadd.xlane.f32.xlu0 %v5871_v60  ;;  %v1935_v54 = vsub.f32 %v5761_v8, %v1917_v37  ;;  %v5876_v40 = vpop.eup %4301 }
 0x41b   :  { %v1915_v9 = vpop.xlane.xlu0 %1914 }
 0x41c   :  { %4311 = vpow2.f32 %v1952_v10  ;;  %v1934_v7 = vsub.f32 %v5766_v24, %v1915_v9  ;;  %v1958_v49 = vmul.f32 1.442695, %v1935_v54  ;;  %v7391_v10 = vmov 0  }
 0x41d   :  { %v5878_v41 = vpop.eup %4303  ;;  %4313 = vpow2.f32 %v1954_v21 }
 0x41e   :  { %v1956_v12 = vmul.f32 1.442695, %v1934_v7  ;;  %v1921_v1 = vpop.xlane.xlu1 %1920  ;;  %1972 = vadd.xlane.f32.xlu0 %v5876_v40  ;;  %1970 = vadd.xlane.f32.xlu1 %v5878_v41  ;;  %v5883_v48 = vpop.eup %4305 }
 0x41f   :  { %v1937_v53 = vsub.f32 %v5772_v57, %v1921_v1 }
 0x420   :  { %4315 = vpow2.f32 %v1956_v12 }
 0x421   :  { %v5885_v8 = vpop.eup %4307  ;;  %4317 = vpow2.f32 %v1958_v49  ;;  %v1962_v27 = vmul.f32 1.442695, %v1937_v53 }
 0x422   :  { %v1925_v24 = vpop.xlane.xlu1 %1924  ;;  %1974 = vadd.xlane.f32.xlu1 %v5883_v48  ;;  %1976 = vadd.xlane.f32.xlu0 %v5885_v8  ;;  %v5890_v0 = vpop.eup %4309 }
 0x423   :  { %v1939_v20 = vsub.f32 %v5780_v47, %v1925_v24  ;;  %4319 = vpow2.f32 %v1962_v27 }
 0x425   :  { %v1966_v44 = vmul.f32 1.442695, %v1939_v20 }
 0x426   :  { %v1919_v18 = vpop.xlane.xlu0 %1918  ;;  %v5892_v22 = vpop.eup %4311  ;;  %1978 = vadd.xlane.f32.xlu1 %v5890_v0 }
 0x427   :  { %v1936_v57 = vsub.f32 %v5789_v30, %v1919_v18  ;;  %1980 = vadd.xlane.f32.xlu0 %v5892_v22  ;;  %v5897_v34 = vpop.eup %4313 }
 0x429   :  { %v1960_v4 = vmul.f32 1.442695, %v1936_v57 }
 0x42a   :  { %v1923_v59 = vpop.xlane.xlu0 %1922  ;;  %v5899_v56 = vpop.eup %4315  ;;  %1982 = vadd.xlane.f32.xlu1 %v5897_v34 }
 0x42b   :  { %4321 = vpow2.f32 %v1960_v4  ;;  %v1938_v47 = vsub.f32 %v5794_v3, %v1923_v59  ;;  %1984 = vadd.xlane.f32.xlu0 %v5899_v56  ;;  %v5904_v43 = vpop.eup %4317  ;;  %v4140_v3 = vld [vmem:[%s7283_s5 + $0xa8] ss:$16 sps:$4 sm:$0xff]  }
 0x42c   :  { %4323 = vpow2.f32 %v1966_v44  ;;  %2377 = vmatpush1.bf16.msra.mxu1 %v4140_v3 }
 0x42d   :  { %v1964_v30 = vmul.f32 1.442695, %v1938_v47  ;;  %v5907_v2 = vpop.eup %4319  ;;  %2378 = vmatprep.subr.bf16.mxu1 %v4148_v46 }
 0x42e   :  { %1986 = vadd.xlane.f32.xlu1 %v5904_v43 }
 0x42f   :  { %4325 = vpow2.f32 %v1964_v30 }
 0x430   :  { %2379 = vmatpush1.bf16.msra.mxu1 %v4146_v23 }
 0x431   :  { %2380 = vmatprep.subr.bf16.mxu1 %v4154_v17 }
 0x432   :  { %1990 = vadd.xlane.f32.xlu1 %v5907_v2 }
 0x434   :  { %2381 = vmatpush1.bf16.msra.mxu1 %v4152_v58 }
 0x435   :  { %v5910_v51 = vpop.eup %4321 }
 0x436   :  { %1988 = vadd.xlane.f32.xlu0 %v5910_v51  ;;  %v5919_v31 = vpop.eup %4323 }
 0x437   :  { %1994 = vadd.xlane.f32.xlu1 %v5919_v31 }
 0x439   :  { %v5922_v19 = vpop.eup %4325 }
 0x43a   :  { %1992 = vadd.xlane.f32.xlu0 %v5922_v19 }
 0x4a7   :  { %v1969_v26 = vpop.xlane.xlu0 %1968 }
 0x4a8   :  { %4327 = vrcp.f32 %v1969_v26 }
 0x4ab   :  { %v1971_v5 = vpop.xlane.xlu1 %1970  ;;  %v1973_v11 = vpop.xlane.xlu0 %1972 }
 0x4ac   :  { %4329 = vrcp.f32 %v1971_v5 }
 0x4af   :  { %v1975_v29 = vpop.xlane.xlu1 %1974  ;;  %v1977_v35 = vpop.xlane.xlu0 %1976 }
 0x4b0   :  { %4331 = vrcp.f32 %v1975_v29 }
 0x4b1   :  { %4333 = vrcp.f32 %v1973_v11 }
 0x4b2   :  { %v4328_v32 = vpop.eup %4327 }
 0x4b3   :  { %v1979_v55 = vpop.xlane.xlu1 %1978  ;;  %v2010_v38 = vmul.f32 %v4328_v32, %v5871_v60 }
 0x4b4   :  { %4335 = vrcp.f32 %v1979_v55  ;;  %v1981_v9 = vpop.xlane.xlu0 %1980 }
 0x4b5   :  { %4337 = vrcp.f32 %v1977_v35 }
 0x4b6   :  { %v4330_v39 = vpop.eup %4329 }
 0x4b7   :  { %v2011_v14 = vmul.f32 %v4330_v39, %v5878_v41  ;;  %v1983_v37 = vpop.xlane.xlu1 %1982 }
 0x4b8   :  { %4339 = vrcp.f32 %v1983_v37  ;;  %v1985_v49 = vpop.xlane.xlu0 %1984 }
 0x4b9   :  { %v2026_v15 = vpack.c.bf16 %v2011_v14, %v2010_v38  ;;  %4341 = vrcp.f32 %v1981_v9 }
 0x4ba   :  { %v4332_v61 = vpop.eup %4331 }
 0x4bb   :  { %2296 = vmatmul.mubr.bf16.vlgmr.msra.gmra.mrb[56].mxu0 %v2026_v15  ;;  %2399 = vmatmul.mubr.bf16.vlgmr.msra.gmra.mrb[56].mxu1 %v2026_v15  ;;  %v4334_v63 = vpop.eup %4333  ;;  %v2013_v21 = vmul.f32 %v4332_v61, %v5883_v48  ;;  %v1987_v12 = vpop.xlane.xlu1 %1986 }
 0x4bc   :  { %2305 = vmatprep.mubr.bf16.mxu0 %v7391_v10  ;;  %2408 = vmatprep.mubr.bf16.mxu1 %v7391_v10  ;;  %v2012_v60 = vmul.f32 %v4334_v63, %v5876_v40  ;;  %4343 = vrcp.f32 %v1987_v12 }
 0x4bd   :  { %4345 = vrcp.f32 %v1985_v49 }
 0x4be   :  { %v2027_v54 = vpack.c.bf16 %v2013_v21, %v2012_v60  ;;  %v4336_v7 = vpop.eup %4335 }
 0x4bf   :  { %v4338_v41 = vpop.eup %4337  ;;  %v2015_v1 = vmul.f32 %v4336_v7, %v5890_v0  ;;  %v1991_v27 = vpop.xlane.xlu1 %1990 }
 0x4c0   :  { %v2014_v53 = vmul.f32 %v4338_v41, %v5885_v8  ;;  %4347 = vrcp.f32 %v1991_v27 }
 0x4c2   :  { %v2028_v48 = vpack.c.bf16 %v2015_v1, %v2014_v53  ;;  %v4340_v40 = vpop.eup %4339 }
 0x4c3   :  { %2306 = vmatmul.mubr.bf16.gmra.mrb[60].mxu0 %v2027_v54  ;;  %2409 = vmatmul.mubr.bf16.gmra.mrb[60].mxu1 %v2027_v54  ;;  %v4342_v24 = vpop.eup %4341  ;;  %v2017_v20 = vmul.f32 %v4340_v40, %v5897_v34  ;;  %v1989_v18 = vpop.xlane.xlu0 %1988 }
 0x4c4   :  { %2315 = vmatprep.mubr.bf16.mxu0 %v7391_v10  ;;  %2418 = vmatprep.mubr.bf16.mxu1 %v7391_v10  ;;  %v2016_v0 = vmul.f32 %v4342_v24, %v5892_v22  ;;  %4349 = vrcp.f32 %v1989_v18  ;;  %v1995_v44 = vpop.xlane.xlu1 %1994 }
 0x4c5   :  { %4351 = vrcp.f32 %v1995_v44 }
 0x4c6   :  { %v2029_v57 = vpack.c.bf16 %v2017_v20, %v2016_v0  ;;  %v4344_v8 = vpop.eup %4343 }
 0x4c7   :  { %v4346_v4 = vpop.eup %4345  ;;  %v2019_v59 = vmul.f32 %v4344_v8, %v5904_v43  ;;  %v1993_v47 = vpop.xlane.xlu0 %1992 }
 0x4c8   :  { %v2018_v34 = vmul.f32 %v4346_v4, %v5899_v56  ;;  %4353 = vrcp.f32 %v1993_v47 }
 0x4ca   :  { %v2030_v30 = vpack.c.bf16 %v2019_v59, %v2018_v34  ;;  %v4348_v22 = vpop.eup %4347 }
 0x4cb   :  { %2316 = vmatmul.mubr.bf16.gmra.mrb[64].mxu0 %v2028_v48  ;;  %2419 = vmatmul.mubr.bf16.gmra.mrb[64].mxu1 %v2028_v48  ;;  %v2021_v52 = vmul.f32 %v4348_v22, %v5907_v2  ;;  %v2024_v2 = vld [vmem:[%s7284_s7] sm:$0x77] }
 0x4cc   :  { %2325 = vmatprep.mubr.bf16.mxu0 %v7391_v10  ;;  %2428 = vmatprep.mubr.bf16.mxu1 %v7391_v10  ;;  %v2070_v17 = vrot.slane %v2024_v2, %v4742_v13  ;;  %v2876_v55 = vrot.slane %v2024_v2, %v4984_v33  ;;  %v2968_v61 = vrot.slane %v2024_v2, %v5128_v16 }
 0x4cd   :  { %v2972_v63 = vrot.slane %v2024_v2, %v5377_v28 }
 0x4ce   :  { %v4350_v3 = vpop.eup %4349  ;;  %v5990_v58 = vrot.slane %v2070_v17, %v4742_v13  ;;  %v6062_v47 = vrot.slane %v2876_v55, %v4984_v33 }
 0x4cf   :  { %v2020_v25 = vmul.f32 %v4350_v3, %v5910_v51  ;;  %v4352_v43 = vpop.eup %4351  ;;  %v5981_v51 = vld [vmem:[%s7284_s7 + $0x8] sm:$0x77] }
 0x4d0   :  { %v2023_v23 = vmul.f32 %v4352_v43, %v5919_v31  ;;  %v2078_v36 = vrot.slane %v5981_v51, %v4742_v13  ;;  %v2074_v31 = vrot.slane %v2024_v2, %v5374_v45  ;;  %v2884_v39 = vrot.slane %v5981_v51, %v4984_v33  ;;  %7392 = vst [vmem:[#allocation2_spill] sm:$0xff] %v6062_v47 }
 0x4d1   :  { %v2031_v6 = vpack.c.bf16 %v2021_v52, %v2020_v25  ;;  %v2888_v38 = vrot.slane %v5981_v51, %v5381_v62  ;;  %v2976_v9 = vrot.slane %v5981_v51, %v5128_v16  ;;  %v2980_v60 = vrot.slane %v5981_v51, %v5377_v28 }
 0x4d2   :  { %v4354_v56 = vpop.eup %4353  ;;  %v5993_v26 = vrot.slane %v2078_v36, %v4742_v13  ;;  %v5996_v5 = vrot.slane %v2074_v31, %v4742_v13  ;;  %v6065_v34 = vrot.slane %v2884_v39, %v4984_v33 }
 0x4d3   :  { %2326 = vmatmul.mubr.bf16.gmra.mrb[68].mxu0 %v2029_v57  ;;  %2429 = vmatmul.mubr.bf16.gmra.mrb[68].mxu1 %v2029_v57  ;;  %v2022_v46 = vmul.f32 %v4354_v56, %v5922_v19  ;;  %v2082_v19 = vrot.slane %v5981_v51, %v5374_v45  ;;  %v2880_v45 = vrot.slane %v2024_v2, %v5381_v62 }
 0x4d4   :  { %2335 = vmatprep.mubr.bf16.mxu0 %v7391_v10  ;;  %2438 = vmatprep.mubr.bf16.mxu1 %v7391_v10  ;;  %7393 = vst [vmem:[#allocation3_spill] sm:$0xff] %v6065_v34  ;;  %v6083_v2 = vrot.slane %v2972_v63, %v5128_v16  ;;  %v6092_v31 = vrot.slane %v2976_v9, %v5128_v16 }
 0x4d5   :  { %v2032_v42 = vpack.c.bf16 %v2023_v23, %v2022_v46  ;;  %v5999_v11 = vrot.slane %v2082_v19, %v4742_v13  ;;  %v6068_v25 = vrot.slane %v2880_v45, %v4984_v33  ;;  %v6095_v19 = vrot.slane %v2980_v60, %v5128_v16 }
 0x4d6   :  { %7397 = vst [vmem:[#allocation7_spill] sm:$0xff] %v6083_v2  ;;  %7398 = vst [vmem:[#allocation8_spill] sm:$0xff] %v6092_v31 }
 0x4d7   :  { %7394 = vst [vmem:[#allocation4_spill] sm:$0xff] %v6068_v25  ;;  %7399 = vst [vmem:[#allocation9_spill] sm:$0xff] %v6095_v19 }
 0x4db   :  { %2336 = vmatmul.mubr.bf16.gmra.mrb[72].mxu0 %v2030_v30  ;;  %2439 = vmatmul.mubr.bf16.gmra.mrb[72].mxu1 %v2030_v30 }
 0x4dc   :  { %2345 = vmatprep.mubr.bf16.mxu0 %v7391_v10  ;;  %2448 = vmatprep.mubr.bf16.mxu1 %v7391_v10 }
 0x4e3   :  { %2346 = vmatmul.mubr.bf16.gmra.mrb[76].mxu0 %v2031_v6  ;;  %2449 = vmatmul.mubr.bf16.gmra.mrb[76].mxu1 %v2031_v6  ;;  %v6071_v6 = vrot.slane %v2888_v38, %v4984_v33 }
 0x4e4   :  { %2355 = vmatprep.mubr.bf16.mxu0 %v7391_v10  ;;  %2458 = vmatprep.mubr.bf16.mxu1 %v7391_v10 }
 0x4e5   :  { %7395 = vst [vmem:[#allocation5_spill] sm:$0xff] %v6071_v6 }
 0x4eb   :  { %2356 = vmatmul.mubr.bf16.gmra.mrb[80].mxu0 %v2032_v42  ;;  %2459 = vmatmul.mubr.bf16.gmra.mrb[80].mxu1 %v2032_v42  ;;  %v6080_v42 = vrot.slane %v2968_v61, %v5128_v16 }
 0x4ed   :  { %7396 = vst [vmem:[#allocation6_spill] sm:$0xff] %v6080_v42 }
 0x58e   :  { %v2297_v29 = vpop.f32.mrb[56].mxu0  ;;  %v2400_v32 = vpop.f32.mrb[56].mxu1 }
 0x58f   :  { %v6008_v14 = vadd.f32 %v2297_v29, %v5990_v58  ;;  %v6011_v35 = vadd.f32 %v2400_v32, %v5993_v26  ;;  %v2299_v13 = vpop.f32.mrb[57].mxu0  ;;  %v2402_v15 = vpop.f32.mrb[57].mxu1 }
 0x590   :  { %v6016_v10 = vadd.f32 %v2299_v13, %v5996_v5  ;;  %v6019_v37 = vadd.f32 %v2402_v15, %v5999_v11  ;;  %v2301_v21 = vpop.f32.mrb[58].mxu0  ;;  %v2404_v62 = vpop.f32.mrb[58].mxu1 }
 0x591   :  { %v2605_v54 = vmul.f32 %v6008_v14, %v6008_v14  ;;  %v2607_v7 = vmul.f32 %v6011_v35, %v6011_v35  ;;  %v6030_v41 = vadd.f32 %v2301_v21, %v5990_v58  ;;  %v6033_v12 = vadd.f32 %v2404_v62, %v5993_v26  ;;  %v2303_v1 = vpop.f32.mrb[59].mxu0  ;;  %v2406_v49 = vpop.f32.mrb[59].mxu1 }
 0x592   :  { %v2606_v53 = vmul.f32 %v6016_v10, %v6016_v10  ;;  %v2608_v28 = vmul.f32 %v6019_v37, %v6019_v37  ;;  %v6040_v48 = vadd.f32 %v2303_v1, %v5996_v5  ;;  %v6043_v40 = vadd.f32 %v2406_v49, %v5999_v11 }
 0x593   :  { %v2525_v24 = vadd.f32 %v6030_v41, %v6008_v14  ;;  %v2609_v27 = vmul.f32 %v6030_v41, %v6030_v41  ;;  %v2563_v20 = vadd.f32 %v6033_v12, %v6011_v35  ;;  %v2611_v18 = vmul.f32 %v6033_v12, %v6033_v12 }
 0x594   :  { %v2544_v0 = vadd.f32 %v6040_v48, %v6016_v10  ;;  %v2610_v57 = vmul.f32 %v6040_v48, %v6040_v48  ;;  %v2582_v8 = vadd.f32 %v6043_v40, %v6019_v37  ;;  %v2612_v4 = vmul.f32 %v6043_v40, %v6043_v40 }
 0x595   :  { %v2661_v44 = vadd.f32 %v2609_v27, %v2605_v54  ;;  %v2699_v59 = vadd.f32 %v2611_v18, %v2607_v7 }
 0x596   :  { %v2680_v30 = vadd.f32 %v2610_v57, %v2606_v53  ;;  %v2718_v22 = vadd.f32 %v2612_v4, %v2608_v28  ;;  %v2307_v3 = vpop.f32.mrb[60].mxu0  ;;  %v2410_v52 = vpop.f32.mrb[60].mxu1 }
 0x597   :  { %v6074_v43 = vadd.f32 %v2307_v3, %v5990_v58  ;;  %v6077_v56 = vadd.f32 %v2410_v52, %v5993_v26  ;;  %v2309_v23 = vpop.f32.mrb[61].mxu0  ;;  %v2412_v46 = vpop.f32.mrb[61].mxu1 }
 0x598   :  { %v6086_v51 = vadd.f32 %v2309_v23, %v5996_v5  ;;  %v6089_v33 = vadd.f32 %v2412_v46, %v5999_v11  ;;  %v2311_v17 = vpop.f32.mrb[62].mxu0  ;;  %v2414_v36 = vpop.f32.mrb[62].mxu1 }
 0x599   :  { %v2526_v29 = vadd.f32 %v2525_v24, %v6074_v43  ;;  %v2613_v32 = vmul.f32 %v6074_v43, %v6074_v43  ;;  %v2564_v55 = vadd.f32 %v2563_v20, %v6077_v56  ;;  %v2615_v39 = vmul.f32 %v6077_v56, %v6077_v56  ;;  %v2313_v45 = vpop.f32.mrb[63].mxu0  ;;  %v2416_v38 = vpop.f32.mrb[63].mxu1 }
 0x59a   :  { %v2545_v13 = vadd.f32 %v2544_v0, %v6086_v51  ;;  %v2614_v15 = vmul.f32 %v6086_v51, %v6086_v51  ;;  %v2583_v16 = vadd.f32 %v2582_v8, %v6089_v33  ;;  %v2616_v61 = vmul.f32 %v6089_v33, %v6089_v33 }
 0x59b   :  { %v2662_v63 = vadd.f32 %v2661_v44, %v2613_v32  ;;  %v2700_v21 = vadd.f32 %v2699_v59, %v2615_v39  ;;  %v6110_v62 = vadd.f32 %v2311_v17, %v5990_v58  ;;  %v6113_v9 = vadd.f32 %v2414_v36, %v5993_v26 }
 0x59c   :  { %v2681_v60 = vadd.f32 %v2680_v30, %v2614_v15  ;;  %v2719_v54 = vadd.f32 %v2718_v22, %v2616_v61  ;;  %v6116_v7 = vadd.f32 %v2313_v45, %v5996_v5  ;;  %v6119_v1 = vadd.f32 %v2416_v38, %v5999_v11 }
 0x59d   :  { %v2527_v49 = vadd.f32 %v2526_v29, %v6110_v62  ;;  %v2617_v53 = vmul.f32 %v6110_v62, %v6110_v62  ;;  %v2565_v28 = vadd.f32 %v2564_v55, %v6113_v9  ;;  %v2619_v24 = vmul.f32 %v6113_v9, %v6113_v9 }
 0x59e   :  { %v2546_v27 = vadd.f32 %v2545_v13, %v6116_v7  ;;  %v2618_v20 = vmul.f32 %v6116_v7, %v6116_v7  ;;  %v2584_v18 = vadd.f32 %v2583_v16, %v6119_v1  ;;  %v2620_v0 = vmul.f32 %v6119_v1, %v6119_v1  ;;  %v2317_v57 = vpop.f32.mrb[64].mxu0  ;;  %v2420_v8 = vpop.f32.mrb[64].mxu1 }
 0x59f   :  { %v2663_v4 = vadd.f32 %v2662_v63, %v2617_v53  ;;  %v2701_v44 = vadd.f32 %v2700_v21, %v2619_v24  ;;  %v6134_v59 = vadd.f32 %v2317_v57, %v5990_v58  ;;  %v6137_v30 = vadd.f32 %v2420_v8, %v5993_v26  ;;  %v2319_v22 = vpop.f32.mrb[65].mxu0  ;;  %v2422_v3 = vpop.f32.mrb[65].mxu1 }
 0x5a0   :  { %v2682_v52 = vadd.f32 %v2681_v60, %v2618_v20  ;;  %v2720_v23 = vadd.f32 %v2719_v54, %v2620_v0  ;;  %v6140_v46 = vadd.f32 %v2319_v22, %v5996_v5  ;;  %v6143_v17 = vadd.f32 %v2422_v3, %v5999_v11  ;;  %v2321_v36 = vpop.f32.mrb[66].mxu0  ;;  %v2424_v29 = vpop.f32.mrb[66].mxu1 }
 0x5a1   :  { %v2528_v32 = vadd.f32 %v2527_v49, %v6134_v59  ;;  %v2621_v55 = vmul.f32 %v6134_v59, %v6134_v59  ;;  %v2566_v39 = vadd.f32 %v2565_v28, %v6137_v30  ;;  %v2623_v45 = vmul.f32 %v6137_v30, %v6137_v30  ;;  %v2323_v38 = vpop.f32.mrb[67].mxu0  ;;  %v2426_v13 = vpop.f32.mrb[67].mxu1 }
 0x5a2   :  { %v2547_v15 = vadd.f32 %v2546_v27, %v6140_v46  ;;  %v2622_v16 = vmul.f32 %v6140_v46, %v6140_v46  ;;  %v2585_v61 = vadd.f32 %v2584_v18, %v6143_v17  ;;  %v2624_v63 = vmul.f32 %v6143_v17, %v6143_v17 }
 0x5a3   :  { %v2664_v21 = vadd.f32 %v2663_v4, %v2621_v55  ;;  %v2702_v60 = vadd.f32 %v2701_v44, %v2623_v45  ;;  %v6158_v54 = vadd.f32 %v2321_v36, %v5990_v58  ;;  %v6161_v49 = vadd.f32 %v2424_v29, %v5993_v26 }
 0x5a4   :  { %v2683_v53 = vadd.f32 %v2682_v52, %v2622_v16  ;;  %v2721_v28 = vadd.f32 %v2720_v23, %v2624_v63  ;;  %v6164_v24 = vadd.f32 %v2323_v38, %v5996_v5  ;;  %v6167_v27 = vadd.f32 %v2426_v13, %v5999_v11 }
 0x5a5   :  { %v2529_v20 = vadd.f32 %v2528_v32, %v6158_v54  ;;  %v2625_v18 = vmul.f32 %v6158_v54, %v6158_v54  ;;  %v2567_v0 = vadd.f32 %v2566_v39, %v6161_v49  ;;  %v2627_v57 = vmul.f32 %v6161_v49, %v6161_v49 }
 0x5a6   :  { %v2548_v8 = vadd.f32 %v2547_v15, %v6164_v24  ;;  %v2626_v4 = vmul.f32 %v6164_v24, %v6164_v24  ;;  %v2586_v44 = vadd.f32 %v2585_v61, %v6167_v27  ;;  %v2628_v22 = vmul.f32 %v6167_v27, %v6167_v27  ;;  %v2327_v3 = vpop.f32.mrb[68].mxu0  ;;  %v2430_v52 = vpop.f32.mrb[68].mxu1 }
 0x5a7   :  { %v2665_v23 = vadd.f32 %v2664_v21, %v2625_v18  ;;  %v2703_v36 = vadd.f32 %v2702_v60, %v2627_v57  ;;  %v6182_v29 = vadd.f32 %v2327_v3, %v5990_v58  ;;  %v6185_v32 = vadd.f32 %v2430_v52, %v5993_v26  ;;  %v2329_v55 = vpop.f32.mrb[69].mxu0  ;;  %v2432_v39 = vpop.f32.mrb[69].mxu1 }
 0x5a8   :  { %v2684_v45 = vadd.f32 %v2683_v53, %v2626_v4  ;;  %v2722_v38 = vadd.f32 %v2721_v28, %v2628_v22  ;;  %v6188_v13 = vadd.f32 %v2329_v55, %v5996_v5  ;;  %v6191_v15 = vadd.f32 %v2432_v39, %v5999_v11  ;;  %v2331_v16 = vpop.f32.mrb[70].mxu0  ;;  %v2434_v61 = vpop.f32.mrb[70].mxu1 }
 0x5a9   :  { %7400 = vst [vmem:[#allocation10_spill] sm:$0xff] %v6182_v29  ;;  %7401 = vst [vmem:[#allocation11_spill] sm:$0xff] %v6185_v32  ;;  %v2530_v63 = vadd.f32 %v2529_v20, %v6182_v29  ;;  %v2629_v21 = vmul.f32 %v6182_v29, %v6182_v29  ;;  %v2568_v60 = vadd.f32 %v2567_v0, %v6185_v32  ;;  %v2333_v53 = vpop.f32.mrb[71].mxu0  ;;  %v2436_v28 = vpop.f32.mrb[71].mxu1 }
 0x5aa   :  { %7402 = vst [vmem:[#allocation12_spill] sm:$0xff] %v6188_v13  ;;  %7403 = vst [vmem:[#allocation13_spill] sm:$0xff] %v6191_v15  ;;  %v2631_v18 = vmul.f32 %v6185_v32, %v6185_v32  ;;  %v2549_v57 = vadd.f32 %v2548_v8, %v6188_v13  ;;  %v2630_v4 = vmul.f32 %v6188_v13, %v6188_v13 }
 0x5ab   :  { %v2587_v22 = vadd.f32 %v2586_v44, %v6191_v15  ;;  %v2632_v20 = vmul.f32 %v6191_v15, %v6191_v15  ;;  %v2666_v3 = vadd.f32 %v2665_v23, %v2629_v21  ;;  %v6206_v55 = vadd.f32 %v2331_v16, %v5990_v58 }
 0x5ac   :  { %v2704_v52 = vadd.f32 %v2703_v36, %v2631_v18  ;;  %v6209_v0 = vadd.f32 %v2434_v61, %v5993_v26  ;;  %v2685_v39 = vadd.f32 %v2684_v45, %v2630_v4  ;;  %v6212_v8 = vadd.f32 %v2333_v53, %v5996_v5 }
 0x5ad   :  { %v2723_v19 = vadd.f32 %v2722_v38, %v2632_v20  ;;  %v6215_v2 = vadd.f32 %v2436_v28, %v5999_v11  ;;  %v2531_v44 = vadd.f32 %v2530_v63, %v6206_v55  ;;  %v2633_v23 = vmul.f32 %v6206_v55, %v6206_v55 }
 0x5ae   :  { %v2569_v36 = vadd.f32 %v2568_v60, %v6209_v0  ;;  %v2635_v16 = vmul.f32 %v6209_v0, %v6209_v0  ;;  %v2550_v61 = vadd.f32 %v2549_v57, %v6212_v8  ;;  %v2634_v45 = vmul.f32 %v6212_v8, %v6212_v8  ;;  %v2337_v18 = vpop.f32.mrb[72].mxu0  ;;  %v2440_v63 = vpop.f32.mrb[72].mxu1 }
 0x5af   :  { %7404 = vst [vmem:[#allocation14_spill] sm:$0xff] %v6215_v2  ;;  %v2588_v38 = vadd.f32 %v2587_v22, %v6215_v2  ;;  %v2636_v21 = vmul.f32 %v6215_v2, %v6215_v2  ;;  %v2667_v53 = vadd.f32 %v2666_v3, %v2633_v23  ;;  %v6230_v4 = vadd.f32 %v2337_v18, %v5990_v58  ;;  %v2339_v20 = vpop.f32.mrb[73].mxu0  ;;  %v2442_v57 = vpop.f32.mrb[73].mxu1 }
 0x5b0   :  { %v2705_v28 = vadd.f32 %v2704_v52, %v2635_v16  ;;  %v6233_v60 = vadd.f32 %v2440_v63, %v5993_v26  ;;  %v2686_v31 = vadd.f32 %v2685_v39, %v2634_v45  ;;  %v6236_v42 = vadd.f32 %v2339_v20, %v5996_v5  ;;  %v2341_v25 = vpop.f32.mrb[74].mxu0  ;;  %v2444_v34 = vpop.f32.mrb[74].mxu1 }
 0x5b1   :  { %7405 = vst [vmem:[#allocation15_spill] sm:$0xff] %v6230_v4  ;;  %v2724_v6 = vadd.f32 %v2723_v19, %v2636_v21  ;;  %v6239_v22 = vadd.f32 %v2442_v57, %v5999_v11  ;;  %v2532_v3 = vadd.f32 %v2531_v44, %v6230_v4  ;;  %v2637_v52 = vmul.f32 %v6230_v4, %v6230_v4  ;;  %v2343_v39 = vpop.f32.mrb[75].mxu0  ;;  %v2446_v19 = vpop.f32.mrb[75].mxu1 }
 0x5b2   :  { %7406 = vst [vmem:[#allocation16_spill] sm:$0xff] %v6233_v60  ;;  %7407 = vst [vmem:[#allocation17_spill] sm:$0xff] %v6236_v42  ;;  %v2570_v23 = vadd.f32 %v2569_v36, %v6233_v60  ;;  %v2639_v16 = vmul.f32 %v6233_v60, %v6233_v60  ;;  %v2551_v45 = vadd.f32 %v2550_v61, %v6236_v42 }
 0x5b3   :  { %7408 = vst [vmem:[#allocation18_spill] sm:$0xff] %v6239_v22  ;;  %v2638_v21 = vmul.f32 %v6236_v42, %v6236_v42  ;;  %v2589_v18 = vadd.f32 %v2588_v38, %v6239_v22  ;;  %v2640_v44 = vmul.f32 %v6239_v22, %v6239_v22  ;;  %v2668_v63 = vadd.f32 %v2667_v53, %v2637_v52 }
 0x5b4   :  { %v2706_v20 = vadd.f32 %v2705_v28, %v2639_v16  ;;  %v6254_v57 = vadd.f32 %v2341_v25, %v5990_v58  ;;  %v6257_v36 = vadd.f32 %v2444_v34, %v5993_v26  ;;  %v6260_v61 = vadd.f32 %v2343_v39, %v5996_v5 }
 0x5b5   :  { %v2687_v47 = vadd.f32 %v2686_v31, %v2638_v21  ;;  %v2725_v60 = vadd.f32 %v2724_v6, %v2640_v44  ;;  %v6263_v42 = vadd.f32 %v2446_v19, %v5999_v11 }
 0x5b6   :  { %7409 = vst [vmem:[#allocation19_spill] sm:$0xff] %v6254_v57  ;;  %7410 = vst [vmem:[#allocation20_spill] sm:$0xff] %v6257_v36  ;;  %v2533_v38 = vadd.f32 %v2532_v3, %v6254_v57  ;;  %v2641_v53 = vmul.f32 %v6254_v57, %v6254_v57  ;;  %v2571_v28 = vadd.f32 %v2570_v23, %v6257_v36  ;;  %v2347_v16 = vpop.f32.mrb[76].mxu0  ;;  %v2450_v3 = vpop.f32.mrb[76].mxu1 }
 0x5b7   :  { %7411 = vst [vmem:[#allocation21_spill] sm:$0xff] %v6260_v61  ;;  %7412 = vst [vmem:[#allocation22_spill] sm:$0xff] %v6263_v42  ;;  %v2643_v25 = vmul.f32 %v6257_v36, %v6257_v36  ;;  %v2552_v34 = vadd.f32 %v2551_v45, %v6260_v61  ;;  %v2642_v6 = vmul.f32 %v6260_v61, %v6260_v61  ;;  %v2349_v44 = vpop.f32.mrb[77].mxu0  ;;  %v2452_v45 = vpop.f32.mrb[77].mxu1 }
 0x5b8   :  { %v2590_v31 = vadd.f32 %v2589_v18, %v6263_v42  ;;  %v2644_v52 = vmul.f32 %v6263_v42, %v6263_v42  ;;  %v2669_v39 = vadd.f32 %v2668_v63, %v2641_v53  ;;  %v6278_v21 = vadd.f32 %v2347_v16, %v5990_v58  ;;  %v2351_v42 = vpop.f32.mrb[78].mxu0  ;;  %v2454_v61 = vpop.f32.mrb[78].mxu1 }
 0x5b9   :  { %v2707_v19 = vadd.f32 %v2706_v20, %v2643_v25  ;;  %v6281_v23 = vadd.f32 %v2450_v3, %v5993_v26  ;;  %v2688_v22 = vadd.f32 %v2687_v47, %v2642_v6  ;;  %v6284_v36 = vadd.f32 %v2349_v44, %v5996_v5  ;;  %v2353_v47 = vpop.f32.mrb[79].mxu0 }
 0x5ba   :  { %7413 = vst [vmem:[#allocation23_spill] sm:$0xff] %v6278_v21  ;;  %v2726_v4 = vadd.f32 %v2725_v60, %v2644_v52  ;;  %v6287_v18 = vadd.f32 %v2452_v45, %v5999_v11  ;;  %v2534_v63 = vadd.f32 %v2533_v38, %v6278_v21  ;;  %v2645_v20 = vmul.f32 %v6278_v21, %v6278_v21  ;;  %v2456_v60 = vpop.f32.mrb[79].mxu1 }
 0x5bb   :  { %7414 = vst [vmem:[#allocation24_spill] sm:$0xff] %v6281_v23  ;;  %7415 = vst [vmem:[#allocation25_spill] sm:$0xff] %v6284_v36  ;;  %v2572_v53 = vadd.f32 %v2571_v28, %v6281_v23  ;;  %v2647_v25 = vmul.f32 %v6281_v23, %v6281_v23  ;;  %v2553_v6 = vadd.f32 %v2552_v34, %v6284_v36 }
 0x5bc   :  { %7416 = vst [vmem:[#allocation26_spill] sm:$0xff] %v6287_v18  ;;  %v2646_v52 = vmul.f32 %v6284_v36, %v6284_v36  ;;  %v2591_v16 = vadd.f32 %v2590_v31, %v6287_v18  ;;  %v2648_v38 = vmul.f32 %v6287_v18, %v6287_v18  ;;  %v2670_v3 = vadd.f32 %v2669_v39, %v2645_v20 }
 0x5bd   :  { %v2708_v44 = vadd.f32 %v2707_v19, %v2647_v25  ;;  %v6302_v45 = vadd.f32 %v2351_v42, %v5990_v58  ;;  %v6305_v28 = vadd.f32 %v2454_v61, %v5993_v26  ;;  %v6308_v34 = vadd.f32 %v2353_v47, %v5996_v5 }
 0x5be   :  { %v2689_v23 = vadd.f32 %v2688_v22, %v2646_v52  ;;  %v2727_v21 = vadd.f32 %v2726_v4, %v2648_v38  ;;  %v6311_v36 = vadd.f32 %v2456_v60, %v5999_v11  ;;  %v2357_v25 = vpop.f32.mrb[80].mxu0 }
 0x5bf   :  { %7417 = vst [vmem:[#allocation27_spill] sm:$0xff] %v6302_v45  ;;  %7418 = vst [vmem:[#allocation28_spill] sm:$0xff] %v6305_v28  ;;  %v2535_v31 = vadd.f32 %v2534_v63, %v6302_v45  ;;  %v2649_v39 = vmul.f32 %v6302_v45, %v6302_v45  ;;  %v2573_v19 = vadd.f32 %v2572_v53, %v6305_v28  ;;  %v2460_v63 = vpop.f32.mrb[80].mxu1  ;;  %v2359_v38 = vpop.f32.mrb[81].mxu0 }
 0x5c0   :  { %7419 = vst [vmem:[#allocation29_spill] sm:$0xff] %v6308_v34  ;;  %7420 = vst [vmem:[#allocation30_spill] sm:$0xff] %v6311_v36  ;;  %v2651_v42 = vmul.f32 %v6305_v28, %v6305_v28  ;;  %v2554_v61 = vadd.f32 %v2553_v6, %v6308_v34  ;;  %v2650_v4 = vmul.f32 %v6308_v34, %v6308_v34  ;;  %v2462_v6 = vpop.f32.mrb[81].mxu1 }
 0x5c1   :  { %v2592_v22 = vadd.f32 %v2591_v16, %v6311_v36  ;;  %v2652_v20 = vmul.f32 %v6311_v36, %v6311_v36  ;;  %v2671_v47 = vadd.f32 %v2670_v3, %v2649_v39  ;;  %v6326_v52 = vadd.f32 %v2357_v25, %v5990_v58  ;;  %v2361_v36 = vpop.f32.mrb[82].mxu0  ;;  %v2464_v45 = vpop.f32.mrb[82].mxu1 }
 0x5c2   :  { %v2709_v60 = vadd.f32 %v2708_v44, %v2651_v42  ;;  %v6329_v53 = vadd.f32 %v2460_v63, %v5993_v26  ;;  %v2690_v18 = vadd.f32 %v2689_v23, %v2650_v4  ;;  %v6332_v34 = vadd.f32 %v2359_v38, %v5996_v5  ;;  %v2466_v42 = vpop.f32.mrb[83].mxu1 }
 0x5c3   :  { %7421 = vst [vmem:[#allocation31_spill] sm:$0xff] %v6326_v52  ;;  %v2728_v28 = vadd.f32 %v2727_v21, %v2652_v20  ;;  %v6335_v16 = vadd.f32 %v2462_v6, %v5999_v11  ;;  %v2517_v3 = vmul.f32 %v5289_v50, %v6326_v52  ;;  %v6342_v39 = vadd.f32 %v2361_v36, %v5990_v58  ;;  %v2363_v21 = vpop.f32.mrb[83].mxu0 }
 0x5c4   :  { %7422 = vst [vmem:[#allocation32_spill] sm:$0xff] %v6329_v53  ;;  %7423 = vst [vmem:[#allocation33_spill] sm:$0xff] %v6332_v34  ;;  %v2519_v44 = vmul.f32 %v5289_v50, %v6329_v53  ;;  %v6345_v23 = vadd.f32 %v2464_v45, %v5993_v26  ;;  %v2518_v4 = vmul.f32 %v5289_v50, %v6332_v34 }
 0x5c5   :  { %7424 = vst [vmem:[#allocation34_spill] sm:$0xff] %v6335_v16  ;;  %v2520_v20 = vmul.f32 %v5289_v50, %v6335_v16  ;;  %v6352_v25 = vadd.f32 %v2363_v21, %v5996_v5  ;;  %v6355_v63 = vadd.f32 %v2466_v42, %v5999_v11  ;;  %v2536_v38 = vadd.f32 %v2535_v31, %v2517_v3 }
 0x5c6   :  { %v2653_v58 = vmul.f32 %v2517_v3, %v2517_v3  ;;  %v2574_v36 = vadd.f32 %v2573_v19, %v2519_v44  ;;  %v2655_v6 = vmul.f32 %v2519_v44, %v2519_v44  ;;  %v2555_v26 = vadd.f32 %v2554_v61, %v2518_v4 }
 0x5c7   :  { %v2654_v45 = vmul.f32 %v2518_v4, %v2518_v4  ;;  %v2593_v53 = vadd.f32 %v2592_v22, %v2520_v20  ;;  %v2656_v52 = vmul.f32 %v2520_v20, %v2520_v20  ;;  %v2521_v34 = vmul.f32 0.0, %v6342_v39 }
 0x5c8   :  { %v2672_v57 = vadd.f32 %v2671_v47, %v2653_v58  ;;  %v2710_v15 = vadd.f32 %v2709_v60, %v2655_v6  ;;  %v2523_v50 = vmul.f32 0.0, %v6345_v23  ;;  %v2522_v21 = vmul.f32 0.0, %v6352_v25 }
 0x5c9   :  { %v2691_v16 = vadd.f32 %v2690_v18, %v2654_v45  ;;  %v2729_v5 = vadd.f32 %v2728_v28, %v2656_v52  ;;  %v2524_v11 = vmul.f32 0.0, %v6355_v63  ;;  %v2537_v31 = vadd.f32 %v2536_v38, %v2521_v34 }
 0x5ca   :  { %v2657_v3 = vmul.f32 %v2521_v34, %v2521_v34  ;;  %v2575_v19 = vadd.f32 %v2574_v36, %v2523_v50  ;;  %v2659_v44 = vmul.f32 %v2523_v50, %v2523_v50  ;;  %v2556_v61 = vadd.f32 %v2555_v26, %v2522_v21 }
 0x5cb   :  { %v2658_v42 = vmul.f32 %v2522_v21, %v2522_v21  ;;  %v2594_v22 = vadd.f32 %v2593_v53, %v2524_v11  ;;  %v2660_v4 = vmul.f32 %v2524_v11, %v2524_v11  ;;  %v2538_v47 = vrot.slane %v2537_v31, 4 }
 0x5cc   :  { %v2673_v60 = vadd.f32 %v2672_v57, %v2657_v3  ;;  %v2576_v20 = vrot.slane %v2575_v19, 4  ;;  %v2711_v58 = vadd.f32 %v2710_v15, %v2659_v44  ;;  %v2557_v6 = vrot.slane %v2556_v61, 4 }
 0x5cd   :  { %v2692_v32 = vadd.f32 %v2691_v16, %v2658_v42  ;;  %v2595_v18 = vrot.slane %v2594_v22, 4  ;;  %v2730_v28 = vadd.f32 %v2729_v5, %v2660_v4  ;;  %v2539_v52 = vadd.f32 %v2538_v47, %v2537_v31 }
 0x5ce   :  { %v2674_v45 = vrot.slane %v2673_v60, 4  ;;  %v2577_v13 = vadd.f32 %v2576_v20, %v2575_v19  ;;  %v2712_v29 = vrot.slane %v2711_v58, 4  ;;  %v2558_v38 = vadd.f32 %v2557_v6, %v2556_v61 }
 0x5cf   :  { %v2693_v34 = vrot.slane %v2692_v32, 4  ;;  %v2596_v36 = vadd.f32 %v2595_v18, %v2594_v22  ;;  %v2731_v50 = vrot.slane %v2730_v28, 4  ;;  %v2540_v26 = vrot.slane %v2539_v52, 2 }
 0x5d0   :  { %v2675_v21 = vadd.f32 %v2674_v45, %v2673_v60  ;;  %v2578_v53 = vrot.slane %v2577_v13, 2  ;;  %v2713_v11 = vadd.f32 %v2712_v29, %v2711_v58  ;;  %v2559_v2 = vrot.slane %v2558_v38, 2 }
 0x5d1   :  { %v2694_v57 = vadd.f32 %v2693_v34, %v2692_v32  ;;  %v2597_v3 = vrot.slane %v2596_v36, 2  ;;  %v2732_v15 = vadd.f32 %v2731_v50, %v2730_v28  ;;  %v2541_v44 = vadd.f32 %v2540_v26, %v2539_v52 }
 0x5d2   :  { %v2676_v16 = vrot.slane %v2675_v21, 2  ;;  %v2579_v42 = vadd.f32 %v2578_v53, %v2577_v13  ;;  %v2714_v5 = vrot.slane %v2713_v11, 2  ;;  %v2560_v31 = vadd.f32 %v2559_v2, %v2558_v38 }
 0x5d3   :  { %v2695_v4 = vrot.slane %v2694_v57, 2  ;;  %v2598_v19 = vadd.f32 %v2597_v3, %v2596_v36  ;;  %v2733_v47 = vrot.slane %v2732_v15, 2  ;;  %v2542_v61 = vrot.slane %v2541_v44, 1 }
 0x5d4   :  { %v2677_v20 = vadd.f32 %v2676_v16, %v2675_v21  ;;  %v2580_v22 = vrot.slane %v2579_v42, 1  ;;  %v2715_v6 = vadd.f32 %v2714_v5, %v2713_v11  ;;  %v2561_v18 = vrot.slane %v2560_v31, 1 }
 0x5d5   :  { %v2696_v60 = vadd.f32 %v2695_v4, %v2694_v57  ;;  %v2599_v45 = vrot.slane %v2598_v19, 1  ;;  %v2734_v29 = vadd.f32 %v2733_v47, %v2732_v15  ;;  %v2543_v58 = vadd.f32 %v2542_v61, %v2541_v44 }
 0x5d6   :  { %v2678_v32 = vrot.slane %v2677_v20, 1  ;;  %v2581_v34 = vadd.f32 %v2580_v22, %v2579_v42  ;;  %v2716_v28 = vrot.slane %v2715_v6, 1  ;;  %v2562_v52 = vadd.f32 %v2561_v18, %v2560_v31 }
 0x5d7   :  { %v2697_v50 = vrot.slane %v2696_v60, 1  ;;  %v2600_v13 = vadd.f32 %v2599_v45, %v2598_v19  ;;  %v2735_v26 = vrot.slane %v2734_v29, 1  ;;  %v6361_v2 = vmul.f32 0.01, %v2543_v58 }
 0x5d8   :  { %v2679_v38 = vadd.f32 %v2678_v32, %v2677_v20  ;;  %v6363_v36 = vmul.f32 0.01, %v2581_v34  ;;  %v2717_v21 = vadd.f32 %v2716_v28, %v2715_v6  ;;  %v6365_v53 = vmul.f32 0.01, %v2562_v52 }
 0x5d9   :  { %v2698_v11 = vadd.f32 %v2697_v50, %v2696_v60  ;;  %v6367_v57 = vmul.f32 0.01, %v2600_v13  ;;  %v2736_v3 = vadd.f32 %v2735_v26, %v2734_v29  ;;  %v2741_v44 = vmul.f32 %v6361_v2, %v6361_v2 }
 0x5da   :  { %v2737_v15 = vmul.f32 0.01, %v2679_v38  ;;  %v2739_v42 = vmul.f32 0.01, %v2717_v21  ;;  %v2743_v5 = vmul.f32 %v6363_v36, %v6363_v36  ;;  %v2742_v19 = vmul.f32 %v6365_v53, %v6365_v53 }
 0x5db   :  { %v2738_v4 = vmul.f32 0.01, %v2698_v11  ;;  %v2740_v20 = vmul.f32 0.01, %v2736_v3  ;;  %v2744_v22 = vmul.f32 %v6367_v57, %v6367_v57  ;;  %v2753_v13 = vsub.f32 %v6008_v14, %v6361_v2 }
 0x5dc   :  { %v2745_v47 = vsub.f32 %v2737_v15, %v2741_v44  ;;  %v2747_v6 = vsub.f32 %v2739_v42, %v2743_v5  ;;  %v2755_v11 = vsub.f32 %v6011_v35, %v6363_v36  ;;  %v2765_v42 = vsub.f32 %v6110_v62, %v6361_v2 }
 0x5dd   :  { %v2746_v18 = vsub.f32 %v2738_v4, %v2742_v19  ;;  %v2748_v58 = vsub.f32 %v2740_v20, %v2744_v22  ;;  %v2767_v4 = vsub.f32 %v6113_v9, %v6363_v36  ;;  %v7436_v22 = vld [vmem:[#allocation16_spill] sm:$0xff]  ;;  %v7446_v60 = vsub.f32 %v6342_v39, %v6361_v2 }
 0x5de   :  { %v2749_v29 = vmax.f32 %v2745_v47, 0.0  ;;  %v2751_v28 = vmax.f32 %v2747_v6, 0.0  ;;  %v7435_v6 = vld [vmem:[#allocation17_spill] sm:$0xff]  ;;  %v7447_v19 = vsub.f32 %v6030_v41, %v6361_v2  ;;  %v7448_v50 = vsub.f32 %v6345_v23, %v6363_v36 }
 0x5df   :  { %v2750_v52 = vmax.f32 %v2746_v18, 0.0  ;;  %v2752_v38 = vmax.f32 %v2748_v58, 0.0  ;;  %v7426_v58 = vld [vmem:[#allocation10_spill] sm:$0xff]  ;;  %v7434_v18 = vld [vmem:[#allocation15_spill] sm:$0xff]  ;;  %v7449_v39 = vsub.f32 %v6033_v12, %v6363_v36  ;;  %v7452_v35 = vsub.f32 %v6352_v25, %v6365_v53 }
 0x5e0   :  { %v2809_v26 = vadd.f32 1e-05, %v2749_v29  ;;  %v2811_v3 = vadd.f32 1e-05, %v2751_v28  ;;  %v7427_v28 = vld [vmem:[#allocation12_spill] sm:$0xff]  ;;  %v7433_v29 = vld [vmem:[#allocation22_spill] sm:$0xff]  ;;  %v7458_v25 = vsub.f32 %v6043_v40, %v6367_v57 }
 0x5e1   :  { %v2810_v15 = vadd.f32 1e-05, %v2750_v52  ;;  %v2812_v5 = vadd.f32 1e-05, %v2752_v38  ;;  %v7428_v52 = vld [vmem:[#allocation11_spill] sm:$0xff]  ;;  %v7464_v40 = vld [vmem:[#allocation8_spill] sm:$0xff] }
 0x5e2   :  { %4355 = vrsqrt.f32 %v2809_v26  ;;  %v7429_v26 = vld [vmem:[#allocation13_spill] sm:$0xff]  ;;  %v7430_v38 = vld [vmem:[#allocation19_spill] sm:$0xff] }
 0x5e3   :  { %4357 = vrsqrt.f32 %v2811_v3  ;;  %v7431_v3 = vld [vmem:[#allocation21_spill] sm:$0xff] }
 0x5e4   :  { %4359 = vrsqrt.f32 %v2810_v15  ;;  %v7425_v15 = vld [vmem:[#allocation14_spill] sm:$0xff] }
 0x5e5   :  { %4361 = vrsqrt.f32 %v2812_v5  ;;  %v7432_v5 = vld [vmem:[#allocation20_spill] sm:$0xff] }
 0x5ec   :  { %v6473_v61 = vpop.eup %4355 }
 0x5ed   :  { %v6483_v16 = vpop.eup %4357  ;;  %v2869_v32 = vmul.f32 %v6473_v61, %v7446_v60  ;;  %v2821_v14 = vmul.f32 %v6473_v61, %v7447_v19  ;;  %v2817_v44 = vmul.f32 %v6473_v61, %v2753_v13  ;;  %v2829_v34 = vmul.f32 %v6473_v61, %v2765_v42  ;;  %v7450_v13 = vld [vmem:[#allocation2_spill] sm:$0xff] }
 0x5ee   :  { %v6495_v21 = vpop.eup %4359  ;;  %v2871_v45 = vmul.f32 %v6483_v16, %v7448_v50  ;;  %v2823_v60 = vmul.f32 %v6483_v16, %v7449_v39  ;;  %v2819_v41 = vmul.f32 %v6483_v16, %v2755_v11  ;;  %v2831_v19 = vmul.f32 %v6483_v16, %v2767_v4  ;;  %v7454_v11 = vld [vmem:[#allocation3_spill] sm:$0xff] }
 0x5ef   :  { %v6507_v31 = vpop.eup %4361  ;;  %v6510_v42 = vmul.f32 %v7450_v13, %v2869_v32  ;;  %v2870_v23 = vmul.f32 %v6495_v21, %v7452_v35  ;;  %v7453_v50 = vsub.f32 %v6040_v48, %v6365_v53  ;;  %v2913_v39 = vmul.f32 %v7450_v13, %v2821_v14 }
 0x5f0   :  { %v6522_v47 = vmul.f32 %v7454_v11, %v2871_v45  ;;  %v7456_v4 = vsub.f32 %v6355_v63, %v6367_v57  ;;  %v2824_v35 = vmul.f32 %v6507_v31, %v7458_v25  ;;  %v2915_v48 = vmul.f32 %v7454_v11, %v2823_v60  ;;  %v7461_v45 = vld [vmem:[#allocation6_spill] sm:$0xff]  ;;  %v7466_v25 = vld [vmem:[#allocation7_spill] sm:$0xff] }
 0x5f1   :  { %7451 = vst [vmem:[#allocation14_spill] sm:$0xff] %v6510_v42  ;;  %v2822_v12 = vmul.f32 %v6495_v21, %v7453_v50  ;;  %v7459_v42 = vld [vmem:[#allocation4_spill] sm:$0xff]  ;;  %v7462_v63 = vsub.f32 %v6016_v10, %v6365_v53  ;;  %v7465_v60 = vsub.f32 %v6019_v37, %v6367_v57  ;;  %v2911_v10 = vmul.f32 %v7454_v11, %v2819_v41 }
 0x5f2   :  { %7455 = vst [vmem:[#allocation10_spill] sm:$0xff] %v6522_v47  ;;  %v6528_v32 = vmul.f32 %v6507_v31, %v7456_v4  ;;  %v6536_v50 = vmul.f32 %v7459_v42, %v2870_v23  ;;  %v6540_v47 = vadd.f32 %v7461_v45, %v2913_v39  ;;  %v6548_v20 = vadd.f32 %v7464_v40, %v2915_v48 }
 0x5f3   :  { %v2914_v14 = vmul.f32 %v7459_v42, %v2822_v12  ;;  %v2818_v4 = vmul.f32 %v6495_v21, %v7462_v63  ;;  %v2820_v23 = vmul.f32 %v6507_v31, %v7465_v60  ;;  %v2909_v12 = vmul.f32 %v7450_v13, %v2817_v44  ;;  %v7469_v63 = vld [vmem:[#allocation9_spill] sm:$0xff] }
 0x5f4   :  { %7457 = vst [vmem:[#allocation12_spill] sm:$0xff] %v6528_v32  ;;  %7460 = vst [vmem:[#allocation11_spill] sm:$0xff] %v6536_v50  ;;  %v7463_v32 = vld [vmem:[#allocation5_spill] sm:$0xff]  ;;  %v7470_v44 = vsub.f32 %v6119_v1, %v6367_v57  ;;  %v2923_v1 = vmul.f32 %v7454_v11, %v2831_v19 }
 0x5f5   :  { %v2916_v62 = vmul.f32 %v7463_v32, %v2824_v35  ;;  %v6556_v39 = vadd.f32 %v7466_v25, %v2914_v14  ;;  %v2910_v50 = vmul.f32 %v7459_v42, %v2818_v4  ;;  %v7468_v35 = vsub.f32 %v6116_v7, %v6365_v53 }
 0x5f6   :  { %v2912_v37 = vmul.f32 %v7463_v32, %v2820_v23  ;;  %v6569_v60 = vadd.f32 %v7461_v45, %v2909_v12  ;;  %v2832_v14 = vmul.f32 %v6507_v31, %v7470_v44  ;;  %v6581_v4 = vadd.f32 %v7464_v40, %v2911_v10 }
 0x5f7   :  { %7467 = vst [vmem:[#allocation13_spill] sm:$0xff] %v6556_v39  ;;  %v2830_v48 = vmul.f32 %v6495_v21, %v7468_v35  ;;  %v6565_v9 = vadd.f32 %v7469_v63, %v2916_v62  ;;  %v3062_v41 = vmax.f32 %v6540_v47, %v6556_v39  ;;  %v6578_v7 = vadd.f32 %v7466_v25, %v2910_v50 }
 0x5f8   :  { %v2921_v62 = vmul.f32 %v7450_v13, %v2829_v34  ;;  %v6585_v23 = vadd.f32 %v7469_v63, %v2912_v37  ;;  %v2924_v35 = vmul.f32 %v7463_v32, %v2832_v14  ;;  %v7472_v34 = vsub.f32 %v6074_v43, %v6361_v2 }
 0x5f9   :  { %7471 = vst [vmem:[#allocation19_spill] sm:$0xff] %v6578_v7  ;;  %v2922_v12 = vmul.f32 %v7459_v42, %v2830_v48  ;;  %v3063_v44 = vmax.f32 %v3062_v41, %v6548_v20  ;;  %v3057_v50 = vmax.f32 %v6569_v60, %v6578_v7  ;;  %v6604_v19 = vadd.f32 %v7464_v40, %v2923_v1 }
 0x5fa   :  { %v6594_v39 = vadd.f32 %v7461_v45, %v2921_v62  ;;  %v2825_v10 = vmul.f32 %v6473_v61, %v7472_v34  ;;  %v6607_v48 = vadd.f32 %v7469_v63, %v2924_v35  ;;  %v7474_v14 = vsub.f32 %v6086_v51, %v6365_v53 }
 0x5fb   :  { %v6601_v37 = vadd.f32 %v7466_v25, %v2922_v12  ;;  %v3064_v62 = vmax.f32 %v3063_v44, %v6565_v9  ;;  %v3058_v43 = vmax.f32 %v3057_v50, %v6581_v4  ;;  %v7475_v34 = vsub.f32 %v6077_v56, %v6363_v36 }
 0x5fc   :  { %v2826_v41 = vmul.f32 %v6495_v21, %v7474_v14  ;;  %v7476_v1 = vsub.f32 %v6089_v33, %v6367_v57  ;;  %v2917_v51 = vmul.f32 %v7450_v13, %v2825_v10  ;;  %v7477_v44 = vsub.f32 %v6158_v54, %v6361_v2 }
 0x5fd   :  { %7473 = vst [vmem:[#allocation21_spill] sm:$0xff] %v6601_v37  ;;  %v2827_v12 = vmul.f32 %v6483_v16, %v7475_v34  ;;  %v3072_v7 = vmax.f32 %v6594_v39, %v6601_v37  ;;  %3065 = vmax.xlane.f32.xlu1 %v3064_v62  ;;  %v3059_v56 = vmax.f32 %v3058_v43, %v6585_v23 }
 0x5fe   :  { %v2828_v35 = vmul.f32 %v6507_v31, %v7476_v1  ;;  %v2918_v14 = vmul.f32 %v7459_v42, %v2826_v41  ;;  %v2837_v50 = vmul.f32 %v6473_v61, %v7477_v44  ;;  %v7478_v1 = vsub.f32 %v6164_v24, %v6365_v53 }
 0x5ff   :  { %v2919_v34 = vmul.f32 %v7454_v11, %v2827_v12  ;;  %v3073_v10 = vmax.f32 %v3072_v7, %v6604_v19  ;;  %v6640_v41 = vadd.f32 %v7461_v45, %v2917_v51  ;;  %v7479_v62 = vsub.f32 %v6161_v49, %v6363_v36  ;;  %3060 = vmax.xlane.f32.xlu0 %v3059_v56 }
 0x600   :  { %v2920_v33 = vmul.f32 %v7463_v32, %v2828_v35  ;;  %v2838_v37 = vmul.f32 %v6495_v21, %v7478_v1  ;;  %v6643_v54 = vadd.f32 %v7466_v25, %v2918_v14  ;;  %v7480_v7 = vsub.f32 %v6167_v27, %v6367_v57 }
 0x601   :  { %v2839_v43 = vmul.f32 %v6483_v16, %v7479_v62  ;;  %v6650_v12 = vadd.f32 %v7464_v40, %v2919_v34  ;;  %v2929_v51 = vmul.f32 %v7450_v13, %v2837_v50  ;;  %v3074_v14 = vmax.f32 %v3073_v10, %v6607_v48 }
 0x602   :  { %v6653_v24 = vadd.f32 %v7469_v63, %v2920_v33  ;;  %v2840_v35 = vmul.f32 %v6507_v31, %v7480_v7  ;;  %v3067_v49 = vmax.f32 %v6640_v41, %v6643_v54  ;;  %v2930_v44 = vmul.f32 %v7459_v42, %v2838_v37 }
 0x603   :  { %v2931_v56 = vmul.f32 %v7454_v11, %v2839_v43  ;;  %v6667_v33 = vadd.f32 %v7461_v45, %v2929_v51  ;;  %v7481_v27 = vsub.f32 %v6134_v59, %v6361_v2  ;;  %v7482_v50 = vsub.f32 %v6140_v46, %v6365_v53  ;;  %3075 = vmax.xlane.f32.xlu1 %v3074_v14 }
 0x604   :  { %v2932_v34 = vmul.f32 %v7463_v32, %v2840_v35  ;;  %v3068_v37 = vmax.f32 %v3067_v49, %v6650_v12  ;;  %v6679_v62 = vadd.f32 %v7466_v25, %v2930_v44  ;;  %v7483_v7 = vsub.f32 %v6137_v30, %v6363_v36 }
 0x605   :  { %v2833_v1 = vmul.f32 %v6473_v61, %v7481_v27  ;;  %v2834_v10 = vmul.f32 %v6495_v21, %v7482_v50  ;;  %v6682_v43 = vadd.f32 %v7464_v40, %v2931_v56  ;;  %v7484_v46 = vsub.f32 %v6143_v17, %v6367_v57 }
 0x606   :  { %v2835_v59 = vmul.f32 %v6483_v16, %v7483_v7  ;;  %v6689_v35 = vadd.f32 %v7469_v63, %v2932_v34  ;;  %v3069_v44 = vmax.f32 %v3068_v37, %v6653_v24  ;;  %v3082_v56 = vmax.f32 %v6667_v33, %v6679_v62 }
 0x607   :  { %v2836_v51 = vmul.f32 %v6507_v31, %v7484_v46  ;;  %v2925_v14 = vmul.f32 %v7450_v13, %v2833_v1  ;;  %v2926_v49 = vmul.f32 %v7459_v42, %v2834_v10  ;;  %v7485_v34 = vsub.f32 %v6206_v55, %v6361_v2 }
 0x608   :  { %v2927_v30 = vmul.f32 %v7454_v11, %v2835_v59  ;;  %v7486_v10 = vsub.f32 %v6212_v8, %v6365_v53  ;;  %3070 = vmax.xlane.f32.xlu0 %v3069_v44  ;;  %v3083_v7 = vmax.f32 %v3082_v56, %v6682_v43  ;;  %v7487_v59 = vsub.f32 %v6209_v0, %v6363_v36 }
 0x609   :  { %v2845_v27 = vmul.f32 %v6473_v61, %v7485_v34  ;;  %v2928_v17 = vmul.f32 %v7463_v32, %v2836_v51  ;;  %v6707_v50 = vadd.f32 %v7461_v45, %v2925_v14  ;;  %v6710_v1 = vadd.f32 %v7466_v25, %v2926_v49 }
 0x60a   :  { %v2846_v37 = vmul.f32 %v6495_v21, %v7486_v10  ;;  %v6718_v55 = vadd.f32 %v7464_v40, %v2927_v30  ;;  %v2847_v46 = vmul.f32 %v6483_v16, %v7487_v59  ;;  %v7488_v51 = vsub.f32 %v7425_v15, %v6367_v57 }
 0x60b   :  { %v6729_v8 = vadd.f32 %v7469_v63, %v2928_v17  ;;  %v3077_v49 = vmax.f32 %v6707_v50, %v6710_v1  ;;  %v2937_v44 = vmul.f32 %v7450_v13, %v2845_v27  ;;  %v3084_v30 = vmax.f32 %v3083_v7, %v6689_v35 }
 0x60c   :  { %v2848_v14 = vmul.f32 %v6507_v31, %v7488_v51  ;;  %v2938_v56 = vmul.f32 %v7459_v42, %v2846_v37  ;;  %v2939_v0 = vmul.f32 %v7454_v11, %v2847_v46  ;;  %v7489_v15 = vsub.f32 %v7426_v58, %v6361_v2 }
 0x60d   :  { %v3078_v17 = vmax.f32 %v3077_v49, %v6718_v55  ;;  %v6744_v59 = vadd.f32 %v7461_v45, %v2937_v44  ;;  %v7490_v37 = vsub.f32 %v7427_v28, %v6365_v53  ;;  %3085 = vmax.xlane.f32.xlu1 %v3084_v30  ;;  %v7491_v51 = vsub.f32 %v7428_v52, %v6363_v36 }
 0x60e   :  { %v2940_v34 = vmul.f32 %v7463_v32, %v2848_v14  ;;  %v2841_v10 = vmul.f32 %v6473_v61, %v7489_v15  ;;  %v6747_v27 = vadd.f32 %v7466_v25, %v2938_v56  ;;  %v6754_v46 = vadd.f32 %v7464_v40, %v2939_v0 }
 0x60f   :  { %v2842_v7 = vmul.f32 %v6495_v21, %v7490_v37  ;;  %v2843_v14 = vmul.f32 %v6483_v16, %v7491_v51  ;;  %v7492_v49 = vsub.f32 %v7429_v26, %v6367_v57  ;;  %v3079_v28 = vmax.f32 %v3078_v17, %v6729_v8 }
 0x610   :  { %v6757_v58 = vadd.f32 %v7469_v63, %v2940_v34  ;;  %v3092_v56 = vmax.f32 %v6744_v59, %v6747_v27  ;;  %v2933_v30 = vmul.f32 %v7450_v13, %v2841_v10  ;;  %v7493_v15 = vsub.f32 %v7430_v38, %v6361_v2 }
 0x611   :  { %v2844_v44 = vmul.f32 %v6507_v31, %v7492_v49  ;;  %v2934_v0 = vmul.f32 %v7459_v42, %v2842_v7  ;;  %v2935_v34 = vmul.f32 %v7454_v11, %v2843_v14  ;;  %v7494_v37 = vsub.f32 %v7431_v3, %v6365_v53  ;;  %3080 = vmax.xlane.f32.xlu0 %v3079_v28 }
 0x612   :  { %v2853_v26 = vmul.f32 %v6473_v61, %v7493_v15  ;;  %v3093_v51 = vmax.f32 %v3092_v56, %v6754_v46  ;;  %v6784_v10 = vadd.f32 %v7461_v45, %v2933_v30  ;;  %v7495_v14 = vsub.f32 %v7432_v5, %v6363_v36 }
 0x613   :  { %v2936_v52 = vmul.f32 %v7463_v32, %v2844_v44  ;;  %v2854_v17 = vmul.f32 %v6495_v21, %v7494_v37  ;;  %v6787_v7 = vadd.f32 %v7466_v25, %v2934_v0  ;;  %v6794_v49 = vadd.f32 %v7464_v40, %v2935_v34 }
 0x614   :  { %v2855_v38 = vmul.f32 %v6483_v16, %v7495_v14  ;;  %v7498_v44 = vsub.f32 %v7433_v29, %v6367_v57  ;;  %v2945_v56 = vmul.f32 %v7450_v13, %v2853_v26  ;;  %v3094_v30 = vmax.f32 %v3093_v51, %v6757_v58 }
 0x615   :  { %7496 = vst [vmem:[#allocation20_spill] sm:$0xff] %v6794_v49  ;;  %v6797_v3 = vadd.f32 %v7469_v63, %v2936_v52  ;;  %v3087_v5 = vmax.f32 %v6784_v10, %v6787_v7  ;;  %v2946_v0 = vmul.f32 %v7459_v42, %v2854_v17  ;;  %v7500_v29 = vsub.f32 %v7434_v18, %v6361_v2 }
 0x616   :  { %v2856_v28 = vmul.f32 %v6507_v31, %v7498_v44  ;;  %v2947_v34 = vmul.f32 %v7454_v11, %v2855_v38  ;;  %v6811_v52 = vadd.f32 %v7461_v45, %v2945_v56  ;;  %v7501_v26 = vsub.f32 %v7435_v6, %v6365_v53  ;;  %3095 = vmax.xlane.f32.xlu1 %v3094_v30  ;;  %v7506_v6 = vld [vmem:[#allocation18_spill] sm:$0xff] }
 0x617   :  { %7497 = vst [vmem:[#allocation22_spill] sm:$0xff] %v6797_v3  ;;  %v2849_v37 = vmul.f32 %v6473_v61, %v7500_v29  ;;  %v3088_v17 = vmax.f32 %v3087_v5, %v6794_v49  ;;  %v6823_v14 = vadd.f32 %v7466_v25, %v2946_v0  ;;  %v7504_v44 = vsub.f32 %v7436_v22, %v6363_v36 }
 0x618   :  { %v2948_v15 = vmul.f32 %v7463_v32, %v2856_v28  ;;  %7499 = vst [vmem:[#allocation15_spill] sm:$0xff] %v6811_v52  ;;  %v2850_v51 = vmul.f32 %v6495_v21, %v7501_v26  ;;  %v6826_v38 = vadd.f32 %v7464_v40, %v2947_v34  ;;  %v7507_v56 = vsub.f32 %v7506_v6, %v6367_v57  ;;  %v7508_v26 = vld [vmem:[#allocation27_spill] sm:$0xff] }
 0x619   :  { %7502 = vst [vmem:[#allocation17_spill] sm:$0xff] %v6823_v14  ;;  %v2851_v18 = vmul.f32 %v6483_v16, %v7504_v44  ;;  %v2941_v5 = vmul.f32 %v7450_v13, %v2849_v37  ;;  %v3089_v34 = vmax.f32 %v3088_v17, %v6797_v3  ;;  %v3102_v29 = vmax.f32 %v6811_v52, %v6823_v14  ;;  %v7517_v52 = vld [vmem:[#allocation30_spill] sm:$0xff] }
 0x61a   :  { %7503 = vst [vmem:[#allocation16_spill] sm:$0xff] %v6826_v38  ;;  %v6833_v28 = vadd.f32 %v7469_v63, %v2948_v15  ;;  %v2852_v30 = vmul.f32 %v6507_v31, %v7507_v56  ;;  %v2942_v0 = vmul.f32 %v7459_v42, %v2850_v51  ;;  %v7509_v15 = vsub.f32 %v7508_v26, %v6361_v2  ;;  %v7512_v51 = vld [vmem:[#allocation29_spill] sm:$0xff] }
 0x61b   :  { %v2943_v22 = vmul.f32 %v7454_v11, %v2851_v18  ;;  %v6851_v56 = vadd.f32 %v7461_v45, %v2941_v5  ;;  %v7513_v17 = vsub.f32 %v7512_v51, %v6365_v53  ;;  %3090 = vmax.xlane.f32.xlu0 %v3089_v34  ;;  %v3103_v18 = vmax.f32 %v3102_v29, %v6826_v38  ;;  %v7519_v38 = vld [vmem:[#allocation23_spill] sm:$0xff] }
 0x61c   :  { %7505 = vst [vmem:[#allocation2_spill] sm:$0xff] %v6833_v28  ;;  %v2861_v44 = vmul.f32 %v6473_v61, %v7509_v15  ;;  %v2944_v6 = vmul.f32 %v7463_v32, %v2852_v30  ;;  %v6854_v37 = vadd.f32 %v7466_v25, %v2942_v0  ;;  %v7515_v15 = vld [vmem:[#allocation28_spill] sm:$0xff]  ;;  %v7518_v0 = vsub.f32 %v7517_v52, %v6367_v57 }
 0x61d   :  { %7510 = vst [vmem:[#allocation3_spill] sm:$0xff] %v6851_v56  ;;  %v2862_v14 = vmul.f32 %v6495_v21, %v7513_v17  ;;  %v6862_v26 = vadd.f32 %v7464_v40, %v2943_v22  ;;  %v7516_v30 = vsub.f32 %v7515_v15, %v6363_v36  ;;  %v3104_v17 = vmax.f32 %v3103_v18, %v6833_v28  ;;  %v7532_v28 = vld [vmem:[#allocation14_spill] sm:$0xff] }
 0x61e   :  { %7511 = vst [vmem:[#allocation4_spill] sm:$0xff] %v6854_v37  ;;  %v2864_v3 = vmul.f32 %v6507_v31, %v7518_v0  ;;  %v6873_v51 = vadd.f32 %v7469_v63, %v2944_v6  ;;  %v3097_v34 = vmax.f32 %v6851_v56, %v6854_v37  ;;  %v2953_v29 = vmul.f32 %v7450_v13, %v2861_v44  ;;  %v7531_v56 = vld [vmem:[#allocation12_spill] sm:$0xff] }
 0x61f   :  { %7514 = vst [vmem:[#allocation6_spill] sm:$0xff] %v6862_v26  ;;  %v2863_v5 = vmul.f32 %v6483_v16, %v7516_v30  ;;  %v2954_v22 = vmul.f32 %v7459_v42, %v2862_v14  ;;  %v7520_v52 = vsub.f32 %v7519_v38, %v6361_v2  ;;  %v7523_v14 = vld [vmem:[#allocation25_spill] sm:$0xff]  ;;  %3105 = vmax.xlane.f32.xlu1 %v3104_v17 }
 0x620   :  { %v2956_v30 = vmul.f32 %v7463_v32, %v2864_v3  ;;  %v3098_v6 = vmax.f32 %v3097_v34, %v6862_v26  ;;  %v6888_v49 = vadd.f32 %v7461_v45, %v2953_v29  ;;  %v7524_v18 = vsub.f32 %v7523_v14, %v6365_v53  ;;  %v7529_v26 = vld [vmem:[#allocation26_spill] sm:$0xff] }
 0x621   :  { %v2955_v15 = vmul.f32 %v7454_v11, %v2863_v5  ;;  %v2857_v0 = vmul.f32 %v6473_v61, %v7520_v52  ;;  %v6891_v44 = vadd.f32 %v7466_v25, %v2954_v22  ;;  %v7527_v52 = vld [vmem:[#allocation24_spill] sm:$0xff]  ;;  %v7530_v22 = vsub.f32 %v7529_v26, %v6367_v57 }
 0x622   :  { %7521 = vst [vmem:[#allocation5_spill] sm:$0xff] %v6888_v49  ;;  %v2858_v5 = vmul.f32 %v6495_v21, %v7524_v18  ;;  %v6901_v38 = vadd.f32 %v7469_v63, %v2956_v30  ;;  %v7528_v34 = vsub.f32 %v7527_v52, %v6363_v36  ;;  %v3099_v14 = vmax.f32 %v3098_v6, %v6873_v51 }
 0x623   :  { %7522 = vst [vmem:[#allocation8_spill] sm:$0xff] %v6891_v44  ;;  %v6898_v3 = vadd.f32 %v7464_v40, %v2955_v15  ;;  %v2860_v37 = vmul.f32 %v6507_v31, %v7530_v22  ;;  %v3112_v17 = vmax.f32 %v6888_v49, %v6891_v44  ;;  %v2949_v15 = vmul.f32 %v7450_v13, %v2857_v0 }
 0x624   :  { %7526 = vst [vmem:[#allocation9_spill] sm:$0xff] %v6901_v38  ;;  %v2859_v29 = vmul.f32 %v6483_v16, %v7528_v34  ;;  %v2950_v30 = vmul.f32 %v7459_v42, %v2858_v5  ;;  %v2964_v34 = vmul.f32 %v7463_v32, %v7531_v56  ;;  %v6922_v26 = vadd.f32 %v7461_v45, %v7532_v28  ;;  %v7534_v5 = vld [vmem:[#allocation11_spill] sm:$0xff]  ;;  %v7536_v56 = vld [vmem:[#allocation10_spill] sm:$0xff] }
 0x625   :  { %7525 = vst [vmem:[#allocation7_spill] sm:$0xff] %v6898_v3  ;;  %v2952_v52 = vmul.f32 %v7463_v32, %v2860_v37  ;;  %3100 = vmax.xlane.f32.xlu0 %v3099_v14  ;;  %v3113_v6 = vmax.f32 %v3112_v17, %v6898_v3  ;;  %v6926_v22 = vadd.f32 %v7461_v45, %v2949_v15 }
 0x626   :  { %v2951_v18 = vmul.f32 %v7454_v11, %v2859_v29  ;;  %v6929_v0 = vadd.f32 %v7466_v25, %v2950_v30  ;;  %v6933_v29 = vadd.f32 %v7466_v25, %v7534_v5  ;;  %v6940_v28 = vadd.f32 %v7464_v40, %v7536_v56  ;;  %v7537_v30 = vld [vmem:[#allocation31_spill] sm:$0xff]  ;;  %v7539_v56 = vld [vmem:[#allocation32_spill] sm:$0xff] }
 0x627   :  { %v3114_v14 = vmax.f32 %v3113_v6, %v6901_v38  ;;  %v2801_v3 = vsub.f32 %v7537_v30, %v6361_v2  ;;  %v6950_v5 = vadd.f32 %v7469_v63, %v2952_v52  ;;  %v2803_v49 = vsub.f32 %v7539_v56, %v6363_v36  ;;  %v7540_v6 = vld [vmem:[#allocation34_spill] sm:$0xff] }
 0x628   :  { %7533 = vst [vmem:[#allocation18_spill] sm:$0xff] %v6929_v0  ;;  %7535 = vst [vmem:[#allocation27_spill] sm:$0xff] %v6933_v29  ;;  %v6936_v37 = vadd.f32 %v7464_v40, %v2951_v18  ;;  %v3107_v17 = vmax.f32 %v6926_v22, %v6929_v0  ;;  %v3122_v15 = vmax.f32 %v6922_v26, %v6933_v29  ;;  %v7538_v18 = vld [vmem:[#allocation33_spill] sm:$0xff] }
 0x629   :  { %v2802_v44 = vsub.f32 %v7538_v18, %v6365_v53  ;;  %v2804_v38 = vsub.f32 %v7540_v6, %v6367_v57  ;;  %3115 = vmax.xlane.f32.xlu1 %v3114_v14  ;;  %v6960_v29 = vadd.f32 %v7469_v63, %v2964_v34  ;;  %v2865_v52 = vmul.f32 %v6473_v61, %v2801_v3 }
 0x62a   :  { %v3108_v0 = vmax.f32 %v3107_v17, %v6936_v37  ;;  %v3123_v2 = vmax.f32 %v3122_v15, %v6940_v28  ;;  %v2867_v53 = vmul.f32 %v6483_v16, %v2803_v49  ;;  %v7542_v15 = vld [vmem:[#allocation19_spill] sm:$0xff] }
 0x62b   :  { %v2866_v30 = vmul.f32 %v6495_v21, %v2802_v44  ;;  %v2868_v18 = vmul.f32 %v6507_v31, %v2804_v38  ;;  %v2957_v14 = vmul.f32 %v7450_v13, %v2865_v52  ;;  %v7541_v44 = vld [vmem:[#allocation13_spill] sm:$0xff] }
 0x62c   :  { %v3109_v36 = vmax.f32 %v3108_v0, %v6950_v5  ;;  %v3124_v57 = vmax.f32 %v3123_v2, %v6960_v29  ;;  %v2959_v34 = vmul.f32 %v7454_v11, %v2867_v53 }
 0x62d   :  { %v2958_v17 = vmul.f32 %v7459_v42, %v2866_v30  ;;  %v6973_v61 = vadd.f32 %v7461_v45, %v2957_v14  ;;  %v2960_v21 = vmul.f32 %v7463_v32, %v2868_v18  ;;  %v7543_v14 = vld [vmem:[#allocation21_spill] sm:$0xff] }
 0x62e   :  { %3110 = vmax.xlane.f32.xlu0 %v3109_v36  ;;  %3125 = vmax.xlane.f32.xlu1 %v3124_v57  ;;  %v6980_v31 = vadd.f32 %v7464_v40, %v2959_v34 }
 0x62f   :  { %v6977_v16 = vadd.f32 %v7466_v25, %v2958_v17  ;;  %v6985_v42 = vadd.f32 %v7469_v63, %v2960_v21 }
 0x631   :  { %v3117_v13 = vmax.f32 %v6973_v61, %v6977_v16 }
 0x633   :  { %v3118_v11 = vmax.f32 %v3117_v13, %v6980_v31 }
 0x635   :  { %v3119_v49 = vmax.f32 %v3118_v11, %v6985_v42 }
 0x637   :  { %3120 = vmax.xlane.f32.xlu0 %v3119_v49 }
 0x68a   :  { %v3066_v45 = vpop.xlane.xlu1 %3065 }
 0x68b   :  { %v3131_v32 = vsub.f32 %v6540_v47, %v3066_v45  ;;  %v3132_v25 = vsub.f32 %v7541_v44, %v3066_v45  ;;  %v3133_v3 = vsub.f32 %v6548_v20, %v3066_v45  ;;  %v3134_v40 = vsub.f32 %v6565_v9, %v3066_v45 }
 0x68c   :  { %v3061_v38 = vpop.xlane.xlu0 %3060 }
 0x68d   :  { %v3127_v0 = vsub.f32 %v6569_v60, %v3061_v38  ;;  %v3128_v63 = vsub.f32 %v7542_v15, %v3061_v38  ;;  %v3129_v56 = vsub.f32 %v6581_v4, %v3061_v38  ;;  %v3130_v6 = vsub.f32 %v6585_v23, %v3061_v38 }
 0x68f   :  { %v3183_v2 = vpack.c.bf16 %v3131_v32, %v3127_v0  ;;  %v3184_v52 = vpack.c.bf16 %v3132_v25, %v3128_v63  ;;  %v3185_v30 = vpack.c.bf16 %v3133_v3, %v3129_v56  ;;  %v3186_v53 = vpack.c.bf16 %v3134_v40, %v3130_v6 }
 0x690   :  { %v3076_v47 = vpop.xlane.xlu1 %3075 }
 0x691   :  { %v3212_v18 = vmul.bf16 1069105081, %v3183_v2  ;;  %v3215_v36 = vmul.bf16 1069105081, %v3184_v52  ;;  %v3218_v57 = vmul.bf16 1069105081, %v3185_v30  ;;  %v3139_v9 = vsub.f32 %v6594_v39, %v3076_v47 }
 0x692   :  { %v3221_v20 = vmul.bf16 1069105081, %v3186_v53  ;;  %v3140_v17 = vsub.f32 %v7543_v14, %v3076_v47  ;;  %v3141_v60 = vsub.f32 %v6604_v19, %v3076_v47  ;;  %v3142_v4 = vsub.f32 %v6607_v48, %v3076_v47 }
 0x693   :  { %4363 = vpow.bf16 %v3212_v18 }
 0x694   :  { %4365 = vpow.bf16 %v3215_v36 }
 0x695   :  { %v3071_v34 = vpop.xlane.xlu0 %3070  ;;  %4367 = vpow.bf16 %v3218_v57 }
 0x696   :  { %v3135_v23 = vsub.f32 %v6640_v41, %v3071_v34  ;;  %v3136_v21 = vsub.f32 %v6643_v54, %v3071_v34  ;;  %v3137_v13 = vsub.f32 %v6650_v12, %v3071_v34  ;;  %v3138_v11 = vsub.f32 %v6653_v24, %v3071_v34  ;;  %v7545_v34 = vld [vmem:[#allocation22_spill] sm:$0xff] }
 0x697   :  { %4369 = vpow.bf16 %v3221_v20 }
 0x698   :  { %v3187_v39 = vpack.c.bf16 %v3139_v9, %v3135_v23  ;;  %v3188_v49 = vpack.c.bf16 %v3140_v17, %v3136_v21  ;;  %v3189_v45 = vpack.c.bf16 %v3141_v60, %v3137_v13  ;;  %v3190_v32 = vpack.c.bf16 %v3142_v4, %v3138_v11  ;;  %v7544_v60 = vld [vmem:[#allocation20_spill] sm:$0xff] }
 0x69a   :  { %v3086_v19 = vpop.xlane.xlu1 %3085  ;;  %v3224_v44 = vmul.bf16 1069105081, %v3187_v39  ;;  %v3227_v25 = vmul.bf16 1069105081, %v3188_v49  ;;  %v3230_v48 = vmul.bf16 1069105081, %v3189_v45 }
 0x69b   :  { %v3147_v3 = vsub.f32 %v6667_v33, %v3086_v19  ;;  %v3148_v41 = vsub.f32 %v6679_v62, %v3086_v19  ;;  %v3149_v54 = vsub.f32 %v6682_v43, %v3086_v19  ;;  %v3233_v12 = vmul.bf16 1069105081, %v3190_v32 }
 0x69c   :  { %4371 = vpow.bf16 %v3224_v44  ;;  %v3150_v40 = vsub.f32 %v6689_v35, %v3086_v19 }
 0x69d   :  { %4373 = vpow.bf16 %v3227_v25 }
 0x69e   :  { %v3081_v24 = vpop.xlane.xlu0 %3080  ;;  %4375 = vpow.bf16 %v3230_v48  ;;  %v7013_v6 = vpop.eup %4363 }
 0x69f   :  { %v3143_v38 = vsub.f32 %v6707_v50, %v3081_v24  ;;  %v3144_v0 = vsub.f32 %v6710_v1, %v3081_v24  ;;  %v3145_v15 = vsub.f32 %v6718_v55, %v3081_v24  ;;  %v3146_v63 = vsub.f32 %v6729_v8, %v3081_v24  ;;  %v7015_v35 = vpop.eup %4365 }
 0x6a0   :  { %4377 = vpow.bf16 %v3233_v12  ;;  %v7018_v53 = vpop.eup %4367  ;;  %v3299_v57 = vunpack.c.h.bf16 %v7013_v6  ;;  %v3300_v20 = vunpack.c.h.bf16 %v7015_v35  ;;  %v3295_v17 = vunpack.c.l.bf16 %v7013_v6  ;;  %v7546_v12 = vld [vmem:[#allocation15_spill] sm:$0xff] }
 0x6a1   :  { %v3191_v33 = vpack.c.bf16 %v3147_v3, %v3143_v38  ;;  %v3192_v56 = vpack.c.bf16 %v3148_v41, %v3144_v0  ;;  %v3193_v62 = vpack.c.bf16 %v3149_v54, %v3145_v15  ;;  %v3194_v43 = vpack.c.bf16 %v3150_v40, %v3146_v63  ;;  %v7547_v0 = vld [vmem:[#allocation17_spill] sm:$0xff]  ;;  %v7548_v63 = vld [vmem:[#allocation16_spill] sm:$0xff] }
 0x6a2   :  { %v7023_v36 = vpop.eup %4369  ;;  %v3301_v9 = vunpack.c.h.bf16 %v7018_v53  ;;  %v3356_v21 = vadd.f32 %v3300_v20, %v3299_v57  ;;  %v3297_v13 = vunpack.c.l.bf16 %v7018_v53 }
 0x6a3   :  { %v3096_v2 = vpop.xlane.xlu1 %3095  ;;  %v3236_v52 = vmul.bf16 1069105081, %v3191_v33  ;;  %v3239_v30 = vmul.bf16 1069105081, %v3192_v56  ;;  %v3242_v50 = vmul.bf16 1069105081, %v3193_v62  ;;  %v3302_v14 = vunpack.c.h.bf16 %v7023_v36 }
 0x6a4   :  { %v3155_v1 = vsub.f32 %v6744_v59, %v3096_v2  ;;  %v3245_v55 = vmul.bf16 1069105081, %v3194_v43  ;;  %v3156_v8 = vsub.f32 %v6747_v27, %v3096_v2  ;;  %v3157_v47 = vsub.f32 %v6754_v46, %v3096_v2  ;;  %v7549_v56 = vld [vmem:[#allocation2_spill] sm:$0xff] }
 0x6a5   :  { %v3158_v18 = vsub.f32 %v6757_v58, %v3096_v2  ;;  %4379 = vpow.bf16 %v3236_v52  ;;  %v3296_v27 = vunpack.c.l.bf16 %v7015_v35  ;;  %v3298_v32 = vunpack.c.l.bf16 %v7023_v36 }
 0x6a6   :  { %4381 = vpow.bf16 %v3239_v30 }
 0x6a7   :  { %4383 = vpow.bf16 %v3242_v50  ;;  %v7036_v11 = vpop.eup %4371  ;;  %v3351_v25 = vadd.f32 %v3296_v27, %v3295_v17 }
 0x6a8   :  { %v3091_v59 = vpop.xlane.xlu0 %3090  ;;  %4385 = vpow.bf16 %v3245_v55  ;;  %v7039_v19 = vpop.eup %4373  ;;  %v3307_v48 = vunpack.c.h.bf16 %v7036_v11 }
 0x6a9   :  { %v3151_v46 = vsub.f32 %v6784_v10, %v3091_v59  ;;  %v3152_v58 = vsub.f32 %v6787_v7, %v3091_v59  ;;  %v3153_v4 = vsub.f32 %v7544_v60, %v3091_v59  ;;  %v3154_v23 = vsub.f32 %v7545_v34, %v3091_v59  ;;  %v7043_v24 = vpop.eup %4375 }
 0x6aa   :  { %v3357_v7 = vadd.f32 %v3356_v21, %v3301_v9  ;;  %v3352_v30 = vadd.f32 %v3351_v25, %v3297_v13  ;;  %v3308_v50 = vunpack.c.h.bf16 %v7039_v19 }
 0x6ab   :  { %v3195_v39 = vpack.c.bf16 %v3155_v1, %v3151_v46  ;;  %v3196_v49 = vpack.c.bf16 %v3156_v8, %v3152_v58  ;;  %v3197_v45 = vpack.c.bf16 %v3157_v47, %v3153_v4  ;;  %v3198_v10 = vpack.c.bf16 %v3158_v18, %v3154_v23  ;;  %v7048_v43 = vpop.eup %4377  ;;  %v7550_v1 = vld [vmem:[#allocation3_spill] sm:$0xff]  ;;  %v7551_v8 = vld [vmem:[#allocation4_spill] sm:$0xff]  ;;  %v7552_v18 = vld [vmem:[#allocation6_spill] sm:$0xff] }
 0x6ac   :  { %v3106_v44 = vpop.xlane.xlu1 %3105  ;;  %v3358_v52 = vadd.f32 %v3357_v7, %v3302_v14  ;;  %v3353_v9 = vadd.f32 %v3352_v30, %v3298_v32  ;;  %v3309_v46 = vunpack.c.h.bf16 %v7043_v24  ;;  %v3310_v34 = vunpack.c.h.bf16 %v7048_v43  ;;  %v7554_v7 = vld [vmem:[#allocation8_spill] sm:$0xff] }
 0x6ad   :  { %v3248_v3 = vmul.bf16 1069105081, %v3195_v39  ;;  %v3251_v41 = vmul.bf16 1069105081, %v3196_v49  ;;  %v3254_v54 = vmul.bf16 1069105081, %v3197_v45  ;;  %v3163_v40 = vsub.f32 %v7546_v12, %v3106_v44 }
 0x6ae   :  { %v3257_v38 = vmul.bf16 1069105081, %v3198_v10  ;;  %v3164_v15 = vsub.f32 %v7547_v0, %v3106_v44  ;;  %v3165_v33 = vsub.f32 %v7548_v63, %v3106_v44  ;;  %v3166_v62 = vsub.f32 %v7549_v56, %v3106_v44  ;;  %3359 = vadd.xlane.f32.xlu1 %v3358_v52  ;;  %3354 = vadd.xlane.f32.xlu0 %v3353_v9  ;;  %v7553_v10 = vld [vmem:[#allocation5_spill] sm:$0xff] }
 0x6af   :  { %4387 = vpow.bf16 %v3248_v3  ;;  %v3366_v23 = vadd.f32 %v3308_v50, %v3307_v48  ;;  %v3303_v49 = vunpack.c.l.bf16 %v7036_v11  ;;  %v7555_v3 = vld [vmem:[#allocation7_spill] sm:$0xff]  ;;  %v3306_v63 = vunpack.c.l.bf16 %v7048_v43 }
 0x6b0   :  { %4389 = vpow.bf16 %v3251_v41  ;;  %v7055_v59 = vpop.eup %4379 }
 0x6b1   :  { %4391 = vpow.bf16 %v3254_v54  ;;  %v7058_v58 = vpop.eup %4381  ;;  %v7556_v54 = vld [vmem:[#allocation9_spill] sm:$0xff]  ;;  %v3367_v48 = vadd.f32 %v3366_v23, %v3309_v46 }
 0x6b2   :  { %v3101_v2 = vpop.xlane.xlu0 %3100  ;;  %4393 = vpow.bf16 %v3257_v38  ;;  %v7061_v21 = vpop.eup %4383 }
 0x6b3   :  { %v3159_v55 = vsub.f32 %v7550_v1, %v3101_v2  ;;  %v3160_v47 = vsub.f32 %v7551_v8, %v3101_v2  ;;  %v3161_v57 = vsub.f32 %v7552_v18, %v3101_v2  ;;  %v3162_v20 = vsub.f32 %v6873_v51, %v3101_v2  ;;  %v7064_v45 = vpop.eup %4385 }
 0x6b4   :  { %v3316_v1 = vunpack.c.h.bf16 %v7058_v58 }
 0x6b5   :  { %v3199_v17 = vpack.c.bf16 %v3163_v40, %v3159_v55  ;;  %v3200_v27 = vpack.c.bf16 %v3164_v15, %v3160_v47  ;;  %v3201_v14 = vpack.c.bf16 %v3165_v33, %v3161_v57  ;;  %v3202_v60 = vpack.c.bf16 %v3166_v62, %v3162_v20  ;;  %v7557_v62 = vld [vmem:[#allocation18_spill] sm:$0xff]  ;;  %v7558_v57 = vld [vmem:[#allocation27_spill] sm:$0xff] }
 0x6b6   :  { %v3116_v4 = vpop.xlane.xlu1 %3115  ;;  %v3304_v40 = vunpack.c.l.bf16 %v7039_v19  ;;  %v3305_v15 = vunpack.c.l.bf16 %v7043_v24  ;;  %v3315_v33 = vunpack.c.h.bf16 %v7055_v59 }
 0x6b7   :  { %v3260_v51 = vmul.bf16 1069105081, %v3199_v17  ;;  %v3263_v13 = vmul.bf16 1069105081, %v3200_v27  ;;  %v3266_v39 = vmul.bf16 1069105081, %v3201_v14  ;;  %v3171_v44 = vsub.f32 %v7553_v10, %v3116_v4 }
 0x6b8   :  { %v3269_v32 = vmul.bf16 1069105081, %v3202_v60  ;;  %v3172_v25 = vsub.f32 %v7554_v7, %v3116_v4  ;;  %v3173_v41 = vsub.f32 %v7555_v3, %v3116_v4  ;;  %v3174_v12 = vsub.f32 %v7556_v54, %v3116_v4 }
 0x6b9   :  { %4395 = vpow.bf16 %v3260_v51  ;;  %v3361_v17 = vadd.f32 %v3304_v40, %v3303_v49  ;;  %v3317_v51 = vunpack.c.h.bf16 %v7061_v21  ;;  %v3312_v49 = vunpack.c.l.bf16 %v7058_v58 }
 0x6ba   :  { %4397 = vpow.bf16 %v3263_v13  ;;  %v7083_v55 = vpop.eup %4387  ;;  %v3376_v13 = vadd.f32 %v3316_v1, %v3315_v33 }
 0x6bb   :  { %v3111_v38 = vpop.xlane.xlu0 %3110  ;;  %v7071_v0 = vpop.xlane.xlu1 %3125  ;;  %4399 = vpow.bf16 %v3266_v39  ;;  %v3362_v23 = vadd.f32 %v3361_v17, %v3305_v15  ;;  %v3314_v15 = vunpack.c.l.bf16 %v7064_v45  ;;  %v3319_v1 = vunpack.c.l.bf16 %v7083_v55 }
 0x6bc   :  { %v3167_v56 = vsub.f32 %v6926_v22, %v3111_v38  ;;  %v3168_v2 = vsub.f32 %v7557_v62, %v3111_v38  ;;  %v3169_v52 = vsub.f32 %v6936_v37, %v3111_v38  ;;  %4401 = vpow.bf16 %v3269_v32  ;;  %v7087_v20 = vpop.eup %4389 }
 0x6bd   :  { %v3170_v30 = vsub.f32 %v6950_v5, %v3111_v38  ;;  %v3179_v50 = vsub.f32 %v6922_v26, %v7071_v0  ;;  %v3180_v22 = vsub.f32 %v7558_v57, %v7071_v0  ;;  %v3181_v37 = vsub.f32 %v6940_v28, %v7071_v0  ;;  %v7091_v27 = vpop.eup %4391 }
 0x6be   :  { %v3203_v8 = vpack.c.bf16 %v3171_v44, %v3167_v56  ;;  %v3204_v47 = vpack.c.bf16 %v3172_v25, %v3168_v2  ;;  %v3205_v18 = vpack.c.bf16 %v3173_v41, %v3169_v52  ;;  %v3368_v5 = vadd.f32 %v3367_v48, %v3310_v34  ;;  %v7096_v39 = vpop.eup %4393 }
 0x6bf   :  { %v3206_v9 = vpack.c.bf16 %v3174_v12, %v3170_v30  ;;  %v3182_v60 = vsub.f32 %v6960_v29, %v7071_v0  ;;  %v3318_v28 = vunpack.c.h.bf16 %v7064_v45  ;;  %v3311_v34 = vunpack.c.l.bf16 %v7055_v59 }
 0x6c0   :  { %v3272_v26 = vmul.bf16 1069105081, %v3203_v8  ;;  %v3275_v14 = vmul.bf16 1069105081, %v3204_v47  ;;  %v3278_v46 = vmul.bf16 1069105081, %v3205_v18  ;;  %3369 = vadd.xlane.f32.xlu1 %v3368_v5  ;;  %v3363_v32 = vadd.f32 %v3362_v23, %v3306_v63 }
 0x6c1   :  { %v3281_v4 = vmul.bf16 1069105081, %v3206_v9  ;;  %v3377_v10 = vadd.f32 %v3376_v13, %v3317_v51  ;;  %v3313_v29 = vunpack.c.l.bf16 %v7061_v21  ;;  %v3371_v7 = vadd.f32 %v3312_v49, %v3311_v34 }
 0x6c2   :  { %4403 = vpow.bf16 %v3272_v26  ;;  %v3323_v25 = vunpack.c.h.bf16 %v7083_v55  ;;  %v3324_v3 = vunpack.c.h.bf16 %v7087_v20  ;;  %3364 = vadd.xlane.f32.xlu0 %v3363_v32  ;;  %v3320_v18 = vunpack.c.l.bf16 %v7087_v20 }
 0x6c3   :  { %4405 = vpow.bf16 %v3275_v14  ;;  %v3378_v0 = vadd.f32 %v3377_v10, %v3318_v28  ;;  %v3372_v63 = vadd.f32 %v3371_v7, %v3313_v29  ;;  %v3321_v9 = vunpack.c.l.bf16 %v7091_v27 }
 0x6c4   :  { %4407 = vpow.bf16 %v3278_v46  ;;  %v3121_v44 = vpop.xlane.xlu0 %3120  ;;  %v7104_v41 = vpop.eup %4395  ;;  %v3386_v30 = vadd.f32 %v3324_v3, %v3323_v25  ;;  %v3322_v14 = vunpack.c.l.bf16 %v7096_v39 }
 0x6c5   :  { %4409 = vpow.bf16 %v3281_v4  ;;  %v3175_v54 = vsub.f32 %v6973_v61, %v3121_v44  ;;  %v3176_v12 = vsub.f32 %v6977_v16, %v3121_v44  ;;  %v3177_v48 = vsub.f32 %v6980_v31, %v3121_v44  ;;  %v7109_v40 = vpop.eup %4397  ;;  %3379 = vadd.xlane.f32.xlu1 %v3378_v0 }
 0x6c6   :  { %v3178_v38 = vsub.f32 %v6985_v42, %v3121_v44  ;;  %v7113_v33 = vpop.eup %4399  ;;  %v3325_v61 = vunpack.c.h.bf16 %v7091_v27  ;;  %v3373_v31 = vadd.f32 %v3372_v63, %v3314_v15  ;;  %v3331_v5 = vunpack.c.h.bf16 %v7104_v41 }
 0x6c7   :  { %v3207_v56 = vpack.c.bf16 %v3179_v50, %v3175_v54  ;;  %v3208_v62 = vpack.c.bf16 %v3180_v22, %v3176_v12  ;;  %v3209_v2 = vpack.c.bf16 %v3181_v37, %v3177_v48  ;;  %v7116_v52 = vpop.eup %4401  ;;  %v3326_v50 = vunpack.c.h.bf16 %v7096_v39 }
 0x6c8   :  { %v3210_v16 = vpack.c.bf16 %v3182_v60, %v3178_v38  ;;  %3374 = vadd.xlane.f32.xlu0 %v3373_v31  ;;  %v3387_v22 = vadd.f32 %v3386_v30, %v3325_v61  ;;  %v3381_v37 = vadd.f32 %v3320_v18, %v3319_v1  ;;  %v3332_v17 = vunpack.c.h.bf16 %v7109_v40 }
 0x6c9   :  { %v3284_v42 = vmul.bf16 1069105081, %v3207_v56  ;;  %v3287_v8 = vmul.bf16 1069105081, %v3208_v62  ;;  %v3290_v47 = vmul.bf16 1069105081, %v3209_v2  ;;  %v3333_v46 = vunpack.c.h.bf16 %v7113_v33 }
 0x6ca   :  { %v3293_v57 = vmul.bf16 1069105081, %v3210_v16  ;;  %v3388_v26 = vadd.f32 %v3387_v22, %v3326_v50  ;;  %v3382_v4 = vadd.f32 %v3381_v37, %v3321_v9  ;;  %v3396_v23 = vadd.f32 %v3332_v17, %v3331_v5 }
 0x6cb   :  { %4411 = vpow.bf16 %v3284_v42  ;;  %v3327_v51 = vunpack.c.l.bf16 %v7104_v41  ;;  %v3334_v28 = vunpack.c.h.bf16 %v7116_v52  ;;  %v3328_v34 = vunpack.c.l.bf16 %v7109_v40 }
 0x6cc   :  { %4413 = vpow.bf16 %v3287_v8  ;;  %3389 = vadd.xlane.f32.xlu1 %v3388_v26  ;;  %v3383_v32 = vadd.f32 %v3382_v4, %v3322_v14  ;;  %v3397_v10 = vadd.f32 %v3396_v23, %v3333_v46  ;;  %v3329_v25 = vunpack.c.l.bf16 %v7113_v33 }
 0x6cd   :  { %v7126_v60 = vpop.eup %4403  ;;  %4415 = vpow.bf16 %v3290_v47  ;;  %v3391_v3 = vadd.f32 %v3328_v34, %v3327_v51  ;;  %v3330_v15 = vunpack.c.l.bf16 %v7116_v52 }
 0x6ce   :  { %v7129_v13 = vpop.eup %4405  ;;  %4417 = vpow.bf16 %v3293_v57  ;;  %v3339_v29 = vunpack.c.h.bf16 %v7126_v60  ;;  %v3335_v54 = vunpack.c.l.bf16 %v7126_v60  ;;  %3384 = vadd.xlane.f32.xlu0 %v3383_v32  ;;  %v3398_v48 = vadd.f32 %v3397_v10, %v3334_v28 }
 0x6cf   :  { %v7133_v49 = vpop.eup %4407  ;;  %v3340_v44 = vunpack.c.h.bf16 %v7129_v13  ;;  %v3336_v12 = vunpack.c.l.bf16 %v7129_v13  ;;  %v3392_v63 = vadd.f32 %v3391_v3, %v3329_v25 }
 0x6d0   :  { %v7137_v7 = vpop.eup %4409  ;;  %v3341_v38 = vunpack.c.h.bf16 %v7133_v49  ;;  %v3337_v56 = vunpack.c.l.bf16 %v7133_v49  ;;  %3399 = vadd.xlane.f32.xlu1 %v3398_v48 }
 0x6d1   :  { %v3406_v0 = vadd.f32 %v3340_v44, %v3339_v29  ;;  %v3401_v62 = vadd.f32 %v3336_v12, %v3335_v54  ;;  %v3342_v2 = vunpack.c.h.bf16 %v7137_v7  ;;  %v3393_v16 = vadd.f32 %v3392_v63, %v3330_v15 }
 0x6d2   :  { %v3338_v31 = vunpack.c.l.bf16 %v7137_v7 }
 0x6d3   :  { %v3407_v61 = vadd.f32 %v3406_v0, %v3341_v38  ;;  %v3402_v30 = vadd.f32 %v3401_v62, %v3337_v56  ;;  %3394 = vadd.xlane.f32.xlu0 %v3393_v16 }
 0x6d5   :  { %v3408_v1 = vadd.f32 %v3407_v61, %v3342_v2  ;;  %v3403_v8 = vadd.f32 %v3402_v30, %v3338_v31 }
 0x6d6   :  { %v7147_v42 = vpop.eup %4411 }
 0x6d7   :  { %v7149_v47 = vpop.eup %4413  ;;  %3409 = vadd.xlane.f32.xlu1 %v3408_v1  ;;  %v3347_v18 = vunpack.c.h.bf16 %v7147_v42  ;;  %v3343_v57 = vunpack.c.l.bf16 %v7147_v42  ;;  %3404 = vadd.xlane.f32.xlu0 %v3403_v8 }
 0x6d8   :  { %v7153_v50 = vpop.eup %4415  ;;  %v3348_v22 = vunpack.c.h.bf16 %v7149_v47  ;;  %v3344_v9 = vunpack.c.l.bf16 %v7149_v47 }
 0x6d9   :  { %v7157_v37 = vpop.eup %4417  ;;  %v3349_v5 = vunpack.c.h.bf16 %v7153_v50  ;;  %v3345_v26 = vunpack.c.l.bf16 %v7153_v50 }
 0x6da   :  { %v3416_v17 = vadd.f32 %v3348_v22, %v3347_v18  ;;  %v3411_v14 = vadd.f32 %v3344_v9, %v3343_v57  ;;  %v3350_v46 = vunpack.c.h.bf16 %v7157_v37  ;;  %v3346_v23 = vunpack.c.l.bf16 %v7157_v37 }
 0x6dc   :  { %v3417_v4 = vadd.f32 %v3416_v17, %v3349_v5  ;;  %v3412_v51 = vadd.f32 %v3411_v14, %v3345_v26 }
 0x6de   :  { %v3418_v28 = vadd.f32 %v3417_v4, %v3350_v46  ;;  %v3413_v34 = vadd.f32 %v3412_v51, %v3346_v23 }
 0x6e0   :  { %3419 = vadd.xlane.f32.xlu1 %v3418_v28  ;;  %3414 = vadd.xlane.f32.xlu0 %v3413_v34 }
 0x73b   :  { %v3360_v32 = vpop.xlane.xlu1 %3359  ;;  %v3355_v10 = vpop.xlane.xlu0 %3354 }
 0x73c   :  { %4419 = vrcp.f32 %v3360_v32 }
 0x73d   :  { %4421 = vrcp.f32 %v3355_v10 }
 0x746   :  { %v4420_v29 = vpop.eup %4419 }
 0x747   :  { %v4422_v25 = vpop.eup %4421 }
 0x748   :  { %v3435_v3 = vpack.c.bf16 %v4420_v29, %v4422_v25 }
 0x74a   :  { %v3442_v54 = vmul.bf16 %v7013_v6, %v3435_v3  ;;  %v3443_v12 = vmul.bf16 %v7015_v35, %v3435_v3  ;;  %v3444_v48 = vmul.bf16 %v7018_v53, %v3435_v3  ;;  %v3445_v38 = vmul.bf16 %v7023_v36, %v3435_v3 }
 0x74c   :  { %v3795_v15 = vcombine.low %v3442_v54, %v3443_v12  ;;  %v3796_v63 = vcombine.low %v3444_v48, %v3445_v38  ;;  %v3797_v56 = vcombine.high %v3442_v54, %v3443_v12  ;;  %v3798_v62 = vcombine.high %v3444_v48, %v3445_v38 }
 0x74d   :  { %v3370_v44 = vpop.xlane.xlu1 %3369 }
 0x74e   :  { %4423 = vrcp.f32 %v3370_v44  ;;  %3610 = vst [vmem:[%s7285_s8] sm:$0xff] %v3795_v15  ;;  %3611 = vst [vmem:[%s7285_s8 + $0x8] sm:$0xff] %v3796_v63 }
 0x74f   :  { %v3365_v0 = vpop.xlane.xlu0 %3364  ;;  %3612 = vst [vmem:[%s7285_s8 + $0x10] sm:$0xff] %v3797_v56  ;;  %3613 = vst [vmem:[%s7285_s8 + $0x18] sm:$0xff] %v3798_v62 }
 0x750   :  { %4425 = vrcp.f32 %v3365_v0 }
 0x752   :  { %v3380_v2 = vpop.xlane.xlu1 %3379 }
 0x753   :  { %4427 = vrcp.f32 %v3380_v2 }
 0x755   :  { %v3375_v6 = vpop.xlane.xlu0 %3374 }
 0x756   :  { %4429 = vrcp.f32 %v3375_v6 }
 0x758   :  { %v4424_v35 = vpop.eup %4423 }
 0x759   :  { %v3390_v53 = vpop.xlane.xlu1 %3389 }
 0x75a   :  { %v4426_v36 = vpop.eup %4425  ;;  %4431 = vrcp.f32 %v3390_v53 }
 0x75b   :  { %v3436_v61 = vpack.c.bf16 %v4424_v35, %v4426_v36  ;;  %v3385_v16 = vpop.xlane.xlu0 %3384 }
 0x75c   :  { %4433 = vrcp.f32 %v3385_v16 }
 0x75d   :  { %v4428_v31 = vpop.eup %4427  ;;  %v3446_v30 = vmul.bf16 %v7036_v11, %v3436_v61  ;;  %v3447_v1 = vmul.bf16 %v7039_v19, %v3436_v61  ;;  %v3448_v8 = vmul.bf16 %v7043_v24, %v3436_v61  ;;  %v3449_v18 = vmul.bf16 %v7048_v43, %v3436_v61  ;;  %v3400_v57 = vpop.xlane.xlu1 %3399 }
 0x75e   :  { %4435 = vrcp.f32 %v3400_v57 }
 0x75f   :  { %v3799_v9 = vcombine.low %v3446_v30, %v3447_v1  ;;  %v3800_v5 = vcombine.low %v3448_v8, %v3449_v18  ;;  %v3801_v17 = vcombine.high %v3446_v30, %v3447_v1  ;;  %v3802_v26 = vcombine.high %v3448_v8, %v3449_v18 }
 0x760   :  { %v4430_v22 = vpop.eup %4429  ;;  %v3395_v46 = vpop.xlane.xlu0 %3394 }
 0x761   :  { %v3437_v14 = vpack.c.bf16 %v4428_v31, %v4430_v22  ;;  %3614 = vst [vmem:[%s7285_s8 + $0x20] sm:$0xff] %v3799_v9  ;;  %3615 = vst [vmem:[%s7285_s8 + $0x28] sm:$0xff] %v3800_v5  ;;  %4437 = vrcp.f32 %v3395_v46 }
 0x762   :  { %3616 = vst [vmem:[%s7285_s8 + $0x30] sm:$0xff] %v3801_v17  ;;  %3617 = vst [vmem:[%s7285_s8 + $0x38] sm:$0xff] %v3802_v26 }
 0x763   :  { %v3450_v19 = vmul.bf16 %v7055_v59, %v3437_v14  ;;  %v3451_v24 = vmul.bf16 %v7058_v58, %v3437_v14  ;;  %v3452_v43 = vmul.bf16 %v7061_v21, %v3437_v14  ;;  %v3453_v4 = vmul.bf16 %v7064_v45, %v3437_v14 }
 0x764   :  { %v3410_v11 = vpop.xlane.xlu1 %3409  ;;  %v4432_v23 = vpop.eup %4431 }
 0x765   :  { %4439 = vrcp.f32 %v3410_v11  ;;  %v3803_v51 = vcombine.low %v3450_v19, %v3451_v24  ;;  %v3804_v28 = vcombine.low %v3452_v43, %v3453_v4  ;;  %v3805_v34 = vcombine.high %v3450_v19, %v3451_v24  ;;  %v3405_v10 = vpop.xlane.xlu0 %3404 }
 0x766   :  { %v3806_v32 = vcombine.high %v3452_v43, %v3453_v4  ;;  %4441 = vrcp.f32 %v3405_v10  ;;  %v4434_v29 = vpop.eup %4433 }
 0x767   :  { %3618 = vst [vmem:[%s7285_s8 + $0x40] sm:$0xff] %v3803_v51  ;;  %3619 = vst [vmem:[%s7285_s8 + $0x48] sm:$0xff] %v3804_v28  ;;  %v3438_v59 = vpack.c.bf16 %v4432_v23, %v4434_v29 }
 0x768   :  { %3620 = vst [vmem:[%s7285_s8 + $0x50] sm:$0xff] %v3805_v34  ;;  %3621 = vst [vmem:[%s7285_s8 + $0x58] sm:$0xff] %v3806_v32  ;;  %v4436_v58 = vpop.eup %4435 }
 0x769   :  { %v3454_v21 = vmul.bf16 %v7083_v55, %v3438_v59  ;;  %v3455_v45 = vmul.bf16 %v7087_v20, %v3438_v59  ;;  %v3456_v44 = vmul.bf16 %v7091_v27, %v3438_v59  ;;  %v3457_v25 = vmul.bf16 %v7096_v39, %v3438_v59 }
 0x76b   :  { %v4438_v12 = vpop.eup %4437  ;;  %v3807_v48 = vcombine.low %v3454_v21, %v3455_v45  ;;  %v3808_v38 = vcombine.low %v3456_v44, %v3457_v25  ;;  %v3809_v0 = vcombine.high %v3454_v21, %v3455_v45  ;;  %v3810_v15 = vcombine.high %v3456_v44, %v3457_v25 }
 0x76c   :  { %v3439_v63 = vpack.c.bf16 %v4436_v58, %v4438_v12 }
 0x76d   :  { %v3420_v3 = vpop.xlane.xlu1 %3419  ;;  %v3415_v54 = vpop.xlane.xlu0 %3414  ;;  %3622 = vst [vmem:[%s7285_s8 + $0x60] sm:$0xff] %v3807_v48  ;;  %3623 = vst [vmem:[%s7285_s8 + $0x68] sm:$0xff] %v3808_v38 }
 0x76e   :  { %4443 = vrcp.f32 %v3420_v3  ;;  %3624 = vst [vmem:[%s7285_s8 + $0x70] sm:$0xff] %v3809_v0  ;;  %3625 = vst [vmem:[%s7285_s8 + $0x78] sm:$0xff] %v3810_v15  ;;  %v3458_v55 = vmul.bf16 %v7104_v41, %v3439_v63  ;;  %v3459_v20 = vmul.bf16 %v7109_v40, %v3439_v63  ;;  %v3460_v27 = vmul.bf16 %v7113_v33, %v3439_v63 }
 0x76f   :  { %v4440_v56 = vpop.eup %4439  ;;  %4445 = vrcp.f32 %v3415_v54  ;;  %v3461_v39 = vmul.bf16 %v7116_v52, %v3439_v63 }
 0x770   :  { %v4442_v62 = vpop.eup %4441  ;;  %v3811_v2 = vcombine.low %v3458_v55, %v3459_v20  ;;  %v3813_v35 = vcombine.high %v3458_v55, %v3459_v20 }
 0x771   :  { %v3812_v6 = vcombine.low %v3460_v27, %v3461_v39  ;;  %v3814_v53 = vcombine.high %v3460_v27, %v3461_v39  ;;  %v3440_v36 = vpack.c.bf16 %v4440_v56, %v4442_v62 }
 0x772   :  { %3626 = vst [vmem:[%s7285_s8 + $0x80] sm:$0xff] %v3811_v2  ;;  %3628 = vst [vmem:[%s7285_s8 + $0x90] sm:$0xff] %v3813_v35 }
 0x773   :  { %3627 = vst [vmem:[%s7285_s8 + $0x88] sm:$0xff] %v3812_v6  ;;  %3629 = vst [vmem:[%s7285_s8 + $0x98] sm:$0xff] %v3814_v53  ;;  %v3462_v41 = vmul.bf16 %v7126_v60, %v3440_v36  ;;  %v3463_v40 = vmul.bf16 %v7129_v13, %v3440_v36  ;;  %v3464_v33 = vmul.bf16 %v7133_v49, %v3440_v36 }
 0x774   :  { %v3465_v52 = vmul.bf16 %v7137_v7, %v3440_v36 }
 0x775   :  { %v3815_v61 = vcombine.low %v3462_v41, %v3463_v40  ;;  %v3817_v31 = vcombine.high %v3462_v41, %v3463_v40 }
 0x776   :  { %v3816_v16 = vcombine.low %v3464_v33, %v3465_v52  ;;  %v3818_v30 = vcombine.high %v3464_v33, %v3465_v52 }
 0x777   :  { %3630 = vst [vmem:[%s7285_s8 + $0xa0] sm:$0xff] %v3815_v61  ;;  %3632 = vst [vmem:[%s7285_s8 + $0xb0] sm:$0xff] %v3817_v31 }
 0x778   :  { %v4444_v1 = vpop.eup %4443  ;;  %3631 = vst [vmem:[%s7285_s8 + $0xa8] sm:$0xff] %v3816_v16  ;;  %3633 = vst [vmem:[%s7285_s8 + $0xb8] sm:$0xff] %v3818_v30 }
 0x779   :  { %v4446_v8 = vpop.eup %4445 }
 0x77a   :  { %v3441_v60 = vpack.c.bf16 %v4444_v1, %v4446_v8 }
 0x77c   :  { %v3466_v13 = vmul.bf16 %v7147_v42, %v3441_v60  ;;  %v3467_v49 = vmul.bf16 %v7149_v47, %v3441_v60  ;;  %v3468_v7 = vmul.bf16 %v7153_v50, %v3441_v60  ;;  %v3469_v18 = vmul.bf16 %v7157_v37, %v3441_v60 }
 0x77e   :  { %v3819_v57 = vcombine.low %v3466_v13, %v3467_v49  ;;  %v3820_v22 = vcombine.low %v3468_v7, %v3469_v18  ;;  %v3821_v9 = vcombine.high %v3466_v13, %v3467_v49  ;;  %v3822_v5 = vcombine.high %v3468_v7, %v3469_v18 }
 0x780   :  { %3634 = vst [vmem:[%s7285_s8 + $0xc0] sm:$0xff] %v3819_v57  ;;  %3635 = vst [vmem:[%s7285_s8 + $0xc8] sm:$0xff] %v3820_v22 }
 0x781   :  { %3636 = vst [vmem:[%s7285_s8 + $0xd0] sm:$0xff] %v3821_v9  ;;  %3637 = vst [vmem:[%s7285_s8 + $0xd8] sm:$0xff] %v3822_v5 }

</bundles_post_ra>
